<compile_context>
chip_gen: v5e
topology: v5e:2x2
jax: 0.10.0
libtpu: 0.0.40
codegen_flags: <defaults>
</compile_context>

<pallas_src>
import functools

import jax
import jax.numpy as jnp
from jax.experimental import pallas as pl
from jax.experimental.pallas import tpu as pltpu

HID = 128  # LSTM hidden size (== conv3 output channels == lstm_input_size)


# ----------------------------- Pallas kernels ------------------------------

def _conv_relu_pool_kernel(p_ref, w_ref, b_ref, o_ref):
    # p_ref: (4, TM, K) bf16 im2col patch slabs (slab s = pool offset dy*2+dx)
    # w_ref: (K, Cout) bf16, b_ref: (1, Cout) f32, o_ref: (TM, Cout) bf16
    s4, tm, k = p_ref.shape
    y = jnp.dot(p_ref[...].reshape(s4 * tm, k), w_ref[...],
                preferred_element_type=jnp.float32)           # (4*TM, Cout)
    m = jnp.maximum(jnp.maximum(y[0 * tm:1 * tm], y[1 * tm:2 * tm]),
                    jnp.maximum(y[2 * tm:3 * tm], y[3 * tm:4 * tm]))
    # max over slabs then +bias then ReLU == MaxPool2d(ReLU(conv + bias))
    # (bias is per-channel constant and max/ReLU are monotone).
    o_ref[...] = jnp.maximum(m + b_ref[...], 0.0).astype(o_ref.dtype)


def _pick_tm(m4):
    for t in (256, 128, 64, 32, 16, 8):
        if t <= m4 and m4 % t == 0:
            return t
    return m4


def conv_relu_pool(slabs, w, b):
    # slabs: (4, M4, K) bf16; returns (M4, Cout) bf16 pooled+ReLU'd features.
    _, m4, k = slabs.shape
    cout = w.shape[1]
    tm = _pick_tm(m4)
    flops = 2 * 4 * m4 * k * cout
    bytes_accessed = (4 * m4 * k * 2) + (k * cout * 2) + (cout * 4) + (m4 * cout * 2)
    return pl.pallas_call(
        _conv_relu_pool_kernel,
        out_shape=jax.ShapeDtypeStruct((m4, cout), jnp.bfloat16),
        grid=(m4 // tm,),
        in_specs=[
            pl.BlockSpec((4, tm, k), lambda i: (0, i, 0)),
            pl.BlockSpec((k, cout), lambda i: (0, 0)),
            pl.BlockSpec((1, cout), lambda i: (0, 0)),
        ],
        out_specs=pl.BlockSpec((tm, cout), lambda i: (i, 0)),
        compiler_params=pltpu.CompilerParams(
            dimension_semantics=("parallel",)),
        cost_estimate=pl.CostEstimate(flops=flops, transcendentals=0,
                                      bytes_accessed=bytes_accessed),
    )(slabs, w, b)


def _conv3_lstm_head_kernel(B, S, p_ref, w3_ref, b3_ref,
                            wih_ref, whh_ref, bg_ref,
                            w1_ref, b1_ref, w2_ref, b2_ref, o_ref):
    # p_ref: (4, B*S, K3) bf16 conv3 im2col pool slabs
    # w3: (K3, H) bf16, b3: (1, H) f32
    # wih: (H, 4H) bf16, whh: (H, 4H) bf16, bg: (1, 4H) f32 (b_ih + b_hh)
    # fc weights bf16, biases f32; o_ref: (B, num_classes) f32
    s4, n, k3 = p_ref.shape                      # n == B*S
    H4 = wih_ref.shape[1]
    H = H4 // 4

    # ---- conv3 + bias + ReLU + 2x2 max-pool (spatial out is 1x1) ----
    y = jnp.dot(p_ref[...].reshape(s4 * n, k3), w3_ref[...],
                preferred_element_type=jnp.float32)           # (4*n, H)
    m = jnp.maximum(jnp.maximum(y[0 * n:1 * n], y[1 * n:2 * n]),
                    jnp.maximum(y[2 * n:3 * n], y[3 * n:4 * n]))
    feat = jnp.maximum(m + b3_ref[...], 0.0)                  # (n, H) f32
    # rows are already in (b, s) order == the LSTM input sequence.

    # ---- hoisted LSTM input projection for all timesteps (one MXU matmul) ----
    gx = jnp.dot(feat.astype(jnp.bfloat16), wih_ref[...],
                 preferred_element_type=jnp.float32) + bg_ref[...]
    gx = gx.reshape(B, S, H4)                                 # (B, S, 4H)

    # ---- serial recurrence: only h @ W_hh left on the critical path ----
    whh = whh_ref[...]
    h = jnp.zeros((B, H), jnp.float32)
    c = jnp.zeros((B, H), jnp.float32)
    for t in range(S):                                        # S small & static
        g = gx[:, t] + jnp.dot(h.astype(jnp.bfloat16), whh,
                               preferred_element_type=jnp.float32)  # (B, 4H)
        i_g = jax.nn.sigmoid(g[:, 0 * H:1 * H])
        f_g = jax.nn.sigmoid(g[:, 1 * H:2 * H])
        g_g = jnp.tanh(g[:, 2 * H:3 * H])
        o_g = jax.nn.sigmoid(g[:, 3 * H:4 * H])
        c = f_g * c + i_g * g_g
        h = o_g * jnp.tanh(c)

    # ---- fused MLP head epilogue: fc1 -> ReLU -> fc2 -> logits ----
    z = jnp.maximum(
        jnp.dot(h.astype(jnp.bfloat16), w1_ref[...],
                preferred_element_type=jnp.float32) + b1_ref[...], 0.0)
    o_ref[...] = (jnp.dot(z.astype(jnp.bfloat16), w2_ref[...],
                          preferred_element_type=jnp.float32) + b2_ref[...])


def conv3_lstm_head(slabs3, params, B, S):
    # slabs3: (4, B*S, 9*64) bf16; returns logits (B, num_classes) f32.
    _, n, k3 = slabs3.shape
    C = params["fc2_w"].shape[1]
    flops = (2 * 4 * n * k3 * HID                 # conv3
             + 2 * n * HID * 4 * HID              # hoisted input projection
             + S * 2 * B * HID * 4 * HID          # recurrence
             + 2 * B * HID * HID + 2 * B * HID * C)
    trans = S * B * 5 * HID
    bytes_accessed = (4 * n * k3 * 2
                      + (k3 * HID + HID * 4 * HID * 2 + HID * HID + HID * C) * 2
                      + (HID + 4 * HID + HID + C) * 4 + B * C * 4)
    kernel = functools.partial(_conv3_lstm_head_kernel, B, S)
    return pl.pallas_call(
        kernel,
        out_shape=jax.ShapeDtypeStruct((B, C), jnp.float32),
        grid=(1,),
        in_specs=[
            pl.BlockSpec((4, n, k3), lambda i: (0, 0, 0)),
            pl.BlockSpec((k3, HID), lambda i: (0, 0)),
            pl.BlockSpec((1, HID), lambda i: (0, 0)),
            pl.BlockSpec((HID, 4 * HID), lambda i: (0, 0)),
            pl.BlockSpec((HID, 4 * HID), lambda i: (0, 0)),
            pl.BlockSpec((1, 4 * HID), lambda i: (0, 0)),
            pl.BlockSpec((HID, HID), lambda i: (0, 0)),
            pl.BlockSpec((1, HID), lambda i: (0, 0)),
            pl.BlockSpec((HID, C), lambda i: (0, 0)),
            pl.BlockSpec((1, C), lambda i: (0, 0)),
        ],
        out_specs=pl.BlockSpec((B, C), lambda i: (0, 0)),
        compiler_params=pltpu.CompilerParams(
            dimension_semantics=("arbitrary",)),
        cost_estimate=pl.CostEstimate(flops=flops, transcendentals=trans,
                                      bytes_accessed=bytes_accessed),
    )(slabs3, params["conv3_w"], params["conv3_b"],
      params["lstm_w_ih"], params["lstm_w_hh"], params["lstm_b"],
      params["fc1_w"], params["fc1_b"], params["fc2_w"], params["fc2_b"])


# ------------------------------- JAX glue ----------------------------------

def _im2col_pool_slabs(x):
    """x: (N, H, W, C) -> (4, N*(H//2)*(W//2), 9*C) patch slabs.

    Slab index s = dy*2+dx (2x2 pool offset); within a slab rows are ordered
    (n, h//2, w//2) so the in-kernel 4-way max implements MaxPool2d(2,2).
    """
    N, H, W, C = x.shape
    assert H % 2 == 0 and W % 2 == 0
    xp = jnp.pad(x, ((0, 0), (1, 1), (1, 1), (0, 0)))
    patches = jnp.stack(
        [xp[:, ky:ky + H, kx:kx + W, :] for ky in range(3) for kx in range(3)],
        axis=3)                                           # (N, H, W, 9, C)
    patches = patches.reshape(N, H // 2, 2, W // 2, 2, 9 * C)
    patches = patches.transpose(2, 4, 0, 1, 3, 5)         # (dy, dx, N, H2, W2, 9C)
    return patches.reshape(4, N * (H // 2) * (W // 2), 9 * C)


def chess_opening_classifier_forward(x, params):
    # x: (B, S, 8, 8) or (B, S, 1, 8, 8) float32 (torch's 4-D / 5-D input paths)
    if x.ndim == 5:
        assert x.shape[2] == 1, "expected 1 channel"
        x = x[:, :, 0]
    B, S, H, W = x.shape
    feat = x.reshape(B * S, H, W, 1).astype(jnp.bfloat16)  # NHWC, bf16 for MXU
    for name in ("conv1", "conv2"):
        N, Hc, Wc, _ = feat.shape
        slabs = _im2col_pool_slabs(feat)                   # (4, N*Hc*Wc/4, 9*Cin)
        w, b = params[name + "_w"], params[name + "_b"]
        out = conv_relu_pool(slabs, w, b)                  # (N*Hc*Wc/4, Cout) bf16
        feat = out.reshape(N, Hc // 2, Wc // 2, w.shape[1])
    # conv3 + pool + LSTM + fc1 + ReLU + fc2 all fused in one kernel;
    # conv3's pooled spatial dims are 1x1 so its rows are the (b, s) sequence.
    slabs3 = _im2col_pool_slabs(feat)                      # (4, B*S, 9*64)
    return conv3_lstm_head(slabs3, params, B, S)           # (B, num_classes)


# --------------------------- deterministic init -----------------------------

def init_params(key, num_classes):
    ks = jax.random.split(key, 13)

    def u(k, shape, fan_in, dtype=jnp.float32):
        bound = 1.0 / jnp.sqrt(jnp.float32(fan_in))
        return jax.random.uniform(k, shape, jnp.float32, -bound, bound).astype(dtype)

    bf = jnp.bfloat16
    # conv weights stored directly in im2col layout (9*Cin, Cout); equivalent
    # to a torch Conv2d weight of shape (Cout, Cin, 3, 3) suitably permuted.
    return {
        "conv1_w": u(ks[0], (9 * 1, 32), 9 * 1, bf),
        "conv1_b": u(ks[1], (1, 32), 9 * 1),
        "conv2_w": u(ks[2], (9 * 32, 64), 9 * 32, bf),
        "conv2_b": u(ks[3], (1, 64), 9 * 32),
        "conv3_w": u(ks[4], (9 * 64, 128), 9 * 64, bf),
        "conv3_b": u(ks[5], (1, 128), 9 * 64),
        "lstm_w_ih": u(ks[6], (HID, 4 * HID), HID, bf),    # gate order i, f, g, o
        "lstm_w_hh": u(ks[7], (HID, 4 * HID), HID, bf),
        "lstm_b": u(ks[8], (1, 4 * HID), HID),             # b_ih + b_hh combined
        "fc1_w": u(ks[9], (HID, HID), HID, bf),
        "fc1_b": u(ks[10], (1, HID), HID),
        "fc2_w": u(ks[11], (HID, num_classes), HID, bf),
        "fc2_b": u(ks[12], (1, num_classes), HID),
    }


if __name__ == "__main__":
    B, S, num_classes = 2, 8, 10   # MAX_MOVES (seq_len) chosen as 8 for this test
    key = jax.random.PRNGKey(0)
    kx, kp = jax.random.split(key)
    x = jax.random.normal(kx, (B, S, 8, 8), jnp.float32)
    params = init_params(kp, num_classes)

    logits = jax.jit(chess_opening_classifier_forward)(x, params)
    jax.block_until_ready(logits)
    assert logits.shape == (B, num_classes) and logits.dtype == jnp.float32
    print("KERNEL_OK")
</pallas_src>

<mosaic_0001>
module attributes {stable_mosaic.version = 11 : i64} {
  func.func @_conv_relu_pool_kernel(%arg0: i32, %arg1: memref<4x256x9xbf16, #tpu.memory_space<vmem>>, %arg2: memref<9x32xbf16, #tpu.memory_space<vmem>>, %arg3: memref<1x32xf32, #tpu.memory_space<vmem>>, %arg4: memref<256x32xbf16, #tpu.memory_space<vmem>>) attributes {dimension_semantics = [#tpu.dimension_semantics<parallel>], iteration_bounds = array<i64: 1>, scalar_prefetch = 0 : i64, scratch_operands = 0 : i64, tpu.core_type = #tpu.core_type<tc>, window_params = [{transform_indices = @transform_0, window_bounds = array<i64: 4, 256, 9>}, {pipeline_mode = #tpu.pipeline_mode<synchronous>, transform_indices = @transform_1, window_bounds = array<i64: 9, 32>}, {pipeline_mode = #tpu.pipeline_mode<synchronous>, transform_indices = @transform_2, window_bounds = array<i64: 1, 32>}, {transform_indices = @transform_3, window_bounds = array<i64: 256, 32>}]} {
    %c0 = arith.constant 0 : index
    %c0_0 = arith.constant 0 : index
    %c0_1 = arith.constant 0 : index
    %0 = vector.load %arg1[%c0, %c0_0, %c0_1] : memref<4x256x9xbf16, #tpu.memory_space<vmem>>, vector<4x256x9xbf16>
    %1 = vector.shape_cast %0 : vector<4x256x9xbf16> to vector<1024x9xbf16>
    %c0_2 = arith.constant 0 : index
    %c0_3 = arith.constant 0 : index
    %2 = vector.load %arg2[%c0_2, %c0_3] : memref<9x32xbf16, #tpu.memory_space<vmem>>, vector<9x32xbf16>
    %cst = arith.constant dense<0.000000e+00> : vector<1024x32xf32>
    %3 = tpu.matmul %1, %2, %cst {dimension_numbers = #tpu.dot_dimension_numbers<[1], [0], [0], [1], [0, 0, 1, 1], [], []>} : vector<1024x9xbf16>, vector<9x32xbf16>, vector<1024x32xf32> -> vector<1024x32xf32>
    %4 = vector.extract_strided_slice %3 {offsets = [0, 0], sizes = [256, 32], strides = [1, 1]} : vector<1024x32xf32> to vector<256x32xf32>
    %5 = vector.extract_strided_slice %3 {offsets = [256, 0], sizes = [256, 32], strides = [1, 1]} : vector<1024x32xf32> to vector<256x32xf32>
    %6 = arith.maximumf %4, %5 : vector<256x32xf32>
    %7 = vector.extract_strided_slice %3 {offsets = [512, 0], sizes = [256, 32], strides = [1, 1]} : vector<1024x32xf32> to vector<256x32xf32>
    %8 = vector.extract_strided_slice %3 {offsets = [768, 0], sizes = [256, 32], strides = [1, 1]} : vector<1024x32xf32> to vector<256x32xf32>
    %9 = arith.maximumf %7, %8 : vector<256x32xf32>
    %10 = arith.maximumf %6, %9 : vector<256x32xf32>
    %c0_4 = arith.constant 0 : index
    %c0_5 = arith.constant 0 : index
    %11 = vector.load %arg3[%c0_4, %c0_5] : memref<1x32xf32, #tpu.memory_space<vmem>>, vector<1x32xf32>
    %12 = vector.broadcast %11 : vector<1x32xf32> to vector<256x32xf32>
    %13 = arith.addf %10, %12 : vector<256x32xf32>
    %cst_6 = arith.constant 0.000000e+00 : f32
    %14 = vector.broadcast %cst_6 : f32 to vector<256x32xf32>
    %15 = arith.maximumf %13, %14 : vector<256x32xf32>
    %16 = arith.truncf %15 : vector<256x32xf32> to vector<256x32xbf16>
    %c0_7 = arith.constant 0 : index
    %c0_8 = arith.constant 0 : index
    %17 = vector.load %arg4[%c0_7, %c0_8] : memref<256x32xbf16, #tpu.memory_space<vmem>>, vector<256x32xbf16>
    tpu.vector_store %arg4[%c0_7, %c0_8], %16 {strides = array<i32>} : memref<256x32xbf16, #tpu.memory_space<vmem>>, vector<256x32xbf16>,
    return
  }
  func.func @transform_0(%arg0: i32) -> (i32, i32, i32) {
    %c0_i32 = arith.constant 0 : i32
    %c0_i32_0 = arith.constant 0 : i32
    %c0_i32_1 = arith.constant 0 : i32
    return %c0_i32, %arg0, %c0_i32_0 : i32, i32, i32
  }
  func.func @transform_1(%arg0: i32) -> (i32, i32) {
    %c0_i32 = arith.constant 0 : i32
    %c0_i32_0 = arith.constant 0 : i32
    %c0_i32_1 = arith.constant 0 : i32
    return %c0_i32, %c0_i32_0 : i32, i32
  }
  func.func @transform_2(%arg0: i32) -> (i32, i32) {
    %c0_i32 = arith.constant 0 : i32
    %c0_i32_0 = arith.constant 0 : i32
    %c0_i32_1 = arith.constant 0 : i32
    return %c0_i32, %c0_i32_0 : i32, i32
  }
  func.func @transform_3(%arg0: i32) -> (i32, i32) {
    %c0_i32 = arith.constant 0 : i32
    %c0_i32_0 = arith.constant 0 : i32
    return %arg0, %c0_i32 : i32, i32
  }
}

module attributes {stable_mosaic.version = 11 : i64} {
  func.func @_conv_relu_pool_kernel(%arg0: i32, %arg1: memref<4x64x288xbf16, #tpu.memory_space<vmem>>, %arg2: memref<288x64xbf16, #tpu.memory_space<vmem>>, %arg3: memref<1x64xf32, #tpu.memory_space<vmem>>, %arg4: memref<64x64xbf16, #tpu.memory_space<vmem>>) attributes {dimension_semantics = [#tpu.dimension_semantics<parallel>], iteration_bounds = array<i64: 1>, scalar_prefetch = 0 : i64, scratch_operands = 0 : i64, tpu.core_type = #tpu.core_type<tc>, window_params = [{transform_indices = @transform_0, window_bounds = array<i64: 4, 64, 288>}, {pipeline_mode = #tpu.pipeline_mode<synchronous>, transform_indices = @transform_1, window_bounds = array<i64: 288, 64>}, {pipeline_mode = #tpu.pipeline_mode<synchronous>, transform_indices = @transform_2, window_bounds = array<i64: 1, 64>}, {transform_indices = @transform_3, window_bounds = array<i64: 64, 64>}]} {
    %c0 = arith.constant 0 : index
    %c0_0 = arith.constant 0 : index
    %c0_1 = arith.constant 0 : index
    %0 = vector.load %arg1[%c0, %c0_0, %c0_1] : memref<4x64x288xbf16, #tpu.memory_space<vmem>>, vector<4x64x288xbf16>
    %1 = vector.shape_cast %0 : vector<4x64x288xbf16> to vector<256x288xbf16>
    %c0_2 = arith.constant 0 : index
    %c0_3 = arith.constant 0 : index
    %2 = vector.load %arg2[%c0_2, %c0_3] : memref<288x64xbf16, #tpu.memory_space<vmem>>, vector<288x64xbf16>
    %cst = arith.constant dense<0.000000e+00> : vector<256x64xf32>
    %3 = tpu.matmul %1, %2, %cst {dimension_numbers = #tpu.dot_dimension_numbers<[1], [0], [0], [1], [0, 0, 1, 1], [], []>} : vector<256x288xbf16>, vector<288x64xbf16>, vector<256x64xf32> -> vector<256x64xf32>
    %4 = vector.extract_strided_slice %3 {offsets = [0, 0], sizes = [64, 64], strides = [1, 1]} : vector<256x64xf32> to vector<64x64xf32>
    %5 = vector.extract_strided_slice %3 {offsets = [64, 0], sizes = [64, 64], strides = [1, 1]} : vector<256x64xf32> to vector<64x64xf32>
    %6 = arith.maximumf %4, %5 : vector<64x64xf32>
    %7 = vector.extract_strided_slice %3 {offsets = [128, 0], sizes = [64, 64], strides = [1, 1]} : vector<256x64xf32> to vector<64x64xf32>
    %8 = vector.extract_strided_slice %3 {offsets = [192, 0], sizes = [64, 64], strides = [1, 1]} : vector<256x64xf32> to vector<64x64xf32>
    %9 = arith.maximumf %7, %8 : vector<64x64xf32>
    %10 = arith.maximumf %6, %9 : vector<64x64xf32>
    %c0_4 = arith.constant 0 : index
    %c0_5 = arith.constant 0 : index
    %11 = vector.load %arg3[%c0_4, %c0_5] : memref<1x64xf32, #tpu.memory_space<vmem>>, vector<1x64xf32>
    %12 = vector.broadcast %11 : vector<1x64xf32> to vector<64x64xf32>
    %13 = arith.addf %10, %12 : vector<64x64xf32>
    %cst_6 = arith.constant 0.000000e+00 : f32
    %14 = vector.broadcast %cst_6 : f32 to vector<64x64xf32>
    %15 = arith.maximumf %13, %14 : vector<64x64xf32>
    %16 = arith.truncf %15 : vector<64x64xf32> to vector<64x64xbf16>
    %c0_7 = arith.constant 0 : index
    %c0_8 = arith.constant 0 : index
    %17 = vector.load %arg4[%c0_7, %c0_8] : memref<64x64xbf16, #tpu.memory_space<vmem>>, vector<64x64xbf16>
    tpu.vector_store %arg4[%c0_7, %c0_8], %16 {strides = array<i32>} : memref<64x64xbf16, #tpu.memory_space<vmem>>, vector<64x64xbf16>,
    return
  }
  func.func @transform_0(%arg0: i32) -> (i32, i32, i32) {
    %c0_i32 = arith.constant 0 : i32
    %c0_i32_0 = arith.constant 0 : i32
    %c0_i32_1 = arith.constant 0 : i32
    return %c0_i32, %arg0, %c0_i32_0 : i32, i32, i32
  }
  func.func @transform_1(%arg0: i32) -> (i32, i32) {
    %c0_i32 = arith.constant 0 : i32
    %c0_i32_0 = arith.constant 0 : i32
    %c0_i32_1 = arith.constant 0 : i32
    return %c0_i32, %c0_i32_0 : i32, i32
  }
  func.func @transform_2(%arg0: i32) -> (i32, i32) {
    %c0_i32 = arith.constant 0 : i32
    %c0_i32_0 = arith.constant 0 : i32
    %c0_i32_1 = arith.constant 0 : i32
    return %c0_i32, %c0_i32_0 : i32, i32
  }
  func.func @transform_3(%arg0: i32) -> (i32, i32) {
    %c0_i32 = arith.constant 0 : i32
    %c0_i32_0 = arith.constant 0 : i32
    return %arg0, %c0_i32 : i32, i32
  }
}

module attributes {stable_mosaic.version = 11 : i64} {
  func.func @_conv3_lstm_head_kernel(%arg0: i32, %arg1: memref<4x16x576xbf16, #tpu.memory_space<vmem>>, %arg2: memref<576x128xbf16, #tpu.memory_space<vmem>>, %arg3: memref<1x128xf32, #tpu.memory_space<vmem>>, %arg4: memref<128x512xbf16, #tpu.memory_space<vmem>>, %arg5: memref<128x512xbf16, #tpu.memory_space<vmem>>, %arg6: memref<1x512xf32, #tpu.memory_space<vmem>>, %arg7: memref<128x128xbf16, #tpu.memory_space<vmem>>, %arg8: memref<1x128xf32, #tpu.memory_space<vmem>>, %arg9: memref<128x10xbf16, #tpu.memory_space<vmem>>, %arg10: memref<1x10xf32, #tpu.memory_space<vmem>>, %arg11: memref<2x10xf32, #tpu.memory_space<vmem>>) attributes {dimension_semantics = [#tpu.dimension_semantics<arbitrary>], iteration_bounds = array<i64: 1>, scalar_prefetch = 0 : i64, scratch_operands = 0 : i64, tpu.core_type = #tpu.core_type<tc>, window_params = [{pipeline_mode = #tpu.pipeline_mode<synchronous>, transform_indices = @transform_0, window_bounds = array<i64: 4, 16, 576>}, {pipeline_mode = #tpu.pipeline_mode<synchronous>, transform_indices = @transform_1, window_bounds = array<i64: 576, 128>}, {pipeline_mode = #tpu.pipeline_mode<synchronous>, transform_indices = @transform_2, window_bounds = array<i64: 1, 128>}, {pipeline_mode = #tpu.pipeline_mode<synchronous>, transform_indices = @transform_3, window_bounds = array<i64: 128, 512>}, {pipeline_mode = #tpu.pipeline_mode<synchronous>, transform_indices = @transform_4, window_bounds = array<i64: 128, 512>}, {pipeline_mode = #tpu.pipeline_mode<synchronous>, transform_indices = @transform_5, window_bounds = array<i64: 1, 512>}, {pipeline_mode = #tpu.pipeline_mode<synchronous>, transform_indices = @transform_6, window_bounds = array<i64: 128, 128>}, {pipeline_mode = #tpu.pipeline_mode<synchronous>, transform_indices = @transform_7, window_bounds = array<i64: 1, 128>}, {pipeline_mode = #tpu.pipeline_mode<synchronous>, transform_indices = @transform_8, window_bounds = array<i64: 128, 10>}, {pipeline_mode = #tpu.pipeline_mode<synchronous>, transform_indices = @transform_9, window_bounds = array<i64: 1, 10>}, {pipeline_mode = #tpu.pipeline_mode<synchronous>, transform_indices = @transform_10, window_bounds = array<i64: 2, 10>}]} {
    %c0 = arith.constant 0 : index
    %c0_0 = arith.constant 0 : index
    %c0_1 = arith.constant 0 : index
    %0 = vector.load %arg1[%c0, %c0_0, %c0_1] : memref<4x16x576xbf16, #tpu.memory_space<vmem>>, vector<4x16x576xbf16>
    %1 = vector.shape_cast %0 : vector<4x16x576xbf16> to vector<64x576xbf16>
    %c0_2 = arith.constant 0 : index
    %c0_3 = arith.constant 0 : index
    %2 = vector.load %arg2[%c0_2, %c0_3] : memref<576x128xbf16, #tpu.memory_space<vmem>>, vector<576x128xbf16>
    %cst = arith.constant dense<0.000000e+00> : vector<64x128xf32>
    %3 = tpu.matmul %1, %2, %cst {dimension_numbers = #tpu.dot_dimension_numbers<[1], [0], [0], [1], [0, 0, 1, 1], [], []>} : vector<64x576xbf16>, vector<576x128xbf16>, vector<64x128xf32> -> vector<64x128xf32>
    %4 = vector.extract_strided_slice %3 {offsets = [0, 0], sizes = [16, 128], strides = [1, 1]} : vector<64x128xf32> to vector<16x128xf32>
    %5 = vector.extract_strided_slice %3 {offsets = [16, 0], sizes = [16, 128], strides = [1, 1]} : vector<64x128xf32> to vector<16x128xf32>
    %6 = arith.maximumf %4, %5 : vector<16x128xf32>
    %7 = vector.extract_strided_slice %3 {offsets = [32, 0], sizes = [16, 128], strides = [1, 1]} : vector<64x128xf32> to vector<16x128xf32>
    %8 = vector.extract_strided_slice %3 {offsets = [48, 0], sizes = [16, 128], strides = [1, 1]} : vector<64x128xf32> to vector<16x128xf32>
    %9 = arith.maximumf %7, %8 : vector<16x128xf32>
    %10 = arith.maximumf %6, %9 : vector<16x128xf32>
    %c0_4 = arith.constant 0 : index
    %c0_5 = arith.constant 0 : index
    %11 = vector.load %arg3[%c0_4, %c0_5] : memref<1x128xf32, #tpu.memory_space<vmem>>, vector<1x128xf32>
    %12 = vector.broadcast %11 : vector<1x128xf32> to vector<16x128xf32>
    %13 = arith.addf %10, %12 : vector<16x128xf32>
    %cst_6 = arith.constant 0.000000e+00 : f32
    %14 = vector.broadcast %cst_6 : f32 to vector<16x128xf32>
    %15 = arith.maximumf %13, %14 : vector<16x128xf32>
    %16 = arith.truncf %15 : vector<16x128xf32> to vector<16x128xbf16>
    %c0_7 = arith.constant 0 : index
    %c0_8 = arith.constant 0 : index
    %17 = vector.load %arg4[%c0_7, %c0_8] : memref<128x512xbf16, #tpu.memory_space<vmem>>, vector<128x512xbf16>
    %cst_9 = arith.constant dense<0.000000e+00> : vector<16x512xf32>
    %18 = tpu.matmul %16, %17, %cst_9 {dimension_numbers = #tpu.dot_dimension_numbers<[1], [0], [0], [1], [0, 0, 1, 1], [], []>} : vector<16x128xbf16>, vector<128x512xbf16>, vector<16x512xf32> -> vector<16x512xf32>
    %c0_10 = arith.constant 0 : index
    %c0_11 = arith.constant 0 : index
    %19 = vector.load %arg6[%c0_10, %c0_11] : memref<1x512xf32, #tpu.memory_space<vmem>>, vector<1x512xf32>
    %20 = vector.broadcast %19 : vector<1x512xf32> to vector<16x512xf32>
    %21 = arith.addf %18, %20 : vector<16x512xf32>
    %22 = vector.shape_cast %21 : vector<16x512xf32> to vector<2x8x512xf32>
    %c0_12 = arith.constant 0 : index
    %c0_13 = arith.constant 0 : index
    %23 = vector.load %arg5[%c0_12, %c0_13] : memref<128x512xbf16, #tpu.memory_space<vmem>>, vector<128x512xbf16>
    %cst_14 = arith.constant 0.000000e+00 : f32
    %24 = vector.broadcast %cst_14 : f32 to vector<2x128xf32>
    %cst_15 = arith.constant 0.000000e+00 : f32
    %25 = vector.broadcast %cst_15 : f32 to vector<2x128xf32>
    %26 = vector.extract_strided_slice %22 {offsets = [0, 0, 0], sizes = [2, 1, 512], strides = [1, 1, 1]} : vector<2x8x512xf32> to vector<2x1x512xf32>
    %27 = vector.shape_cast %26 : vector<2x1x512xf32> to vector<2x512xf32>
    %28 = arith.truncf %24 : vector<2x128xf32> to vector<2x128xbf16>
    %cst_16 = arith.constant dense<0.000000e+00> : vector<2x512xf32>
    %29 = tpu.matmul %28, %23, %cst_16 {dimension_numbers = #tpu.dot_dimension_numbers<[1], [0], [0], [1], [0, 0, 1, 1], [], []>} : vector<2x128xbf16>, vector<128x512xbf16>, vector<2x512xf32> -> vector<2x512xf32>
    %30 = arith.addf %27, %29 : vector<2x512xf32>
    %31 = vector.extract_strided_slice %30 {offsets = [0, 0], sizes = [2, 128], strides = [1, 1]} : vector<2x512xf32> to vector<2x128xf32>
    %32 = arith.negf %31 : vector<2x128xf32>
    %33 = math.exp %32 : vector<2x128xf32>
    %cst_17 = arith.constant 1.000000e+00 : f32
    %34 = vector.broadcast %cst_17 : f32 to vector<2x128xf32>
    %35 = arith.addf %34, %33 : vector<2x128xf32>
    %36 = arith.divf %34, %35 : vector<2x128xf32>
    %37 = vector.extract_strided_slice %30 {offsets = [0, 128], sizes = [2, 128], strides = [1, 1]} : vector<2x512xf32> to vector<2x128xf32>
    %38 = arith.negf %37 : vector<2x128xf32>
    %39 = math.exp %38 : vector<2x128xf32>
    %cst_18 = arith.constant 1.000000e+00 : f32
    %40 = vector.broadcast %cst_18 : f32 to vector<2x128xf32>
    %41 = arith.addf %40, %39 : vector<2x128xf32>
    %42 = arith.divf %40, %41 : vector<2x128xf32>
    %43 = vector.extract_strided_slice %30 {offsets = [0, 256], sizes = [2, 128], strides = [1, 1]} : vector<2x512xf32> to vector<2x128xf32>
    %44 = math.tanh %43 : vector<2x128xf32>
    %45 = vector.extract_strided_slice %30 {offsets = [0, 384], sizes = [2, 128], strides = [1, 1]} : vector<2x512xf32> to vector<2x128xf32>
    %46 = arith.negf %45 : vector<2x128xf32>
    %47 = math.exp %46 : vector<2x128xf32>
    %cst_19 = arith.constant 1.000000e+00 : f32
    %48 = vector.broadcast %cst_19 : f32 to vector<2x128xf32>
    %49 = arith.addf %48, %47 : vector<2x128xf32>
    %50 = arith.divf %48, %49 : vector<2x128xf32>
    %51 = arith.mulf %42, %25 : vector<2x128xf32>
    %52 = arith.mulf %36, %44 : vector<2x128xf32>
    %53 = arith.addf %51, %52 : vector<2x128xf32>
    %54 = math.tanh %53 : vector<2x128xf32>
    %55 = arith.mulf %50, %54 : vector<2x128xf32>
    %56 = vector.extract_strided_slice %22 {offsets = [0, 1, 0], sizes = [2, 1, 512], strides = [1, 1, 1]} : vector<2x8x512xf32> to vector<2x1x512xf32>
    %57 = vector.shape_cast %56 : vector<2x1x512xf32> to vector<2x512xf32>
    %58 = arith.truncf %55 : vector<2x128xf32> to vector<2x128xbf16>
    %cst_20 = arith.constant dense<0.000000e+00> : vector<2x512xf32>
    %59 = tpu.matmul %58, %23, %cst_20 {dimension_numbers = #tpu.dot_dimension_numbers<[1], [0], [0], [1], [0, 0, 1, 1], [], []>} : vector<2x128xbf16>, vector<128x512xbf16>, vector<2x512xf32> -> vector<2x512xf32>
    %60 = arith.addf %57, %59 : vector<2x512xf32>
    %61 = vector.extract_strided_slice %60 {offsets = [0, 0], sizes = [2, 128], strides = [1, 1]} : vector<2x512xf32> to vector<2x128xf32>
    %62 = arith.negf %61 : vector<2x128xf32>
    %63 = math.exp %62 : vector<2x128xf32>
    %cst_21 = arith.constant 1.000000e+00 : f32
    %64 = vector.broadcast %cst_21 : f32 to vector<2x128xf32>
    %65 = arith.addf %64, %63 : vector<2x128xf32>
    %66 = arith.divf %64, %65 : vector<2x128xf32>
    %67 = vector.extract_strided_slice %60 {offsets = [0, 128], sizes = [2, 128], strides = [1, 1]} : vector<2x512xf32> to vector<2x128xf32>
    %68 = arith.negf %67 : vector<2x128xf32>
    %69 = math.exp %68 : vector<2x128xf32>
    %cst_22 = arith.constant 1.000000e+00 : f32
    %70 = vector.broadcast %cst_22 : f32 to vector<2x128xf32>
    %71 = arith.addf %70, %69 : vector<2x128xf32>
    %72 = arith.divf %70, %71 : vector<2x128xf32>
    %73 = vector.extract_strided_slice %60 {offsets = [0, 256], sizes = [2, 128], strides = [1, 1]} : vector<2x512xf32> to vector<2x128xf32>
    %74 = math.tanh %73 : vector<2x128xf32>
    %75 = vector.extract_strided_slice %60 {offsets = [0, 384], sizes = [2, 128], strides = [1, 1]} : vector<2x512xf32> to vector<2x128xf32>
    %76 = arith.negf %75 : vector<2x128xf32>
    %77 = math.exp %76 : vector<2x128xf32>
    %cst_23 = arith.constant 1.000000e+00 : f32
    %78 = vector.broadcast %cst_23 : f32 to vector<2x128xf32>
    %79 = arith.addf %78, %77 : vector<2x128xf32>
    %80 = arith.divf %78, %79 : vector<2x128xf32>
    %81 = arith.mulf %72, %53 : vector<2x128xf32>
    %82 = arith.mulf %66, %74 : vector<2x128xf32>
    %83 = arith.addf %81, %82 : vector<2x128xf32>
    %84 = math.tanh %83 : vector<2x128xf32>
    %85 = arith.mulf %80, %84 : vector<2x128xf32>
    %86 = vector.extract_strided_slice %22 {offsets = [0, 2, 0], sizes = [2, 1, 512], strides = [1, 1, 1]} : vector<2x8x512xf32> to vector<2x1x512xf32>
    %87 = vector.shape_cast %86 : vector<2x1x512xf32> to vector<2x512xf32>
    %88 = arith.truncf %85 : vector<2x128xf32> to vector<2x128xbf16>
    %cst_24 = arith.constant dense<0.000000e+00> : vector<2x512xf32>
    %89 = tpu.matmul %88, %23, %cst_24 {dimension_numbers = #tpu.dot_dimension_numbers<[1], [0], [0], [1], [0, 0, 1, 1], [], []>} : vector<2x128xbf16>, vector<128x512xbf16>, vector<2x512xf32> -> vector<2x512xf32>
    %90 = arith.addf %87, %89 : vector<2x512xf32>
    %91 = vector.extract_strided_slice %90 {offsets = [0, 0], sizes = [2, 128], strides = [1, 1]} : vector<2x512xf32> to vector<2x128xf32>
    %92 = arith.negf %91 : vector<2x128xf32>
    %93 = math.exp %92 : vector<2x128xf32>
    %cst_25 = arith.constant 1.000000e+00 : f32
    %94 = vector.broadcast %cst_25 : f32 to vector<2x128xf32>
    %95 = arith.addf %94, %93 : vector<2x128xf32>
    %96 = arith.divf %94, %95 : vector<2x128xf32>
    %97 = vector.extract_strided_slice %90 {offsets = [0, 128], sizes = [2, 128], strides = [1, 1]} : vector<2x512xf32> to vector<2x128xf32>
    %98 = arith.negf %97 : vector<2x128xf32>
    %99 = math.exp %98 : vector<2x128xf32>
    %cst_26 = arith.constant 1.000000e+00 : f32
    %100 = vector.broadcast %cst_26 : f32 to vector<2x128xf32>
    %101 = arith.addf %100, %99 : vector<2x128xf32>
    %102 = arith.divf %100, %101 : vector<2x128xf32>
    %103 = vector.extract_strided_slice %90 {offsets = [0, 256], sizes = [2, 128], strides = [1, 1]} : vector<2x512xf32> to vector<2x128xf32>
    %104 = math.tanh %103 : vector<2x128xf32>
    %105 = vector.extract_strided_slice %90 {offsets = [0, 384], sizes = [2, 128], strides = [1, 1]} : vector<2x512xf32> to vector<2x128xf32>
    %106 = arith.negf %105 : vector<2x128xf32>
    %107 = math.exp %106 : vector<2x128xf32>
    %cst_27 = arith.constant 1.000000e+00 : f32
    %108 = vector.broadcast %cst_27 : f32 to vector<2x128xf32>
    %109 = arith.addf %108, %107 : vector<2x128xf32>
    %110 = arith.divf %108, %109 : vector<2x128xf32>
    %111 = arith.mulf %102, %83 : vector<2x128xf32>
    %112 = arith.mulf %96, %104 : vector<2x128xf32>
    %113 = arith.addf %111, %112 : vector<2x128xf32>
    %114 = math.tanh %113 : vector<2x128xf32>
    %115 = arith.mulf %110, %114 : vector<2x128xf32>
    %116 = vector.extract_strided_slice %22 {offsets = [0, 3, 0], sizes = [2, 1, 512], strides = [1, 1, 1]} : vector<2x8x512xf32> to vector<2x1x512xf32>
    %117 = vector.shape_cast %116 : vector<2x1x512xf32> to vector<2x512xf32>
    %118 = arith.truncf %115 : vector<2x128xf32> to vector<2x128xbf16>
    %cst_28 = arith.constant dense<0.000000e+00> : vector<2x512xf32>
    %119 = tpu.matmul %118, %23, %cst_28 {dimension_numbers = #tpu.dot_dimension_numbers<[1], [0], [0], [1], [0, 0, 1, 1], [], []>} : vector<2x128xbf16>, vector<128x512xbf16>, vector<2x512xf32> -> vector<2x512xf32>
    %120 = arith.addf %117, %119 : vector<2x512xf32>
    %121 = vector.extract_strided_slice %120 {offsets = [0, 0], sizes = [2, 128], strides = [1, 1]} : vector<2x512xf32> to vector<2x128xf32>
    %122 = arith.negf %121 : vector<2x128xf32>
    %123 = math.exp %122 : vector<2x128xf32>
    %cst_29 = arith.constant 1.000000e+00 : f32
    %124 = vector.broadcast %cst_29 : f32 to vector<2x128xf32>
    %125 = arith.addf %124, %123 : vector<2x128xf32>
    %126 = arith.divf %124, %125 : vector<2x128xf32>
    %127 = vector.extract_strided_slice %120 {offsets = [0, 128], sizes = [2, 128], strides = [1, 1]} : vector<2x512xf32> to vector<2x128xf32>
    %128 = arith.negf %127 : vector<2x128xf32>
    %129 = math.exp %128 : vector<2x128xf32>
    %cst_30 = arith.constant 1.000000e+00 : f32
    %130 = vector.broadcast %cst_30 : f32 to vector<2x128xf32>
    %131 = arith.addf %130, %129 : vector<2x128xf32>
    %132 = arith.divf %130, %131 : vector<2x128xf32>
    %133 = vector.extract_strided_slice %120 {offsets = [0, 256], sizes = [2, 128], strides = [1, 1]} : vector<2x512xf32> to vector<2x128xf32>
    %134 = math.tanh %133 : vector<2x128xf32>
    %135 = vector.extract_strided_slice %120 {offsets = [0, 384], sizes = [2, 128], strides = [1, 1]} : vector<2x512xf32> to vector<2x128xf32>
    %136 = arith.negf %135 : vector<2x128xf32>
    %137 = math.exp %136 : vector<2x128xf32>
    %cst_31 = arith.constant 1.000000e+00 : f32
    %138 = vector.broadcast %cst_31 : f32 to vector<2x128xf32>
    %139 = arith.addf %138, %137 : vector<2x128xf32>
    %140 = arith.divf %138, %139 : vector<2x128xf32>
    %141 = arith.mulf %132, %113 : vector<2x128xf32>
    %142 = arith.mulf %126, %134 : vector<2x128xf32>
    %143 = arith.addf %141, %142 : vector<2x128xf32>
    %144 = math.tanh %143 : vector<2x128xf32>
    %145 = arith.mulf %140, %144 : vector<2x128xf32>
    %146 = vector.extract_strided_slice %22 {offsets = [0, 4, 0], sizes = [2, 1, 512], strides = [1, 1, 1]} : vector<2x8x512xf32> to vector<2x1x512xf32>
    %147 = vector.shape_cast %146 : vector<2x1x512xf32> to vector<2x512xf32>
    %148 = arith.truncf %145 : vector<2x128xf32> to vector<2x128xbf16>
    %cst_32 = arith.constant dense<0.000000e+00> : vector<2x512xf32>
    %149 = tpu.matmul %148, %23, %cst_32 {dimension_numbers = #tpu.dot_dimension_numbers<[1], [0], [0], [1], [0, 0, 1, 1], [], []>} : vector<2x128xbf16>, vector<128x512xbf16>, vector<2x512xf32> -> vector<2x512xf32>
    %150 = arith.addf %147, %149 : vector<2x512xf32>
    %151 = vector.extract_strided_slice %150 {offsets = [0, 0], sizes = [2, 128], strides = [1, 1]} : vector<2x512xf32> to vector<2x128xf32>
    %152 = arith.negf %151 : vector<2x128xf32>
    %153 = math.exp %152 : vector<2x128xf32>
    %cst_33 = arith.constant 1.000000e+00 : f32
    %154 = vector.broadcast %cst_33 : f32 to vector<2x128xf32>
    %155 = arith.addf %154, %153 : vector<2x128xf32>
    %156 = arith.divf %154, %155 : vector<2x128xf32>
    %157 = vector.extract_strided_slice %150 {offsets = [0, 128], sizes = [2, 128], strides = [1, 1]} : vector<2x512xf32> to vector<2x128xf32>
    %158 = arith.negf %157 : vector<2x128xf32>
    %159 = math.exp %158 : vector<2x128xf32>
    %cst_34 = arith.constant 1.000000e+00 : f32
    %160 = vector.broadcast %cst_34 : f32 to vector<2x128xf32>
    %161 = arith.addf %160, %159 : vector<2x128xf32>
    %162 = arith.divf %160, %161 : vector<2x128xf32>
    %163 = vector.extract_strided_slice %150 {offsets = [0, 256], sizes = [2, 128], strides = [1, 1]} : vector<2x512xf32> to vector<2x128xf32>
    %164 = math.tanh %163 : vector<2x128xf32>
    %165 = vector.extract_strided_slice %150 {offsets = [0, 384], sizes = [2, 128], strides = [1, 1]} : vector<2x512xf32> to vector<2x128xf32>
    %166 = arith.negf %165 : vector<2x128xf32>
    %167 = math.exp %166 : vector<2x128xf32>
    %cst_35 = arith.constant 1.000000e+00 : f32
    %168 = vector.broadcast %cst_35 : f32 to vector<2x128xf32>
    %169 = arith.addf %168, %167 : vector<2x128xf32>
    %170 = arith.divf %168, %169 : vector<2x128xf32>
    %171 = arith.mulf %162, %143 : vector<2x128xf32>
    %172 = arith.mulf %156, %164 : vector<2x128xf32>
    %173 = arith.addf %171, %172 : vector<2x128xf32>
    %174 = math.tanh %173 : vector<2x128xf32>
    %175 = arith.mulf %170, %174 : vector<2x128xf32>
    %176 = vector.extract_strided_slice %22 {offsets = [0, 5, 0], sizes = [2, 1, 512], strides = [1, 1, 1]} : vector<2x8x512xf32> to vector<2x1x512xf32>
    %177 = vector.shape_cast %176 : vector<2x1x512xf32> to vector<2x512xf32>
    %178 = arith.truncf %175 : vector<2x128xf32> to vector<2x128xbf16>
    %cst_36 = arith.constant dense<0.000000e+00> : vector<2x512xf32>
    %179 = tpu.matmul %178, %23, %cst_36 {dimension_numbers = #tpu.dot_dimension_numbers<[1], [0], [0], [1], [0, 0, 1, 1], [], []>} : vector<2x128xbf16>, vector<128x512xbf16>, vector<2x512xf32> -> vector<2x512xf32>
    %180 = arith.addf %177, %179 : vector<2x512xf32>
    %181 = vector.extract_strided_slice %180 {offsets = [0, 0], sizes = [2, 128], strides = [1, 1]} : vector<2x512xf32> to vector<2x128xf32>
    %182 = arith.negf %181 : vector<2x128xf32>
    %183 = math.exp %182 : vector<2x128xf32>
    %cst_37 = arith.constant 1.000000e+00 : f32
    %184 = vector.broadcast %cst_37 : f32 to vector<2x128xf32>
    %185 = arith.addf %184, %183 : vector<2x128xf32>
    %186 = arith.divf %184, %185 : vector<2x128xf32>
    %187 = vector.extract_strided_slice %180 {offsets = [0, 128], sizes = [2, 128], strides = [1, 1]} : vector<2x512xf32> to vector<2x128xf32>
    %188 = arith.negf %187 : vector<2x128xf32>
    %189 = math.exp %188 : vector<2x128xf32>
    %cst_38 = arith.constant 1.000000e+00 : f32
    %190 = vector.broadcast %cst_38 : f32 to vector<2x128xf32>
    %191 = arith.addf %190, %189 : vector<2x128xf32>
    %192 = arith.divf %190, %191 : vector<2x128xf32>
    %193 = vector.extract_strided_slice %180 {offsets = [0, 256], sizes = [2, 128], strides = [1, 1]} : vector<2x512xf32> to vector<2x128xf32>
    %194 = math.tanh %193 : vector<2x128xf32>
    %195 = vector.extract_strided_slice %180 {offsets = [0, 384], sizes = [2, 128], strides = [1, 1]} : vector<2x512xf32> to vector<2x128xf32>
    %196 = arith.negf %195 : vector<2x128xf32>
    %197 = math.exp %196 : vector<2x128xf32>
    %cst_39 = arith.constant 1.000000e+00 : f32
    %198 = vector.broadcast %cst_39 : f32 to vector<2x128xf32>
    %199 = arith.addf %198, %197 : vector<2x128xf32>
    %200 = arith.divf %198, %199 : vector<2x128xf32>
    %201 = arith.mulf %192, %173 : vector<2x128xf32>
    %202 = arith.mulf %186, %194 : vector<2x128xf32>
    %203 = arith.addf %201, %202 : vector<2x128xf32>
    %204 = math.tanh %203 : vector<2x128xf32>
    %205 = arith.mulf %200, %204 : vector<2x128xf32>
    %206 = vector.extract_strided_slice %22 {offsets = [0, 6, 0], sizes = [2, 1, 512], strides = [1, 1, 1]} : vector<2x8x512xf32> to vector<2x1x512xf32>
    %207 = vector.shape_cast %206 : vector<2x1x512xf32> to vector<2x512xf32>
    %208 = arith.truncf %205 : vector<2x128xf32> to vector<2x128xbf16>
    %cst_40 = arith.constant dense<0.000000e+00> : vector<2x512xf32>
    %209 = tpu.matmul %208, %23, %cst_40 {dimension_numbers = #tpu.dot_dimension_numbers<[1], [0], [0], [1], [0, 0, 1, 1], [], []>} : vector<2x128xbf16>, vector<128x512xbf16>, vector<2x512xf32> -> vector<2x512xf32>
    %210 = arith.addf %207, %209 : vector<2x512xf32>
    %211 = vector.extract_strided_slice %210 {offsets = [0, 0], sizes = [2, 128], strides = [1, 1]} : vector<2x512xf32> to vector<2x128xf32>
    %212 = arith.negf %211 : vector<2x128xf32>
    %213 = math.exp %212 : vector<2x128xf32>
    %cst_41 = arith.constant 1.000000e+00 : f32
    %214 = vector.broadcast %cst_41 : f32 to vector<2x128xf32>
    %215 = arith.addf %214, %213 : vector<2x128xf32>
    %216 = arith.divf %214, %215 : vector<2x128xf32>
    %217 = vector.extract_strided_slice %210 {offsets = [0, 128], sizes = [2, 128], strides = [1, 1]} : vector<2x512xf32> to vector<2x128xf32>
    %218 = arith.negf %217 : vector<2x128xf32>
    %219 = math.exp %218 : vector<2x128xf32>
    %cst_42 = arith.constant 1.000000e+00 : f32
    %220 = vector.broadcast %cst_42 : f32 to vector<2x128xf32>
    %221 = arith.addf %220, %219 : vector<2x128xf32>
    %222 = arith.divf %220, %221 : vector<2x128xf32>
    %223 = vector.extract_strided_slice %210 {offsets = [0, 256], sizes = [2, 128], strides = [1, 1]} : vector<2x512xf32> to vector<2x128xf32>
    %224 = math.tanh %223 : vector<2x128xf32>
    %225 = vector.extract_strided_slice %210 {offsets = [0, 384], sizes = [2, 128], strides = [1, 1]} : vector<2x512xf32> to vector<2x128xf32>
    %226 = arith.negf %225 : vector<2x128xf32>
    %227 = math.exp %226 : vector<2x128xf32>
    %cst_43 = arith.constant 1.000000e+00 : f32
    %228 = vector.broadcast %cst_43 : f32 to vector<2x128xf32>
    %229 = arith.addf %228, %227 : vector<2x128xf32>
    %230 = arith.divf %228, %229 : vector<2x128xf32>
    %231 = arith.mulf %222, %203 : vector<2x128xf32>
    %232 = arith.mulf %216, %224 : vector<2x128xf32>
    %233 = arith.addf %231, %232 : vector<2x128xf32>
    %234 = math.tanh %233 : vector<2x128xf32>
    %235 = arith.mulf %230, %234 : vector<2x128xf32>
    %236 = vector.extract_strided_slice %22 {offsets = [0, 7, 0], sizes = [2, 1, 512], strides = [1, 1, 1]} : vector<2x8x512xf32> to vector<2x1x512xf32>
    %237 = vector.shape_cast %236 : vector<2x1x512xf32> to vector<2x512xf32>
    %238 = arith.truncf %235 : vector<2x128xf32> to vector<2x128xbf16>
    %cst_44 = arith.constant dense<0.000000e+00> : vector<2x512xf32>
    %239 = tpu.matmul %238, %23, %cst_44 {dimension_numbers = #tpu.dot_dimension_numbers<[1], [0], [0], [1], [0, 0, 1, 1], [], []>} : vector<2x128xbf16>, vector<128x512xbf16>, vector<2x512xf32> -> vector<2x512xf32>
    %240 = arith.addf %237, %239 : vector<2x512xf32>
    %241 = vector.extract_strided_slice %240 {offsets = [0, 0], sizes = [2, 128], strides = [1, 1]} : vector<2x512xf32> to vector<2x128xf32>
    %242 = arith.negf %241 : vector<2x128xf32>
    %243 = math.exp %242 : vector<2x128xf32>
    %cst_45 = arith.constant 1.000000e+00 : f32
    %244 = vector.broadcast %cst_45 : f32 to vector<2x128xf32>
    %245 = arith.addf %244, %243 : vector<2x128xf32>
    %246 = arith.divf %244, %245 : vector<2x128xf32>
    %247 = vector.extract_strided_slice %240 {offsets = [0, 128], sizes = [2, 128], strides = [1, 1]} : vector<2x512xf32> to vector<2x128xf32>
    %248 = arith.negf %247 : vector<2x128xf32>
    %249 = math.exp %248 : vector<2x128xf32>
    %cst_46 = arith.constant 1.000000e+00 : f32
    %250 = vector.broadcast %cst_46 : f32 to vector<2x128xf32>
    %251 = arith.addf %250, %249 : vector<2x128xf32>
    %252 = arith.divf %250, %251 : vector<2x128xf32>
    %253 = vector.extract_strided_slice %240 {offsets = [0, 256], sizes = [2, 128], strides = [1, 1]} : vector<2x512xf32> to vector<2x128xf32>
    %254 = math.tanh %253 : vector<2x128xf32>
    %255 = vector.extract_strided_slice %240 {offsets = [0, 384], sizes = [2, 128], strides = [1, 1]} : vector<2x512xf32> to vector<2x128xf32>
    %256 = arith.negf %255 : vector<2x128xf32>
    %257 = math.exp %256 : vector<2x128xf32>
    %cst_47 = arith.constant 1.000000e+00 : f32
    %258 = vector.broadcast %cst_47 : f32 to vector<2x128xf32>
    %259 = arith.addf %258, %257 : vector<2x128xf32>
    %260 = arith.divf %258, %259 : vector<2x128xf32>
    %261 = arith.mulf %252, %233 : vector<2x128xf32>
    %262 = arith.mulf %246, %254 : vector<2x128xf32>
    %263 = arith.addf %261, %262 : vector<2x128xf32>
    %264 = math.tanh %263 : vector<2x128xf32>
    %265 = arith.mulf %260, %264 : vector<2x128xf32>
    %266 = arith.truncf %265 : vector<2x128xf32> to vector<2x128xbf16>
    %c0_48 = arith.constant 0 : index
    %c0_49 = arith.constant 0 : index
    %267 = vector.load %arg7[%c0_48, %c0_49] : memref<128x128xbf16, #tpu.memory_space<vmem>>, vector<128x128xbf16>
    %cst_50 = arith.constant dense<0.000000e+00> : vector<2x128xf32>
    %268 = tpu.matmul %266, %267, %cst_50 {dimension_numbers = #tpu.dot_dimension_numbers<[1], [0], [0], [1], [0, 0, 1, 1], [], []>} : vector<2x128xbf16>, vector<128x128xbf16>, vector<2x128xf32> -> vector<2x128xf32>
    %c0_51 = arith.constant 0 : index
    %c0_52 = arith.constant 0 : index
    %269 = vector.load %arg8[%c0_51, %c0_52] : memref<1x128xf32, #tpu.memory_space<vmem>>, vector<1x128xf32>
    %270 = vector.broadcast %269 : vector<1x128xf32> to vector<2x128xf32>
    %271 = arith.addf %268, %270 : vector<2x128xf32>
    %cst_53 = arith.constant 0.000000e+00 : f32
    %272 = vector.broadcast %cst_53 : f32 to vector<2x128xf32>
    %273 = arith.maximumf %271, %272 : vector<2x128xf32>
    %274 = arith.truncf %273 : vector<2x128xf32> to vector<2x128xbf16>
    %c0_54 = arith.constant 0 : index
    %c0_55 = arith.constant 0 : index
    %275 = vector.load %arg9[%c0_54, %c0_55] : memref<128x10xbf16, #tpu.memory_space<vmem>>, vector<128x10xbf16>
    %cst_56 = arith.constant dense<0.000000e+00> : vector<2x10xf32>
    %276 = tpu.matmul %274, %275, %cst_56 {dimension_numbers = #tpu.dot_dimension_numbers<[1], [0], [0], [1], [0, 0, 1, 1], [], []>} : vector<2x128xbf16>, vector<128x10xbf16>, vector<2x10xf32> -> vector<2x10xf32>
    %c0_57 = arith.constant 0 : index
    %c0_58 = arith.constant 0 : index
    %277 = vector.load %arg10[%c0_57, %c0_58] : memref<1x10xf32, #tpu.memory_space<vmem>>, vector<1x10xf32>
    %278 = vector.broadcast %277 : vector<1x10xf32> to vector<2x10xf32>
    %279 = arith.addf %276, %278 : vector<2x10xf32>
    %c0_59 = arith.constant 0 : index
    %c0_60 = arith.constant 0 : index
    %280 = vector.load %arg11[%c0_59, %c0_60] : memref<2x10xf32, #tpu.memory_space<vmem>>, vector<2x10xf32>
    tpu.vector_store %arg11[%c0_59, %c0_60], %279 {strides = array<i32>} : memref<2x10xf32, #tpu.memory_space<vmem>>, vector<2x10xf32>,
    return
  }
  func.func @transform_0(%arg0: i32) -> (i32, i32, i32) {
    %c0_i32 = arith.constant 0 : i32
    %c0_i32_0 = arith.constant 0 : i32
    %c0_i32_1 = arith.constant 0 : i32
    %c0_i32_2 = arith.constant 0 : i32
    return %c0_i32, %c0_i32_0, %c0_i32_1 : i32, i32, i32
  }
  func.func @transform_1(%arg0: i32) -> (i32, i32) {
    %c0_i32 = arith.constant 0 : i32
    %c0_i32_0 = arith.constant 0 : i32
    %c0_i32_1 = arith.constant 0 : i32
    return %c0_i32, %c0_i32_0 : i32, i32
  }
  func.func @transform_2(%arg0: i32) -> (i32, i32) {
    %c0_i32 = arith.constant 0 : i32
    %c0_i32_0 = arith.constant 0 : i32
    %c0_i32_1 = arith.constant 0 : i32
    return %c0_i32, %c0_i32_0 : i32, i32
  }
  func.func @transform_3(%arg0: i32) -> (i32, i32) {
    %c0_i32 = arith.constant 0 : i32
    %c0_i32_0 = arith.constant 0 : i32
    %c0_i32_1 = arith.constant 0 : i32
    return %c0_i32, %c0_i32_0 : i32, i32
  }
  func.func @transform_4(%arg0: i32) -> (i32, i32) {
    %c0_i32 = arith.constant 0 : i32
    %c0_i32_0 = arith.constant 0 : i32
    %c0_i32_1 = arith.constant 0 : i32
    return %c0_i32, %c0_i32_0 : i32, i32
  }
  func.func @transform_5(%arg0: i32) -> (i32, i32) {
    %c0_i32 = arith.constant 0 : i32
    %c0_i32_0 = arith.constant 0 : i32
    %c0_i32_1 = arith.constant 0 : i32
    return %c0_i32, %c0_i32_0 : i32, i32
  }
  func.func @transform_6(%arg0: i32) -> (i32, i32) {
    %c0_i32 = arith.constant 0 : i32
    %c0_i32_0 = arith.constant 0 : i32
    %c0_i32_1 = arith.constant 0 : i32
    return %c0_i32, %c0_i32_0 : i32, i32
  }
  func.func @transform_7(%arg0: i32) -> (i32, i32) {
    %c0_i32 = arith.constant 0 : i32
    %c0_i32_0 = arith.constant 0 : i32
    %c0_i32_1 = arith.constant 0 : i32
    return %c0_i32, %c0_i32_0 : i32, i32
  }
  func.func @transform_8(%arg0: i32) -> (i32, i32) {
    %c0_i32 = arith.constant 0 : i32
    %c0_i32_0 = arith.constant 0 : i32
    %c0_i32_1 = arith.constant 0 : i32
    return %c0_i32, %c0_i32_0 : i32, i32
  }
  func.func @transform_9(%arg0: i32) -> (i32, i32) {
    %c0_i32 = arith.constant 0 : i32
    %c0_i32_0 = arith.constant 0 : i32
    %c0_i32_1 = arith.constant 0 : i32
    return %c0_i32, %c0_i32_0 : i32, i32
  }
  func.func @transform_10(%arg0: i32) -> (i32, i32) {
    %c0_i32 = arith.constant 0 : i32
    %c0_i32_0 = arith.constant 0 : i32
    %c0_i32_1 = arith.constant 0 : i32
    return %c0_i32, %c0_i32_0 : i32, i32
  }
}

</mosaic_0001>

<bundles_post_ra>
// kernel: chess_opening_classifier_forward.3
= control target key start
LH: loop header
LB: loop body
LE: loop exit
PB: predicated region body
PF: predicated region fallthrough
CT: control target
= control target key end

     0   :  { %vm663_vm0 = vcmask 1043456   ;;  %vm664_vm1 = vcmask 1044480   ;;  %v1626_v2 = vmov 65535   ;;  %vm470_vm2 = vcmask 72704   ;;  %s2074_s1 = inlined_call_operand.vmem [shape: bf16[9,32], index: 1, kind: input, shape index: {}]   ;;  %s2075_s0 = inlined_call_operand.vmem [shape: bf16[4,256,9], index: 0, kind: input, shape index: {}]   ;;  %s2076_s2 = inlined_call_operand.vmem [shape: f32[1,32], index: 2, kind: input, shape index: {}]   ;;  %s2077_s3 = inlined_call_operand.vmem [shape: bf16[256,32], index: 3, kind: output, shape index: {}]  }
   0x1   :  { %v1490_v0 = vld [vmem:[%s2074_s1] sm:$0xf]  ;;  %v1620_v1 = vld [vmem:[%s2074_s1] sm:$0x10]  ;;  %v665_v3 = vsel %vm663_vm0, 4294967295, %v1626_v2  ;;  %v1557_v11 = vld [vmem:[%s2075_s0 + $0x8] sm:$0xff] }
   0x2   :  { %v1491_v4 = vor.u32 %v1620_v1, %v1490_v0  ;;  %v666_v5 = vsel %vm664_vm1, %v665_v3, 0  ;;  %v1556_v7 = vld [vmem:[%s2075_s0] sm:$0xff]  ;;  %v1573_v12 = vld [vmem:[%s2075_s0 + $0x88] sm:$0xff]  ;;  %v1558_v15 = vld [vmem:[%s2075_s0 + $0x10] sm:$0xff]  ;;  %vm1195_vm3 = vcmask 257024  }
   0x3   :  { %v1572_v8 = vld [vmem:[%s2075_s0 + $0x80] sm:$0xff]  ;;  %v1589_v13 = vld [vmem:[%s2075_s0 + $0x108] sm:$0xff]  ;;  %v1574_v16 = vld [vmem:[%s2075_s0 + $0x90] sm:$0xff] }
   0x4   :  { %v668_v6 = vand.u32 %v1491_v4, %v666_v5  ;;  %v1588_v9 = vld [vmem:[%s2075_s0 + $0x100] sm:$0xff]  ;;  %v1605_v14 = vld [vmem:[%s2075_s0 + $0x188] sm:$0xff]  ;;  %v1590_v17 = vld [vmem:[%s2075_s0 + $0x110] sm:$0xff] }
   0x5   :  { %v1604_v10 = vld [vmem:[%s2075_s0 + $0x180] sm:$0xff]  ;;  %v1606_v18 = vld [vmem:[%s2075_s0 + $0x190] sm:$0xff]  ;;  %v1559_v19 = vld [vmem:[%s2075_s0 + $0x18] sm:$0xff] }
   0x6   :  { %677 = vmatpush.bf16.msra.mxu0 %v668_v6  ;;  %1621 = vmatpush.bf16.msra.mxu1 %v668_v6  ;;  %v1575_v20 = vld [vmem:[%s2075_s0 + $0x98] sm:$0xff]  ;;  %v1560_v23 = vld [vmem:[%s2075_s0 + $0x20] sm:$0xff]  ;;  %v1561_v27 = vld [vmem:[%s2075_s0 + $0x28] sm:$0xff] }
   0x7   :  { %1622 = vmatpush.bf16.msra.mxu2 %v668_v6  ;;  %1623 = vmatpush.bf16.msra.mxu3 %v668_v6  ;;  %v1591_v21 = vld [vmem:[%s2075_s0 + $0x118] sm:$0xff]  ;;  %v1576_v24 = vld [vmem:[%s2075_s0 + $0xa0] sm:$0xff]  ;;  %v1577_v28 = vld [vmem:[%s2075_s0 + $0xa8] sm:$0xff] }
   0x8   :  { %v1607_v22 = vld [vmem:[%s2075_s0 + $0x198] sm:$0xff]  ;;  %v1592_v25 = vld [vmem:[%s2075_s0 + $0x120] sm:$0xff]  ;;  %v1593_v29 = vld [vmem:[%s2075_s0 + $0x128] sm:$0xff] }
   0x9   :  { %1492 = vmatmul.msk.bf16.vlgmr.msra.gmra.mxu0 %vm470_vm2, %v1556_v7  ;;  %1508 = vmatmul.msk.bf16.vlgmr.msra.gmra.mxu1 %vm470_vm2, %v1572_v8  ;;  %v1608_v26 = vld [vmem:[%s2075_s0 + $0x1a0] sm:$0xff]  ;;  %v1609_v30 = vld [vmem:[%s2075_s0 + $0x1a8] sm:$0xff]  ;;  %v1562_v31 = vld [vmem:[%s2075_s0 + $0x30] sm:$0xff] }
   0xa   :  { %1524 = vmatmul.msk.bf16.vlgmr.msra.gmra.mxu2 %vm470_vm2, %v1588_v9  ;;  %1540 = vmatmul.msk.bf16.vlgmr.msra.gmra.mxu3 %vm470_vm2, %v1604_v10  ;;  %v1578_v32 = vld [vmem:[%s2075_s0 + $0xb0] sm:$0xff]  ;;  %v1563_v35 = vld [vmem:[%s2075_s0 + $0x38] sm:$0xff]  ;;  %v1564_v39 = vld [vmem:[%s2075_s0 + $0x40] sm:$0xff] }
   0xb   :  { %v1594_v33 = vld [vmem:[%s2075_s0 + $0x130] sm:$0xff]  ;;  %v1579_v36 = vld [vmem:[%s2075_s0 + $0xb8] sm:$0xff]  ;;  %v1580_v40 = vld [vmem:[%s2075_s0 + $0xc0] sm:$0xff] }
   0xc   :  { %v1610_v34 = vld [vmem:[%s2075_s0 + $0x1b0] sm:$0xff]  ;;  %v1595_v37 = vld [vmem:[%s2075_s0 + $0x138] sm:$0xff]  ;;  %v1596_v43 = vld [vmem:[%s2075_s0 + $0x140] sm:$0xff] }
   0xd   :  { %v1611_v38 = vld [vmem:[%s2075_s0 + $0x1b8] sm:$0xff]  ;;  %v1612_v44 = vld [vmem:[%s2075_s0 + $0x1c0] sm:$0xff]  ;;  %v1565_v57 = vld [vmem:[%s2075_s0 + $0x48] sm:$0xff] }
   0xe   :  { %v1800_v49 = vld [vmem:[%s2076_s2] ss:$0 sm:$0xff]  ;;  %v1581_v58 = vld [vmem:[%s2075_s0 + $0xc8] sm:$0xff] }
   0xf   :  { %v1597_v0 = vld [vmem:[%s2075_s0 + $0x148] sm:$0xff] }
  0x10   :  { %v1613_v1 = vld [vmem:[%s2075_s0 + $0x1c8] sm:$0xff] }
  0x19   :  { %1493 = vmatmul.msk.bf16.gmra.mxu0 %vm470_vm2, %v1557_v11  ;;  %1509 = vmatmul.msk.bf16.gmra.mxu1 %vm470_vm2, %v1573_v12 }
  0x1a   :  { %1525 = vmatmul.msk.bf16.gmra.mxu2 %vm470_vm2, %v1589_v13  ;;  %1541 = vmatmul.msk.bf16.gmra.mxu3 %vm470_vm2, %v1605_v14 }
  0x29   :  { %1494 = vmatmul.msk.bf16.gmra.mxu0 %vm470_vm2, %v1558_v15  ;;  %1510 = vmatmul.msk.bf16.gmra.mxu1 %vm470_vm2, %v1574_v16 }
  0x2a   :  { %1526 = vmatmul.msk.bf16.gmra.mxu2 %vm470_vm2, %v1590_v17  ;;  %1542 = vmatmul.msk.bf16.gmra.mxu3 %vm470_vm2, %v1606_v18  ;;  %v1566_v17 = vld [vmem:[%s2075_s0 + $0x50] sm:$0xff] }
  0x2b   :  { %v1582_v18 = vld [vmem:[%s2075_s0 + $0xd0] sm:$0xff] }
  0x39   :  { %1495 = vmatmul.msk.bf16.gmra.mxu0 %vm470_vm2, %v1559_v19  ;;  %1511 = vmatmul.msk.bf16.gmra.mxu1 %vm470_vm2, %v1575_v20 }
  0x3a   :  { %1527 = vmatmul.msk.bf16.gmra.mxu2 %vm470_vm2, %v1591_v21  ;;  %1543 = vmatmul.msk.bf16.gmra.mxu3 %vm470_vm2, %v1607_v22 }
  0x49   :  { %1496 = vmatmul.msk.bf16.gmra.mxu0 %vm470_vm2, %v1560_v23  ;;  %1512 = vmatmul.msk.bf16.gmra.mxu1 %vm470_vm2, %v1576_v24  ;;  %v1598_v24 = vld [vmem:[%s2075_s0 + $0x150] sm:$0xff] }
  0x4a   :  { %1528 = vmatmul.msk.bf16.gmra.mxu2 %vm470_vm2, %v1592_v25  ;;  %1544 = vmatmul.msk.bf16.gmra.mxu3 %vm470_vm2, %v1608_v26  ;;  %v1614_v25 = vld [vmem:[%s2075_s0 + $0x1d0] sm:$0xff] }
  0x59   :  { %1497 = vmatmul.msk.bf16.gmra.mxu0 %vm470_vm2, %v1561_v27  ;;  %1513 = vmatmul.msk.bf16.gmra.mxu1 %vm470_vm2, %v1577_v28 }
  0x5a   :  { %1529 = vmatmul.msk.bf16.gmra.mxu2 %vm470_vm2, %v1593_v29  ;;  %1545 = vmatmul.msk.bf16.gmra.mxu3 %vm470_vm2, %v1609_v30 }
  0x69   :  { %1498 = vmatmul.msk.bf16.gmra.mxu0 %vm470_vm2, %v1562_v31  ;;  %1514 = vmatmul.msk.bf16.gmra.mxu1 %vm470_vm2, %v1578_v32 }
  0x6a   :  { %1530 = vmatmul.msk.bf16.gmra.mxu2 %vm470_vm2, %v1594_v33  ;;  %1546 = vmatmul.msk.bf16.gmra.mxu3 %vm470_vm2, %v1610_v34 }
  0x79   :  { %1499 = vmatmul.msk.bf16.gmra.mxu0 %vm470_vm2, %v1563_v35  ;;  %1515 = vmatmul.msk.bf16.gmra.mxu1 %vm470_vm2, %v1579_v36 }
  0x7a   :  { %1531 = vmatmul.msk.bf16.gmra.mxu2 %vm470_vm2, %v1595_v37  ;;  %1547 = vmatmul.msk.bf16.gmra.mxu3 %vm470_vm2, %v1611_v38 }
  0x86   :  { %v679_v41 = vpop.f32.mrf.mxu0  ;;  %v759_v42 = vpop.f32.mrf.mxu1 }
  0x87   :  { %v999_v45 = vmax.f32 %v679_v41, %v759_v42  ;;  %v1567_v41 = vld [vmem:[%s2075_s0 + $0x58] sm:$0xff] }
  0x88   :  { %v1583_v42 = vld [vmem:[%s2075_s0 + $0xd8] sm:$0xff] }
  0x89   :  { %1500 = vmatmul.msk.bf16.gmra.mxu0 %vm470_vm2, %v1564_v39  ;;  %1516 = vmatmul.msk.bf16.gmra.mxu1 %vm470_vm2, %v1580_v40 }
  0x8a   :  { %1532 = vmatmul.msk.bf16.gmra.mxu2 %vm470_vm2, %v1596_v43  ;;  %1548 = vmatmul.msk.bf16.gmra.mxu3 %vm470_vm2, %v1612_v44 }
  0x8d   :  { %v839_v46 = vpop.f32.mrf.mxu2  ;;  %v919_v47 = vpop.f32.mrf.mxu3 }
  0x8e   :  { %v1031_v48 = vmax.f32 %v839_v46, %v919_v47  ;;  %v681_v50 = vpop.f32.mrf.mxu0  ;;  %v761_v51 = vpop.f32.mrf.mxu1 }
  0x8f   :  { %v1000_v60 = vmax.f32 %v681_v50, %v761_v51  ;;  %v1615_v50 = vld [vmem:[%s2075_s0 + $0x1d8] sm:$0xff] }
  0x90   :  { %v1063_v52 = vmax.f32 %v999_v45, %v1031_v48  ;;  %v1599_v48 = vld [vmem:[%s2075_s0 + $0x158] sm:$0xff] }
  0x92   :  { %v1099_v53 = vadd.f32 %v1800_v49, %v1063_v52 }
  0x94   :  { %v1131_v54 = vmax.f32 %v1099_v53, 0.0 }
  0x95   :  { %v841_v55 = vpop.f32.mrf.mxu2  ;;  %v921_v56 = vpop.f32.mrf.mxu3 }
  0x96   :  { %v1163_v59 = vpack.c.bf16 %v1131_v54, %v1131_v54  ;;  %v1032_v61 = vmax.f32 %v841_v55, %v921_v56  ;;  %v684_v62 = vpop.f32.mrf.mxu0  ;;  %v764_v63 = vpop.f32.mrf.mxu1 }
  0x97   :  { %v1001_v5 = vmax.f32 %v684_v62, %v764_v63 }
  0x98   :  { %1196 = vst.msk [vmem:[%s2077_s3] sm:$0xf] %vm1195_vm3, %v1163_v59  ;;  %v1064_v2 = vmax.f32 %v1000_v60, %v1032_v61 }
  0x99   :  { %1501 = vmatmul.msk.bf16.gmra.mxu0 %vm470_vm2, %v1565_v57  ;;  %1517 = vmatmul.msk.bf16.gmra.mxu1 %vm470_vm2, %v1581_v58 }
  0x9a   :  { %v1100_v3 = vadd.f32 %v1800_v49, %v1064_v2  ;;  %1533 = vmatmul.msk.bf16.gmra.mxu2 %vm470_vm2, %v1597_v0  ;;  %1549 = vmatmul.msk.bf16.gmra.mxu3 %vm470_vm2, %v1613_v1  ;;  %v1568_v2 = vld [vmem:[%s2075_s0 + $0x60] sm:$0xff] }
  0x9c   :  { %v1132_v4 = vmax.f32 %v1100_v3, 0.0  ;;  %v1584_v3 = vld [vmem:[%s2075_s0 + $0xe0] sm:$0xff] }
  0x9d   :  { %v844_v6 = vpop.f32.mrf.mxu2  ;;  %v924_v7 = vpop.f32.mrf.mxu3 }
  0x9e   :  { %v1164_v8 = vpack.c.bf16 %v1132_v4, %v1132_v4  ;;  %v1033_v9 = vmax.f32 %v844_v6, %v924_v7  ;;  %v686_v10 = vpop.f32.mrf.mxu0  ;;  %v766_v11 = vpop.f32.mrf.mxu1 }
  0x9f   :  { %v1002_v20 = vmax.f32 %v686_v10, %v766_v11  ;;  %v1616_v10 = vld [vmem:[%s2075_s0 + $0x1e0] sm:$0xff] }
  0xa0   :  { %1197 = vst.msk [vmem:[%s2077_s3 + $0x4] sm:$0xf] %vm1195_vm3, %v1164_v8  ;;  %v1065_v12 = vmax.f32 %v1001_v5, %v1033_v9  ;;  %v1600_v9 = vld [vmem:[%s2075_s0 + $0x160] sm:$0xff] }
  0xa2   :  { %v1101_v13 = vadd.f32 %v1800_v49, %v1065_v12 }
  0xa4   :  { %v1133_v14 = vmax.f32 %v1101_v13, 0.0 }
  0xa5   :  { %v846_v15 = vpop.f32.mrf.mxu2  ;;  %v926_v16 = vpop.f32.mrf.mxu3 }
  0xa6   :  { %v1165_v19 = vpack.c.bf16 %v1133_v14, %v1133_v14  ;;  %v1034_v21 = vmax.f32 %v846_v15, %v926_v16  ;;  %v689_v22 = vpop.f32.mrf.mxu0  ;;  %v769_v23 = vpop.f32.mrf.mxu1 }
  0xa7   :  { %v1003_v29 = vmax.f32 %v689_v22, %v769_v23 }
  0xa8   :  { %1198 = vst.msk [vmem:[%s2077_s3 + $0x8] sm:$0xf] %vm1195_vm3, %v1165_v19  ;;  %v1066_v26 = vmax.f32 %v1002_v20, %v1034_v21 }
  0xa9   :  { %1502 = vmatmul.msk.bf16.gmra.mxu0 %vm470_vm2, %v1566_v17  ;;  %1518 = vmatmul.msk.bf16.gmra.mxu1 %vm470_vm2, %v1582_v18 }
  0xaa   :  { %v1102_v27 = vadd.f32 %v1800_v49, %v1066_v26  ;;  %1534 = vmatmul.msk.bf16.gmra.mxu2 %vm470_vm2, %v1598_v24  ;;  %1550 = vmatmul.msk.bf16.gmra.mxu3 %vm470_vm2, %v1614_v25  ;;  %v1569_v26 = vld [vmem:[%s2075_s0 + $0x68] sm:$0xff] }
  0xac   :  { %v1134_v28 = vmax.f32 %v1102_v27, 0.0  ;;  %v1585_v27 = vld [vmem:[%s2075_s0 + $0xe8] sm:$0xff] }
  0xad   :  { %v849_v30 = vpop.f32.mrf.mxu2  ;;  %v929_v31 = vpop.f32.mrf.mxu3 }
  0xae   :  { %v1166_v32 = vpack.c.bf16 %v1134_v28, %v1134_v28  ;;  %v1035_v33 = vmax.f32 %v849_v30, %v929_v31  ;;  %v691_v34 = vpop.f32.mrf.mxu0  ;;  %v771_v35 = vpop.f32.mrf.mxu1 }
  0xaf   :  { %v1004_v44 = vmax.f32 %v691_v34, %v771_v35  ;;  %v1617_v34 = vld [vmem:[%s2075_s0 + $0x1e8] sm:$0xff] }
  0xb0   :  { %1199 = vst.msk [vmem:[%s2077_s3 + $0xc] sm:$0xf] %vm1195_vm3, %v1166_v32  ;;  %v1067_v36 = vmax.f32 %v1003_v29, %v1035_v33  ;;  %v1601_v33 = vld [vmem:[%s2075_s0 + $0x168] sm:$0xff] }
  0xb2   :  { %v1103_v37 = vadd.f32 %v1800_v49, %v1067_v36 }
  0xb4   :  { %v1135_v38 = vmax.f32 %v1103_v37, 0.0 }
  0xb5   :  { %v851_v39 = vpop.f32.mrf.mxu2  ;;  %v931_v40 = vpop.f32.mrf.mxu3 }
  0xb6   :  { %v1167_v43 = vpack.c.bf16 %v1135_v38, %v1135_v38  ;;  %v1036_v45 = vmax.f32 %v851_v39, %v931_v40  ;;  %v694_v46 = vpop.f32.mrf.mxu0  ;;  %v774_v47 = vpop.f32.mrf.mxu1 }
  0xb7   :  { %v1005_v54 = vmax.f32 %v694_v46, %v774_v47 }
  0xb8   :  { %1200 = vst.msk [vmem:[%s2077_s3 + $0x10] sm:$0xf] %vm1195_vm3, %v1167_v43  ;;  %v1068_v51 = vmax.f32 %v1004_v44, %v1036_v45 }
  0xb9   :  { %1503 = vmatmul.msk.bf16.gmra.mxu0 %vm470_vm2, %v1567_v41  ;;  %1519 = vmatmul.msk.bf16.gmra.mxu1 %vm470_vm2, %v1583_v42 }
  0xba   :  { %v1104_v52 = vadd.f32 %v1800_v49, %v1068_v51  ;;  %1535 = vmatmul.msk.bf16.gmra.mxu2 %vm470_vm2, %v1599_v48  ;;  %1551 = vmatmul.msk.bf16.gmra.mxu3 %vm470_vm2, %v1615_v50  ;;  %v1570_v51 = vld [vmem:[%s2075_s0 + $0x70] sm:$0xff] }
  0xbc   :  { %v1136_v53 = vmax.f32 %v1104_v52, 0.0  ;;  %v1586_v52 = vld [vmem:[%s2075_s0 + $0xf0] sm:$0xff] }
  0xbd   :  { %v854_v55 = vpop.f32.mrf.mxu2  ;;  %v934_v56 = vpop.f32.mrf.mxu3 }
  0xbe   :  { %v1168_v57 = vpack.c.bf16 %v1136_v53, %v1136_v53  ;;  %v1037_v58 = vmax.f32 %v854_v55, %v934_v56  ;;  %v696_v59 = vpop.f32.mrf.mxu0  ;;  %v776_v60 = vpop.f32.mrf.mxu1 }
  0xbf   :  { %v1006_v5 = vmax.f32 %v696_v59, %v776_v60  ;;  %v1618_v59 = vld [vmem:[%s2075_s0 + $0x1f0] sm:$0xff] }
  0xc0   :  { %1201 = vst.msk [vmem:[%s2077_s3 + $0x14] sm:$0xf] %vm1195_vm3, %v1168_v57  ;;  %v1069_v61 = vmax.f32 %v1005_v54, %v1037_v58  ;;  %v1602_v58 = vld [vmem:[%s2075_s0 + $0x170] sm:$0xff] }
  0xc2   :  { %v1105_v62 = vadd.f32 %v1800_v49, %v1069_v61 }
  0xc4   :  { %v1137_v63 = vmax.f32 %v1105_v62, 0.0 }
  0xc5   :  { %v856_v0 = vpop.f32.mrf.mxu2  ;;  %v936_v1 = vpop.f32.mrf.mxu3 }
  0xc6   :  { %v1169_v4 = vpack.c.bf16 %v1137_v63, %v1137_v63  ;;  %v1038_v6 = vmax.f32 %v856_v0, %v936_v1  ;;  %v699_v7 = vpop.f32.mrf.mxu0  ;;  %v779_v8 = vpop.f32.mrf.mxu1 }
  0xc7   :  { %v1007_v14 = vmax.f32 %v699_v7, %v779_v8 }
  0xc8   :  { %1202 = vst.msk [vmem:[%s2077_s3 + $0x18] sm:$0xf] %vm1195_vm3, %v1169_v4  ;;  %v1070_v11 = vmax.f32 %v1006_v5, %v1038_v6 }
  0xc9   :  { %1504 = vmatmul.msk.bf16.gmra.mxu0 %vm470_vm2, %v1568_v2  ;;  %1520 = vmatmul.msk.bf16.gmra.mxu1 %vm470_vm2, %v1584_v3 }
  0xca   :  { %v1106_v12 = vadd.f32 %v1800_v49, %v1070_v11  ;;  %1536 = vmatmul.msk.bf16.gmra.mxu2 %vm470_vm2, %v1600_v9  ;;  %1552 = vmatmul.msk.bf16.gmra.mxu3 %vm470_vm2, %v1616_v10  ;;  %v1571_v11 = vld [vmem:[%s2075_s0 + $0x78] sm:$0xff] }
  0xcc   :  { %v1138_v13 = vmax.f32 %v1106_v12, 0.0  ;;  %v1587_v12 = vld [vmem:[%s2075_s0 + $0xf8] sm:$0xff] }
  0xcd   :  { %v859_v15 = vpop.f32.mrf.mxu2  ;;  %v939_v16 = vpop.f32.mrf.mxu3 }
  0xce   :  { %v1170_v17 = vpack.c.bf16 %v1138_v13, %v1138_v13  ;;  %v1039_v18 = vmax.f32 %v859_v15, %v939_v16  ;;  %v701_v19 = vpop.f32.mrf.mxu0  ;;  %v781_v20 = vpop.f32.mrf.mxu1 }
  0xcf   :  { %v1008_v29 = vmax.f32 %v701_v19, %v781_v20  ;;  %v1619_v19 = vld [vmem:[%s2075_s0 + $0x1f8] sm:$0xff] }
  0xd0   :  { %1203 = vst.msk [vmem:[%s2077_s3 + $0x1c] sm:$0xf] %vm1195_vm3, %v1170_v17  ;;  %v1071_v21 = vmax.f32 %v1007_v14, %v1039_v18  ;;  %v1603_v18 = vld [vmem:[%s2075_s0 + $0x178] sm:$0xff] }
  0xd2   :  { %v1107_v22 = vadd.f32 %v1800_v49, %v1071_v21 }
  0xd4   :  { %v1139_v23 = vmax.f32 %v1107_v22, 0.0 }
  0xd5   :  { %v861_v24 = vpop.f32.mrf.mxu2  ;;  %v941_v25 = vpop.f32.mrf.mxu3 }
  0xd6   :  { %v1171_v28 = vpack.c.bf16 %v1139_v23, %v1139_v23  ;;  %v1040_v30 = vmax.f32 %v861_v24, %v941_v25  ;;  %v704_v31 = vpop.f32.mrf.mxu0  ;;  %v784_v32 = vpop.f32.mrf.mxu1 }
  0xd7   :  { %v1009_v38 = vmax.f32 %v704_v31, %v784_v32 }
  0xd8   :  { %1204 = vst.msk [vmem:[%s2077_s3 + $0x20] sm:$0xf] %vm1195_vm3, %v1171_v28  ;;  %v1072_v35 = vmax.f32 %v1008_v29, %v1040_v30 }
  0xd9   :  { %1505 = vmatmul.msk.bf16.gmra.mxu0 %vm470_vm2, %v1569_v26  ;;  %1521 = vmatmul.msk.bf16.gmra.mxu1 %vm470_vm2, %v1585_v27 }
  0xda   :  { %v1108_v36 = vadd.f32 %v1800_v49, %v1072_v35  ;;  %1537 = vmatmul.msk.bf16.gmra.mxu2 %vm470_vm2, %v1601_v33  ;;  %1553 = vmatmul.msk.bf16.gmra.mxu3 %vm470_vm2, %v1617_v34 }
  0xdc   :  { %v1140_v37 = vmax.f32 %v1108_v36, 0.0 }
  0xdd   :  { %v864_v39 = vpop.f32.mrf.mxu2  ;;  %v944_v40 = vpop.f32.mrf.mxu3 }
  0xde   :  { %v1172_v41 = vpack.c.bf16 %v1140_v37, %v1140_v37  ;;  %v1041_v42 = vmax.f32 %v864_v39, %v944_v40  ;;  %v706_v43 = vpop.f32.mrf.mxu0  ;;  %v786_v44 = vpop.f32.mrf.mxu1 }
  0xdf   :  { %v1010_v54 = vmax.f32 %v706_v43, %v786_v44 }
  0xe0   :  { %1205 = vst.msk [vmem:[%s2077_s3 + $0x24] sm:$0xf] %vm1195_vm3, %v1172_v41  ;;  %v1073_v45 = vmax.f32 %v1009_v38, %v1041_v42 }
  0xe2   :  { %v1109_v46 = vadd.f32 %v1800_v49, %v1073_v45 }
  0xe4   :  { %v1141_v47 = vmax.f32 %v1109_v46, 0.0 }
  0xe5   :  { %v866_v48 = vpop.f32.mrf.mxu2  ;;  %v946_v50 = vpop.f32.mrf.mxu3 }
  0xe6   :  { %v1173_v53 = vpack.c.bf16 %v1141_v47, %v1141_v47  ;;  %v1042_v55 = vmax.f32 %v866_v48, %v946_v50  ;;  %v709_v56 = vpop.f32.mrf.mxu0  ;;  %v789_v57 = vpop.f32.mrf.mxu1 }
  0xe7   :  { %v1011_v63 = vmax.f32 %v709_v56, %v789_v57 }
  0xe8   :  { %1206 = vst.msk [vmem:[%s2077_s3 + $0x28] sm:$0xf] %vm1195_vm3, %v1173_v53  ;;  %v1074_v60 = vmax.f32 %v1010_v54, %v1042_v55 }
  0xe9   :  { %1506 = vmatmul.msk.bf16.gmra.mxu0 %vm470_vm2, %v1570_v51  ;;  %1522 = vmatmul.msk.bf16.gmra.mxu1 %vm470_vm2, %v1586_v52 }
  0xea   :  { %v1110_v61 = vadd.f32 %v1800_v49, %v1074_v60  ;;  %1538 = vmatmul.msk.bf16.gmra.mxu2 %vm470_vm2, %v1602_v58  ;;  %1554 = vmatmul.msk.bf16.gmra.mxu3 %vm470_vm2, %v1618_v59 }
  0xec   :  { %v1142_v62 = vmax.f32 %v1110_v61, 0.0 }
  0xed   :  { %v869_v0 = vpop.f32.mrf.mxu2  ;;  %v949_v1 = vpop.f32.mrf.mxu3 }
  0xee   :  { %v1174_v2 = vpack.c.bf16 %v1142_v62, %v1142_v62  ;;  %v1043_v3 = vmax.f32 %v869_v0, %v949_v1  ;;  %v711_v4 = vpop.f32.mrf.mxu0  ;;  %v791_v5 = vpop.f32.mrf.mxu1 }
  0xef   :  { %v1012_v14 = vmax.f32 %v711_v4, %v791_v5 }
  0xf0   :  { %1207 = vst.msk [vmem:[%s2077_s3 + $0x2c] sm:$0xf] %vm1195_vm3, %v1174_v2  ;;  %v1075_v6 = vmax.f32 %v1011_v63, %v1043_v3 }
  0xf2   :  { %v1111_v7 = vadd.f32 %v1800_v49, %v1075_v6 }
  0xf4   :  { %v1143_v8 = vmax.f32 %v1111_v7, 0.0 }
  0xf5   :  { %v871_v9 = vpop.f32.mrf.mxu2  ;;  %v951_v10 = vpop.f32.mrf.mxu3 }
  0xf6   :  { %v1175_v13 = vpack.c.bf16 %v1143_v8, %v1143_v8  ;;  %v1044_v15 = vmax.f32 %v871_v9, %v951_v10  ;;  %v714_v16 = vpop.f32.mrf.mxu0  ;;  %v794_v17 = vpop.f32.mrf.mxu1 }
  0xf7   :  { %v1013_v23 = vmax.f32 %v714_v16, %v794_v17 }
  0xf8   :  { %1208 = vst.msk [vmem:[%s2077_s3 + $0x30] sm:$0xf] %vm1195_vm3, %v1175_v13  ;;  %v1076_v20 = vmax.f32 %v1012_v14, %v1044_v15 }
  0xf9   :  { %1507 = vmatmul.msk.bf16.gmra.mxu0 %vm470_vm2, %v1571_v11  ;;  %1523 = vmatmul.msk.bf16.gmra.mxu1 %vm470_vm2, %v1587_v12 }
  0xfa   :  { %v1112_v21 = vadd.f32 %v1800_v49, %v1076_v20  ;;  %1539 = vmatmul.msk.bf16.gmra.mxu2 %vm470_vm2, %v1603_v18  ;;  %1555 = vmatmul.msk.bf16.gmra.mxu3 %vm470_vm2, %v1619_v19 }
  0xfc   :  { %v1144_v22 = vmax.f32 %v1112_v21, 0.0 }
  0xfd   :  { %v874_v24 = vpop.f32.mrf.mxu2  ;;  %v954_v25 = vpop.f32.mrf.mxu3 }
  0xfe   :  { %v1176_v26 = vpack.c.bf16 %v1144_v22, %v1144_v22  ;;  %v1045_v27 = vmax.f32 %v874_v24, %v954_v25  ;;  %v716_v28 = vpop.f32.mrf.mxu0  ;;  %v796_v29 = vpop.f32.mrf.mxu1 }
  0xff   :  { %v1014_v36 = vmax.f32 %v716_v28, %v796_v29 }
 0x100   :  { %1209 = vst.msk [vmem:[%s2077_s3 + $0x34] sm:$0xf] %vm1195_vm3, %v1176_v26  ;;  %v1077_v30 = vmax.f32 %v1013_v23, %v1045_v27 }
 0x102   :  { %v1113_v31 = vadd.f32 %v1800_v49, %v1077_v30 }
 0x104   :  { %v1145_v32 = vmax.f32 %v1113_v31, 0.0 }
 0x105   :  { %v876_v33 = vpop.f32.mrf.mxu2  ;;  %v956_v34 = vpop.f32.mrf.mxu3 }
 0x106   :  { %v1177_v35 = vpack.c.bf16 %v1145_v32, %v1145_v32  ;;  %v1046_v37 = vmax.f32 %v876_v33, %v956_v34  ;;  %v719_v38 = vpop.f32.mrf.mxu0  ;;  %v799_v39 = vpop.f32.mrf.mxu1 }
 0x107   :  { %v1015_v43 = vmax.f32 %v719_v38, %v799_v39 }
 0x108   :  { %1210 = vst.msk [vmem:[%s2077_s3 + $0x38] sm:$0xf] %vm1195_vm3, %v1177_v35  ;;  %v1078_v40 = vmax.f32 %v1014_v36, %v1046_v37 }
 0x10a   :  { %v1114_v41 = vadd.f32 %v1800_v49, %v1078_v40 }
 0x10c   :  { %v1146_v42 = vmax.f32 %v1114_v41, 0.0 }
 0x10d   :  { %v879_v44 = vpop.f32.mrf.mxu2  ;;  %v959_v45 = vpop.f32.mrf.mxu3 }
 0x10e   :  { %v1178_v46 = vpack.c.bf16 %v1146_v42, %v1146_v42  ;;  %v1047_v47 = vmax.f32 %v879_v44, %v959_v45  ;;  %v721_v48 = vpop.f32.mrf.mxu0  ;;  %v801_v50 = vpop.f32.mrf.mxu1 }
 0x10f   :  { %v1016_v57 = vmax.f32 %v721_v48, %v801_v50 }
 0x110   :  { %1211 = vst.msk [vmem:[%s2077_s3 + $0x3c] sm:$0xf] %vm1195_vm3, %v1178_v46  ;;  %v1079_v51 = vmax.f32 %v1015_v43, %v1047_v47 }
 0x112   :  { %v1115_v52 = vadd.f32 %v1800_v49, %v1079_v51 }
 0x114   :  { %v1147_v53 = vmax.f32 %v1115_v52, 0.0 }
 0x115   :  { %v881_v54 = vpop.f32.mrf.mxu2  ;;  %v961_v55 = vpop.f32.mrf.mxu3 }
 0x116   :  { %v1179_v56 = vpack.c.bf16 %v1147_v53, %v1147_v53  ;;  %v1048_v58 = vmax.f32 %v881_v54, %v961_v55  ;;  %v724_v59 = vpop.f32.mrf.mxu0  ;;  %v804_v60 = vpop.f32.mrf.mxu1 }
 0x117   :  { %v1017_v0 = vmax.f32 %v724_v59, %v804_v60 }
 0x118   :  { %1212 = vst.msk [vmem:[%s2077_s3 + $0x40] sm:$0xf] %vm1195_vm3, %v1179_v56  ;;  %v1080_v61 = vmax.f32 %v1016_v57, %v1048_v58 }
 0x11a   :  { %v1116_v62 = vadd.f32 %v1800_v49, %v1080_v61 }
 0x11c   :  { %v1148_v63 = vmax.f32 %v1116_v62, 0.0 }
 0x11d   :  { %v884_v1 = vpop.f32.mrf.mxu2  ;;  %v964_v2 = vpop.f32.mrf.mxu3 }
 0x11e   :  { %v1180_v3 = vpack.c.bf16 %v1148_v63, %v1148_v63  ;;  %v1049_v4 = vmax.f32 %v884_v1, %v964_v2  ;;  %v726_v5 = vpop.f32.mrf.mxu0  ;;  %v806_v6 = vpop.f32.mrf.mxu1 }
 0x11f   :  { %v1018_v13 = vmax.f32 %v726_v5, %v806_v6 }
 0x120   :  { %1213 = vst.msk [vmem:[%s2077_s3 + $0x44] sm:$0xf] %vm1195_vm3, %v1180_v3  ;;  %v1081_v7 = vmax.f32 %v1017_v0, %v1049_v4 }
 0x122   :  { %v1117_v8 = vadd.f32 %v1800_v49, %v1081_v7 }
 0x124   :  { %v1149_v9 = vmax.f32 %v1117_v8, 0.0 }
 0x125   :  { %v886_v10 = vpop.f32.mrf.mxu2  ;;  %v966_v11 = vpop.f32.mrf.mxu3 }
 0x126   :  { %v1181_v12 = vpack.c.bf16 %v1149_v9, %v1149_v9  ;;  %v1050_v14 = vmax.f32 %v886_v10, %v966_v11  ;;  %v729_v15 = vpop.f32.mrf.mxu0  ;;  %v809_v16 = vpop.f32.mrf.mxu1 }
 0x127   :  { %v1019_v20 = vmax.f32 %v729_v15, %v809_v16 }
 0x128   :  { %1214 = vst.msk [vmem:[%s2077_s3 + $0x48] sm:$0xf] %vm1195_vm3, %v1181_v12  ;;  %v1082_v17 = vmax.f32 %v1018_v13, %v1050_v14 }
 0x12a   :  { %v1118_v18 = vadd.f32 %v1800_v49, %v1082_v17 }
 0x12c   :  { %v1150_v19 = vmax.f32 %v1118_v18, 0.0 }
 0x12d   :  { %v889_v21 = vpop.f32.mrf.mxu2  ;;  %v969_v22 = vpop.f32.mrf.mxu3 }
 0x12e   :  { %v1182_v23 = vpack.c.bf16 %v1150_v19, %v1150_v19  ;;  %v1051_v24 = vmax.f32 %v889_v21, %v969_v22  ;;  %v731_v25 = vpop.f32.mrf.mxu0  ;;  %v811_v26 = vpop.f32.mrf.mxu1 }
 0x12f   :  { %v1020_v33 = vmax.f32 %v731_v25, %v811_v26 }
 0x130   :  { %1215 = vst.msk [vmem:[%s2077_s3 + $0x4c] sm:$0xf] %vm1195_vm3, %v1182_v23  ;;  %v1083_v27 = vmax.f32 %v1019_v20, %v1051_v24 }
 0x132   :  { %v1119_v28 = vadd.f32 %v1800_v49, %v1083_v27 }
 0x134   :  { %v1151_v29 = vmax.f32 %v1119_v28, 0.0 }
 0x135   :  { %v891_v30 = vpop.f32.mrf.mxu2  ;;  %v971_v31 = vpop.f32.mrf.mxu3 }
 0x136   :  { %v1183_v32 = vpack.c.bf16 %v1151_v29, %v1151_v29  ;;  %v1052_v34 = vmax.f32 %v891_v30, %v971_v31  ;;  %v734_v35 = vpop.f32.mrf.mxu0  ;;  %v814_v36 = vpop.f32.mrf.mxu1 }
 0x137   :  { %v1021_v40 = vmax.f32 %v734_v35, %v814_v36 }
 0x138   :  { %1216 = vst.msk [vmem:[%s2077_s3 + $0x50] sm:$0xf] %vm1195_vm3, %v1183_v32  ;;  %v1084_v37 = vmax.f32 %v1020_v33, %v1052_v34 }
 0x13a   :  { %v1120_v38 = vadd.f32 %v1800_v49, %v1084_v37 }
 0x13c   :  { %v1152_v39 = vmax.f32 %v1120_v38, 0.0 }
 0x13d   :  { %v894_v41 = vpop.f32.mrf.mxu2  ;;  %v974_v42 = vpop.f32.mrf.mxu3 }
 0x13e   :  { %v1184_v43 = vpack.c.bf16 %v1152_v39, %v1152_v39  ;;  %v1053_v44 = vmax.f32 %v894_v41, %v974_v42  ;;  %v736_v45 = vpop.f32.mrf.mxu0  ;;  %v816_v46 = vpop.f32.mrf.mxu1 }
 0x13f   :  { %v1022_v54 = vmax.f32 %v736_v45, %v816_v46 }
 0x140   :  { %1217 = vst.msk [vmem:[%s2077_s3 + $0x54] sm:$0xf] %vm1195_vm3, %v1184_v43  ;;  %v1085_v47 = vmax.f32 %v1021_v40, %v1053_v44 }
 0x142   :  { %v1121_v48 = vadd.f32 %v1800_v49, %v1085_v47 }
 0x144   :  { %v1153_v50 = vmax.f32 %v1121_v48, 0.0 }
 0x145   :  { %v896_v51 = vpop.f32.mrf.mxu2  ;;  %v976_v52 = vpop.f32.mrf.mxu3 }
 0x146   :  { %v1185_v53 = vpack.c.bf16 %v1153_v50, %v1153_v50  ;;  %v1054_v55 = vmax.f32 %v896_v51, %v976_v52  ;;  %v739_v56 = vpop.f32.mrf.mxu0  ;;  %v819_v57 = vpop.f32.mrf.mxu1 }
 0x147   :  { %v1023_v61 = vmax.f32 %v739_v56, %v819_v57 }
 0x148   :  { %1218 = vst.msk [vmem:[%s2077_s3 + $0x58] sm:$0xf] %vm1195_vm3, %v1185_v53  ;;  %v1086_v58 = vmax.f32 %v1022_v54, %v1054_v55 }
 0x14a   :  { %v1122_v59 = vadd.f32 %v1800_v49, %v1086_v58 }
 0x14c   :  { %v1154_v60 = vmax.f32 %v1122_v59, 0.0 }
 0x14d   :  { %v899_v62 = vpop.f32.mrf.mxu2  ;;  %v979_v63 = vpop.f32.mrf.mxu3 }
 0x14e   :  { %v1186_v0 = vpack.c.bf16 %v1154_v60, %v1154_v60  ;;  %v1055_v1 = vmax.f32 %v899_v62, %v979_v63  ;;  %v741_v2 = vpop.f32.mrf.mxu0  ;;  %v821_v3 = vpop.f32.mrf.mxu1 }
 0x14f   :  { %v1024_v10 = vmax.f32 %v741_v2, %v821_v3 }
 0x150   :  { %1219 = vst.msk [vmem:[%s2077_s3 + $0x5c] sm:$0xf] %vm1195_vm3, %v1186_v0  ;;  %v1087_v4 = vmax.f32 %v1023_v61, %v1055_v1 }
 0x152   :  { %v1123_v5 = vadd.f32 %v1800_v49, %v1087_v4 }
 0x154   :  { %v1155_v6 = vmax.f32 %v1123_v5, 0.0 }
 0x155   :  { %v901_v7 = vpop.f32.mrf.mxu2  ;;  %v981_v8 = vpop.f32.mrf.mxu3 }
 0x156   :  { %v1187_v9 = vpack.c.bf16 %v1155_v6, %v1155_v6  ;;  %v1056_v11 = vmax.f32 %v901_v7, %v981_v8  ;;  %v744_v12 = vpop.f32.mrf.mxu0  ;;  %v824_v13 = vpop.f32.mrf.mxu1 }
 0x157   :  { %v1025_v17 = vmax.f32 %v744_v12, %v824_v13 }
 0x158   :  { %1220 = vst.msk [vmem:[%s2077_s3 + $0x60] sm:$0xf] %vm1195_vm3, %v1187_v9  ;;  %v1088_v14 = vmax.f32 %v1024_v10, %v1056_v11 }
 0x15a   :  { %v1124_v15 = vadd.f32 %v1800_v49, %v1088_v14 }
 0x15c   :  { %v1156_v16 = vmax.f32 %v1124_v15, 0.0 }
 0x15d   :  { %v904_v18 = vpop.f32.mrf.mxu2  ;;  %v984_v19 = vpop.f32.mrf.mxu3 }
 0x15e   :  { %v1188_v20 = vpack.c.bf16 %v1156_v16, %v1156_v16  ;;  %v1057_v21 = vmax.f32 %v904_v18, %v984_v19  ;;  %v746_v22 = vpop.f32.mrf.mxu0  ;;  %v826_v23 = vpop.f32.mrf.mxu1 }
 0x15f   :  { %v1026_v30 = vmax.f32 %v746_v22, %v826_v23 }
 0x160   :  { %1221 = vst.msk [vmem:[%s2077_s3 + $0x64] sm:$0xf] %vm1195_vm3, %v1188_v20  ;;  %v1089_v24 = vmax.f32 %v1025_v17, %v1057_v21 }
 0x162   :  { %v1125_v25 = vadd.f32 %v1800_v49, %v1089_v24 }
 0x164   :  { %v1157_v26 = vmax.f32 %v1125_v25, 0.0 }
 0x165   :  { %v906_v27 = vpop.f32.mrf.mxu2  ;;  %v986_v28 = vpop.f32.mrf.mxu3 }
 0x166   :  { %v1189_v29 = vpack.c.bf16 %v1157_v26, %v1157_v26  ;;  %v1058_v31 = vmax.f32 %v906_v27, %v986_v28  ;;  %v749_v32 = vpop.f32.mrf.mxu0  ;;  %v829_v33 = vpop.f32.mrf.mxu1 }
 0x167   :  { %v1027_v37 = vmax.f32 %v749_v32, %v829_v33 }
 0x168   :  { %1222 = vst.msk [vmem:[%s2077_s3 + $0x68] sm:$0xf] %vm1195_vm3, %v1189_v29  ;;  %v1090_v34 = vmax.f32 %v1026_v30, %v1058_v31 }
 0x16a   :  { %v1126_v35 = vadd.f32 %v1800_v49, %v1090_v34 }
 0x16c   :  { %v1158_v36 = vmax.f32 %v1126_v35, 0.0 }
 0x16d   :  { %v909_v38 = vpop.f32.mrf.mxu2  ;;  %v989_v39 = vpop.f32.mrf.mxu3 }
 0x16e   :  { %v1190_v40 = vpack.c.bf16 %v1158_v36, %v1158_v36  ;;  %v1059_v41 = vmax.f32 %v909_v38, %v989_v39  ;;  %v751_v42 = vpop.f32.mrf.mxu0  ;;  %v831_v43 = vpop.f32.mrf.mxu1 }
 0x16f   :  { %v1028_v51 = vmax.f32 %v751_v42, %v831_v43 }
 0x170   :  { %1223 = vst.msk [vmem:[%s2077_s3 + $0x6c] sm:$0xf] %vm1195_vm3, %v1190_v40  ;;  %v1091_v44 = vmax.f32 %v1027_v37, %v1059_v41 }
 0x172   :  { %v1127_v45 = vadd.f32 %v1800_v49, %v1091_v44 }
 0x174   :  { %v1159_v46 = vmax.f32 %v1127_v45, 0.0 }
 0x175   :  { %v911_v47 = vpop.f32.mrf.mxu2  ;;  %v991_v48 = vpop.f32.mrf.mxu3 }
 0x176   :  { %v1191_v50 = vpack.c.bf16 %v1159_v46, %v1159_v46  ;;  %v1060_v52 = vmax.f32 %v911_v47, %v991_v48  ;;  %v754_v54 = vpop.f32.mrf.mxu0  ;;  %v834_v55 = vpop.f32.mrf.mxu1 }
 0x177   :  { %v1029_v58 = vmax.f32 %v754_v54, %v834_v55 }
 0x178   :  { %1224 = vst.msk [vmem:[%s2077_s3 + $0x70] sm:$0xf] %vm1195_vm3, %v1191_v50  ;;  %v1092_v53 = vmax.f32 %v1028_v51, %v1060_v52 }
 0x17a   :  { %v1128_v56 = vadd.f32 %v1800_v49, %v1092_v53 }
 0x17c   :  { %v1160_v57 = vmax.f32 %v1128_v56, 0.0 }
 0x17d   :  { %v914_v59 = vpop.f32.mrf.mxu2  ;;  %v994_v60 = vpop.f32.mrf.mxu3 }
 0x17e   :  { %v1192_v61 = vpack.c.bf16 %v1160_v57, %v1160_v57  ;;  %v1061_v62 = vmax.f32 %v914_v59, %v994_v60  ;;  %v756_v1 = vpop.f32.mrf.mxu0  ;;  %v836_v2 = vpop.f32.mrf.mxu1 }
 0x17f   :  { %v1030_v7 = vmax.f32 %v756_v1, %v836_v2 }
 0x180   :  { %1225 = vst.msk [vmem:[%s2077_s3 + $0x74] sm:$0xf] %vm1195_vm3, %v1192_v61  ;;  %v1093_v63 = vmax.f32 %v1029_v58, %v1061_v62 }
 0x182   :  { %v1129_v0 = vadd.f32 %v1800_v49, %v1093_v63 }
 0x184   :  { %v1161_v3 = vmax.f32 %v1129_v0, 0.0 }
 0x185   :  { %v916_v4 = vpop.f32.mrf.mxu2  ;;  %v996_v5 = vpop.f32.mrf.mxu3 }
 0x186   :  { %v1193_v6 = vpack.c.bf16 %v1161_v3, %v1161_v3  ;;  %v1062_v8 = vmax.f32 %v916_v4, %v996_v5 }
 0x188   :  { %1226 = vst.msk [vmem:[%s2077_s3 + $0x78] sm:$0xf] %vm1195_vm3, %v1193_v6  ;;  %v1094_v9 = vmax.f32 %v1030_v7, %v1062_v8 }
 0x18a   :  { %v1130_v10 = vadd.f32 %v1800_v49, %v1094_v9 }
 0x18c   :  { %v1162_v11 = vmax.f32 %v1130_v10, 0.0 }
 0x18e   :  { %v1194_v12 = vpack.c.bf16 %v1162_v11, %v1162_v11 }
 0x190   :  { %1227 = vst.msk [vmem:[%s2077_s3 + $0x7c] sm:$0xf] %vm1195_vm3, %v1194_v12 }

// kernel: chess_opening_classifier_forward.4
= control target key start
LH: loop header
LB: loop body
LE: loop exit
PB: predicated region body
PF: predicated region fallthrough
CT: control target
= control target key end

     0   :  { %vm463_vm0 = vcmask 261120   ;;  %vm831_vm1 = vcmask 519168   ;;  %s1757_s1 = inlined_call_operand.vmem [shape: bf16[288,64], index: 1, kind: input, shape index: {}]   ;;  %s1758_s0 = inlined_call_operand.vmem [shape: bf16[4,64,288], index: 0, kind: input, shape index: {}]   ;;  %s1759_s2 = inlined_call_operand.vmem [shape: f32[1,64], index: 2, kind: input, shape index: {}]   ;;  %s1760_s3 = inlined_call_operand.vmem [shape: bf16[64,64], index: 3, kind: output, shape index: {}]  }
   0x1   :  { %v1179_v0 = vld [vmem:[%s1757_s1 + $0x38] sm:$0xff]  ;;  %v1238_v2 = vld [vmem:[%s1757_s1 + $0x88] sm:$0xff]  ;;  %v1178_v3 = vld [vmem:[%s1757_s1 + $0x30] sm:$0xff] }
   0x2   :  { %v1187_v1 = vld [vmem:[%s1757_s1 + $0x78] sm:$0xff]  ;;  %512 = vmatpush.bf16.msra.mxu0 %v1179_v0  ;;  %1190 = vmatpush.bf16.msra.mxu3 %v1179_v0  ;;  %v1186_v4 = vld [vmem:[%s1757_s1 + $0x70] sm:$0xff]  ;;  %v1250_v5 = vld [vmem:[%s1757_s1 + $0x80] sm:$0xff] }
   0x3   :  { %601 = vmatpush.bf16.msra.mxu1 %v1187_v1  ;;  %696 = vmatpush.bf16.msra.mxu2 %v1238_v2  ;;  %v854_v6 = vld [vmem:[%s1758_s0 + $0x8] sm:$0xf]  ;;  %v1126_v7 = vld [vmem:[%s1758_s0 + $0x10] sm:$0xf0]  ;;  %v1176_v11 = vld [vmem:[%s1757_s1 + $0x20] sm:$0xff] }
   0x4   :  { %v855_v8 = vor.u32 %v1126_v7, %v854_v6  ;;  %v1177_v9 = vld [vmem:[%s1757_s1 + $0x28] sm:$0xff]  ;;  %v1184_v12 = vld [vmem:[%s1757_s1 + $0x60] sm:$0xff]  ;;  %v1175_v13 = vld [vmem:[%s1757_s1 + $0x18] sm:$0xff] }
   0x5   :  { %v1185_v10 = vld [vmem:[%s1757_s1 + $0x68] sm:$0xff]  ;;  %v1183_v14 = vld [vmem:[%s1757_s1 + $0x58] sm:$0xff]  ;;  %v1174_v15 = vld [vmem:[%s1757_s1 + $0x10] sm:$0xff] }
   0x6   :  { %513 = vmatpush.bf16.msra.mxu0 %v1178_v3  ;;  %1191 = vmatpush.bf16.msra.mxu3 %v1178_v3  ;;  %v1182_v16 = vld [vmem:[%s1757_s1 + $0x50] sm:$0xff]  ;;  %v866_v17 = vld [vmem:[%s1758_s0 + $0x20] sm:$0xf]  ;;  %v1129_v18 = vld [vmem:[%s1758_s0 + $0x28] sm:$0xf0] }
   0x7   :  { %602 = vmatpush.bf16.msra.mxu1 %v1186_v4  ;;  %697 = vmatpush.bf16.msra.mxu2 %v1250_v5  ;;  %v867_v19 = vor.u32 %v1129_v18, %v866_v17  ;;  %v1173_v20 = vld [vmem:[%s1757_s1 + $0x8] sm:$0xff]  ;;  %v1172_v22 = vld [vmem:[%s1757_s1] sm:$0xff]  ;;  %v848_v29 = vld [vmem:[%s1758_s0 + $0xc] sm:$0xf0] }
   0x8   :  { %v1181_v21 = vld [vmem:[%s1757_s1 + $0x48] sm:$0xff]  ;;  %v1180_v23 = vld [vmem:[%s1757_s1 + $0x40] sm:$0xff]  ;;  %v878_v33 = vld [vmem:[%s1758_s0 + $0x38] sm:$0xf] }
   0x9   :  { %v846_v24 = vld [vmem:[%s1758_s0] sm:$0xf]  ;;  %v1125_v25 = vld [vmem:[%s1758_s0 + $0x8] sm:$0xf0]  ;;  %v1124_v28 = vld [vmem:[%s1758_s0 + $0x4] sm:$0xf] }
   0xa   :  { %1108 = vmatmul.msk.bf16.vlgmr.msra.gmra.mxu2 %vm463_vm0, %v855_v8  ;;  %514 = vmatpush.bf16.msra.mxu0 %v1177_v9  ;;  %v990_v26 = vld [vmem:[%s1758_s0 + $0x120] sm:$0xf]  ;;  %v1161_v27 = vld [vmem:[%s1758_s0 + $0x128] sm:$0xf0]  ;;  %v847_v30 = vor.u32 %v1125_v25, %v846_v24  ;;  %v851_v32 = vor.u32 %v1124_v28, %v848_v29  ;;  %v1132_v34 = vld [vmem:[%s1758_s0 + $0x40] sm:$0xf0] }
   0xb   :  { %1192 = vmatpush.bf16.msra.mxu3 %v1177_v9  ;;  %603 = vmatpush.bf16.msra.mxu1 %v1185_v10  ;;  %v991_v31 = vor.u32 %v1161_v27, %v990_v26  ;;  %v879_v35 = vor.u32 %v1132_v34, %v878_v33  ;;  %v858_v36 = vld [vmem:[%s1758_s0 + $0x18] sm:$0xf]  ;;  %v1128_v37 = vld [vmem:[%s1758_s0 + $0x20] sm:$0xf0]  ;;  %v1127_v40 = vld [vmem:[%s1758_s0 + $0x1c] sm:$0xf] }
   0xc   :  { %v1002_v38 = vld [vmem:[%s1758_s0 + $0x138] sm:$0xf]  ;;  %v1164_v39 = vld [vmem:[%s1758_s0 + $0x140] sm:$0xf0]  ;;  %v860_v41 = vld [vmem:[%s1758_s0 + $0x24] sm:$0xf0]  ;;  %v859_v42 = vor.u32 %v1128_v37, %v858_v36 }
   0xd   :  { %v1003_v43 = vor.u32 %v1164_v39, %v1002_v38  ;;  %v863_v44 = vor.u32 %v1127_v40, %v860_v41  ;;  %v890_v45 = vld [vmem:[%s1758_s0 + $0x50] sm:$0xf]  ;;  %v1135_v46 = vld [vmem:[%s1758_s0 + $0x58] sm:$0xf0]  ;;  %v1130_v52 = vld [vmem:[%s1758_s0 + $0x34] sm:$0xf] }
   0xe   :  { %515 = vmatpush.bf16.msra.mxu0 %v1176_v11  ;;  %v891_v47 = vor.u32 %v1135_v46, %v890_v45  ;;  %v870_v48 = vld [vmem:[%s1758_s0 + $0x30] sm:$0xf]  ;;  %v1131_v49 = vld [vmem:[%s1758_s0 + $0x38] sm:$0xf0]  ;;  %v872_v53 = vld [vmem:[%s1758_s0 + $0x3c] sm:$0xf0] }
   0xf   :  { %1193 = vmatpush.bf16.msra.mxu3 %v1176_v11  ;;  %604 = vmatpush.bf16.msra.mxu1 %v1184_v12  ;;  %v1014_v50 = vld [vmem:[%s1758_s0 + $0x150] sm:$0xf]  ;;  %v1167_v51 = vld [vmem:[%s1758_s0 + $0x158] sm:$0xf0]  ;;  %v871_v54 = vor.u32 %v1131_v49, %v870_v48  ;;  %v875_v56 = vor.u32 %v1130_v52, %v872_v53  ;;  %v902_v57 = vld [vmem:[%s1758_s0 + $0x68] sm:$0xf] }
  0x10   :  { %v1015_v55 = vor.u32 %v1167_v51, %v1014_v50  ;;  %v1138_v58 = vld [vmem:[%s1758_s0 + $0x70] sm:$0xf0]  ;;  %v882_v60 = vld [vmem:[%s1758_s0 + $0x48] sm:$0xf]  ;;  %v1133_v0 = vld [vmem:[%s1758_s0 + $0x4c] sm:$0xf] }
  0x11   :  { %v903_v59 = vor.u32 %v1138_v58, %v902_v57  ;;  %v1134_v61 = vld [vmem:[%s1758_s0 + $0x50] sm:$0xf0]  ;;  %v1026_v62 = vld [vmem:[%s1758_s0 + $0x168] sm:$0xf]  ;;  %v1141_v6 = vld [vmem:[%s1758_s0 + $0x88] sm:$0xf0] }
  0x12   :  { %516 = vmatpush.bf16.msra.mxu0 %v1175_v13  ;;  %v1170_v63 = vld [vmem:[%s1758_s0 + $0x170] sm:$0xf0]  ;;  %v894_v8 = vld [vmem:[%s1758_s0 + $0x60] sm:$0xf]  ;;  %v1137_v9 = vld [vmem:[%s1758_s0 + $0x68] sm:$0xf0] }
  0x13   :  { %1194 = vmatpush.bf16.msra.mxu3 %v1175_v13  ;;  %605 = vmatpush.bf16.msra.mxu1 %v1183_v14  ;;  %v1027_v3 = vor.u32 %v1170_v63, %v1026_v62  ;;  %v896_v11 = vld [vmem:[%s1758_s0 + $0x6c] sm:$0xf0]  ;;  %v926_v17 = vld [vmem:[%s1758_s0 + $0x98] sm:$0xf]  ;;  %v1144_v18 = vld [vmem:[%s1758_s0 + $0xa0] sm:$0xf0] }
  0x14   :  { %v992_v13 = vld [vmem:[%s1758_s0 + $0x12c] sm:$0xf0]  ;;  %v1163_v24 = vld [vmem:[%s1758_s0 + $0x13c] sm:$0xf]  ;;  %v1004_v25 = vld [vmem:[%s1758_s0 + $0x144] sm:$0xf0] }
  0x15   :  { %v1007_v28 = vor.u32 %v1163_v24, %v1004_v25  ;;  %v938_v29 = vld [vmem:[%s1758_s0 + $0xb0] sm:$0xf]  ;;  %v1143_v33 = vld [vmem:[%s1758_s0 + $0x98] sm:$0xf0]  ;;  %v1142_v34 = vld [vmem:[%s1758_s0 + $0x94] sm:$0xf] }
  0x16   :  { %517 = vmatpush.bf16.msra.mxu0 %v1174_v15  ;;  %v1166_v36 = vld [vmem:[%s1758_s0 + $0x154] sm:$0xf]  ;;  %v1016_v37 = vld [vmem:[%s1758_s0 + $0x15c] sm:$0xf0]  ;;  %v950_v41 = vld [vmem:[%s1758_s0 + $0xc8] sm:$0xf] }
  0x17   :  { %1195 = vmatpush.bf16.msra.mxu3 %v1174_v15  ;;  %606 = vmatpush.bf16.msra.mxu1 %v1182_v16  ;;  %v1019_v40 = vor.u32 %v1166_v36, %v1016_v37  ;;  %v1146_v45 = vld [vmem:[%s1758_s0 + $0xb0] sm:$0xf0]  ;;  %v1145_v46 = vld [vmem:[%s1758_s0 + $0xac] sm:$0xf]  ;;  %v1028_v49 = vld [vmem:[%s1758_s0 + $0x174] sm:$0xf0] }
  0x18   :  { %v1169_v48 = vld [vmem:[%s1758_s0 + $0x16c] sm:$0xf]  ;;  %v942_v58 = vld [vmem:[%s1758_s0 + $0xc0] sm:$0xf]  ;;  %v1022_v62 = vld [vmem:[%s1758_s0 + $0x158] sm:$0xf] }
  0x19   :  { %v1031_v53 = vor.u32 %v1169_v48, %v1028_v49  ;;  %v1168_v63 = vld [vmem:[%s1758_s0 + $0x160] sm:$0xf0] }
  0x1a   :  { %1109 = vmatmul.msk.bf16.gmra.mxu2 %vm463_vm0, %v867_v19  ;;  %518 = vmatpush.bf16.msra.mxu0 %v1173_v20  ;;  %v927_v19 = vor.u32 %v1144_v18, %v926_v17  ;;  %v954_v17 = vld [vmem:[%s1758_s0 + $0xd8] sm:$0xf]  ;;  %v1152_v18 = vld [vmem:[%s1758_s0 + $0xe0] sm:$0xf0] }
  0x1b   :  { %1196 = vmatpush.bf16.msra.mxu3 %v1173_v20  ;;  %607 = vmatpush.bf16.msra.mxu1 %v1181_v21  ;;  %v906_v20 = vld [vmem:[%s1758_s0 + $0x78] sm:$0xf]  ;;  %v955_v25 = vor.u32 %v1152_v18, %v954_v17 }
  0x1e   :  { %519 = vmatpush.bf16.msra.mxu0 %v1172_v22 }
  0x1f   :  { %1197 = vmatpush.bf16.msra.mxu3 %v1172_v22  ;;  %608 = vmatpush.bf16.msra.mxu1 %v1180_v23  ;;  %v1139_v22 = vld [vmem:[%s1758_s0 + $0x7c] sm:$0xf] }
  0x21   :  { %520 = vmatmul.bf16.vlgmr.msra.gmra.mxu0 %v847_v30  ;;  %v1147_v30 = vld [vmem:[%s1758_s0 + $0xb8] sm:$0xf0] }
  0x22   :  { %580 = vmatmul.bf16.vlgmr.msra.gmra.mxu3 %v991_v31  ;;  %609 = vmatmul.bf16.vlgmr.msra.gmra.mxu1 %v851_v32  ;;  %v939_v31 = vor.u32 %v1147_v30, %v938_v29  ;;  %v918_v32 = vld [vmem:[%s1758_s0 + $0x90] sm:$0xf] }
  0x23   :  { %1198 = vmatpush.bf16.msrb.mxu3 %v1187_v1  ;;  %v884_v1 = vld [vmem:[%s1758_s0 + $0x54] sm:$0xf0]  ;;  %v919_v38 = vor.u32 %v1143_v33, %v918_v32  ;;  %v986_v32 = vld [vmem:[%s1758_s0 + $0x110] sm:$0xf]  ;;  %v1159_v33 = vld [vmem:[%s1758_s0 + $0x118] sm:$0xf0] }
  0x24   :  { %v987_v37 = vor.u32 %v1159_v33, %v986_v32 }
  0x27   :  { %1199 = vmatpush.bf16.msrb.mxu3 %v1186_v4  ;;  %v887_v4 = vor.u32 %v1133_v0, %v884_v1 }
  0x2a   :  { %1110 = vmatmul.msk.bf16.gmra.mxu2 %vm463_vm0, %v879_v35  ;;  %v920_v35 = vld [vmem:[%s1758_s0 + $0x9c] sm:$0xf0] }
  0x2b   :  { %1200 = vmatpush.bf16.msrb.mxu3 %v1185_v10  ;;  %v1136_v10 = vld [vmem:[%s1758_s0 + $0x64] sm:$0xf]  ;;  %v923_v39 = vor.u32 %v1142_v34, %v920_v35 }
  0x2c   :  { %v899_v15 = vor.u32 %v1136_v10, %v896_v11 }
  0x2f   :  { %1201 = vmatpush.bf16.msrb.mxu3 %v1184_v12  ;;  %v1160_v12 = vld [vmem:[%s1758_s0 + $0x124] sm:$0xf] }
  0x31   :  { %525 = vmatmul.bf16.gmra.mxu0 %v859_v42  ;;  %v1150_v42 = vld [vmem:[%s1758_s0 + $0xd0] sm:$0xf0] }
  0x32   :  { %585 = vmatmul.bf16.gmra.mxu3 %v1003_v43  ;;  %614 = vmatmul.bf16.gmra.mxu1 %v863_v44  ;;  %v951_v43 = vor.u32 %v1150_v42, %v950_v41  ;;  %v930_v44 = vld [vmem:[%s1758_s0 + $0xa8] sm:$0xf]  ;;  %v966_v41 = vld [vmem:[%s1758_s0 + $0xf0] sm:$0xf]  ;;  %v1155_v42 = vld [vmem:[%s1758_s0 + $0xf8] sm:$0xf0] }
  0x33   :  { %1202 = vmatpush.bf16.msrb.mxu3 %v1183_v14  ;;  %v895_v14 = vor.u32 %v1137_v9, %v894_v8  ;;  %v931_v51 = vor.u32 %v1146_v45, %v930_v44  ;;  %v974_v8 = vld [vmem:[%s1758_s0 + $0xf8] sm:$0xf]  ;;  %v1156_v9 = vld [vmem:[%s1758_s0 + $0x100] sm:$0xf0]  ;;  %v968_v44 = vld [vmem:[%s1758_s0 + $0xfc] sm:$0xf0] }
  0x37   :  { %1203 = vmatpush.bf16.msrb.mxu3 %v1182_v16  ;;  %v995_v16 = vor.u32 %v1160_v12, %v992_v13  ;;  %v975_v13 = vor.u32 %v1156_v9, %v974_v8 }
  0x3a   :  { %1111 = vmatmul.msk.bf16.gmra.mxu2 %vm463_vm0, %v891_v47  ;;  %v932_v47 = vld [vmem:[%s1758_s0 + $0xb4] sm:$0xf0] }
  0x3b   :  { %1204 = vmatpush.bf16.msrb.mxu3 %v1181_v21  ;;  %v1140_v21 = vld [vmem:[%s1758_s0 + $0x80] sm:$0xf0]  ;;  %v935_v52 = vor.u32 %v1145_v46, %v932_v47  ;;  %v967_v47 = vor.u32 %v1155_v42, %v966_v41 }
  0x3c   :  { %v907_v26 = vor.u32 %v1140_v21, %v906_v20  ;;  %v956_v20 = vld [vmem:[%s1758_s0 + $0xe4] sm:$0xf0]  ;;  %v1034_v21 = vld [vmem:[%s1758_s0 + $0x170] sm:$0xf] }
  0x3f   :  { %1205 = vmatpush.bf16.msrb.mxu3 %v1180_v23  ;;  %v908_v23 = vld [vmem:[%s1758_s0 + $0x84] sm:$0xf0] }
  0x40   :  { %v911_v27 = vor.u32 %v1139_v22, %v908_v23  ;;  %v1171_v22 = vld [vmem:[%s1758_s0 + $0x178] sm:$0xf0] }
  0x41   :  { %530 = vmatmul.bf16.gmra.mxu0 %v871_v54  ;;  %v962_v54 = vld [vmem:[%s1758_s0 + $0xe0] sm:$0xf] }
  0x42   :  { %590 = vmatmul.bf16.gmra.mxu3 %v1015_v55  ;;  %619 = vmatmul.bf16.gmra.mxu1 %v875_v56  ;;  %v1153_v55 = vld [vmem:[%s1758_s0 + $0xe8] sm:$0xf0] }
  0x43   :  { %1206 = vmatpush.bf16.msra.mxu3 %v1238_v2  ;;  %v883_v2 = vor.u32 %v1134_v61, %v882_v60  ;;  %v963_v57 = vor.u32 %v1153_v55, %v962_v54  ;;  %v1148_v60 = vld [vmem:[%s1758_s0 + $0xc4] sm:$0xf]  ;;  %v944_v61 = vld [vmem:[%s1758_s0 + $0xcc] sm:$0xf0]  ;;  %v1162_v54 = vld [vmem:[%s1758_s0 + $0x130] sm:$0xf0] }
  0x47   :  { %1207 = vmatpush.bf16.msra.mxu3 %v1250_v5  ;;  %v914_v5 = vld [vmem:[%s1758_s0 + $0x80] sm:$0xf] }
  0x48   :  { %v915_v7 = vor.u32 %v1141_v6, %v914_v5 }
  0x4a   :  { %1112 = vmatmul.msk.bf16.gmra.mxu2 %vm463_vm0, %v903_v59  ;;  %v1149_v59 = vld [vmem:[%s1758_s0 + $0xc8] sm:$0xf0] }
  0x4b   :  { %v943_v1 = vor.u32 %v1149_v59, %v942_v58 }
  0x51   :  { %535 = vmatmul.bf16.gmra.mxu0 %v883_v2 }
  0x52   :  { %595 = vmatmul.bf16.gmra.mxu3 %v1027_v3  ;;  %624 = vmatmul.bf16.gmra.mxu1 %v887_v4  ;;  %v947_v3 = vor.u32 %v1148_v60, %v944_v61  ;;  %v1023_v4 = vor.u32 %v1168_v63, %v1022_v62  ;;  %v978_v62 = vld [vmem:[%s1758_s0 + $0x108] sm:$0xf]  ;;  %v1158_v63 = vld [vmem:[%s1758_s0 + $0x110] sm:$0xf0] }
  0x5a   :  { %1113 = vmatmul.msk.bf16.gmra.mxu2 %vm463_vm0, %v915_v7 }
  0x61   :  { %540 = vmatmul.bf16.gmra.mxu0 %v895_v14 }
  0x62   :  { %629 = vmatmul.bf16.gmra.mxu1 %v899_v15  ;;  %669 = vmatmul.bf16.vlgmr.msrb.gmra.mxu3 %v995_v16 }
  0x6a   :  { %1114 = vmatmul.msk.bf16.gmra.mxu2 %vm463_vm0, %v927_v19  ;;  %v1151_v19 = vld [vmem:[%s1758_s0 + $0xdc] sm:$0xf] }
  0x71   :  { %545 = vmatmul.bf16.gmra.mxu0 %v907_v26 }
  0x72   :  { %634 = vmatmul.bf16.gmra.mxu1 %v911_v27  ;;  %674 = vmatmul.bf16.gmra.mxu3 %v1007_v28  ;;  %v959_v27 = vor.u32 %v1151_v19, %v956_v20  ;;  %v1035_v28 = vor.u32 %v1171_v22, %v1034_v21 }
  0x7a   :  { %1115 = vmatmul.msk.bf16.gmra.mxu2 %vm463_vm0, %v939_v31 }
  0x81   :  { %550 = vmatmul.bf16.gmra.mxu0 %v919_v38 }
  0x82   :  { %639 = vmatmul.bf16.gmra.mxu1 %v923_v39  ;;  %679 = vmatmul.bf16.gmra.mxu3 %v1019_v40 }
  0x8a   :  { %1116 = vmatmul.msk.bf16.gmra.mxu2 %vm463_vm0, %v951_v43  ;;  %v1154_v43 = vld [vmem:[%s1758_s0 + $0xf4] sm:$0xf] }
  0x8b   :  { %v971_v49 = vor.u32 %v1154_v43, %v968_v44 }
  0x8d   :  { %v699_v50 = vpop.f32.mrf.mxu2 }
  0x91   :  { %555 = vmatmul.bf16.gmra.mxu0 %v931_v51 }
  0x92   :  { %644 = vmatmul.bf16.gmra.mxu1 %v935_v52  ;;  %684 = vmatmul.bf16.gmra.mxu3 %v1031_v53  ;;  %v998_v53 = vld [vmem:[%s1758_s0 + $0x128] sm:$0xf] }
  0x93   :  { %v999_v58 = vor.u32 %v1162_v54, %v998_v53 }
  0x95   :  { %v701_v56 = vpop.f32.mrf.mxu2 }
  0x9a   :  { %1117 = vmatmul.msk.bf16.gmra.mxu2 %vm463_vm0, %v963_v57 }
  0x9d   :  { %v704_v0 = vpop.f32.mrf.mxu2 }
  0x9e   :  { %v521_v2 = vpop.f32.mrf.mxu0 }
  0x9f   :  { %v610_v5 = vpop.f32.mrf.mxu1 }
  0xa0   :  { %v611_v6 = vadd.f32 %v610_v5, %v521_v2 }
  0xa1   :  { %560 = vmatmul.bf16.gmra.mxu0 %v943_v1  ;;  %v980_v1 = vld [vmem:[%s1758_s0 + $0x114] sm:$0xf0] }
  0xa2   :  { %v1523_v7 = vadd.f32 %v699_v50, %v611_v6  ;;  %649 = vmatmul.bf16.gmra.mxu1 %v947_v3  ;;  %1122 = vmatmul.msk.bf16.vlgmr.msra.gmra.mxu3 %vm463_vm0, %v1023_v4  ;;  %v979_v4 = vor.u32 %v1158_v63, %v978_v62 }
  0xa5   :  { %v1532_v10 = vpop.f32.mrf.mxu3  ;;  %v706_v11 = vpop.f32.mrf.mxu2 }
  0xa6   :  { %v523_v12 = vpop.f32.mrf.mxu0 }
  0xa7   :  { %v612_v14 = vpop.f32.mrf.mxu1 }
  0xa8   :  { %v613_v15 = vadd.f32 %v612_v14, %v523_v12  ;;  %v1010_v12 = vld [vmem:[%s1758_s0 + $0x140] sm:$0xf] }
  0xaa   :  { %v1534_v16 = vadd.f32 %v701_v56, %v613_v15  ;;  %1118 = vmatmul.msk.bf16.gmra.mxu2 %vm463_vm0, %v975_v13  ;;  %v1165_v13 = vld [vmem:[%s1758_s0 + $0x148] sm:$0xf0] }
  0xab   :  { %v1011_v18 = vor.u32 %v1165_v13, %v1010_v12 }
  0xad   :  { %v1555_v23 = vpop.f32.mrf.mxu3  ;;  %v709_v24 = vpop.f32.mrf.mxu2 }
  0xae   :  { %v526_v26 = vpop.f32.mrf.mxu0 }
  0xaf   :  { %v615_v29 = vpop.f32.mrf.mxu1 }
  0xb0   :  { %v616_v30 = vadd.f32 %v615_v29, %v526_v26 }
  0xb1   :  { %565 = vmatmul.bf16.gmra.mxu0 %v955_v25 }
  0xb2   :  { %v1557_v31 = vadd.f32 %v704_v0, %v616_v30  ;;  %654 = vmatmul.bf16.gmra.mxu1 %v959_v27  ;;  %1123 = vmatmul.msk.bf16.gmra.mxu3 %vm463_vm0, %v1035_v28  ;;  %v1157_v0 = vld [vmem:[%s1758_s0 + $0x10c] sm:$0xf] }
  0xb3   :  { %v983_v6 = vor.u32 %v1157_v0, %v980_v1 }
  0xb5   :  { %v1566_v34 = vpop.f32.mrf.mxu3  ;;  %v711_v35 = vpop.f32.mrf.mxu2 }
  0xb6   :  { %v528_v36 = vpop.f32.mrf.mxu0 }
  0xb7   :  { %v617_v38 = vpop.f32.mrf.mxu1 }
  0xb8   :  { %v618_v39 = vadd.f32 %v617_v38, %v528_v36 }
  0xba   :  { %v1568_v40 = vadd.f32 %v706_v11, %v618_v39  ;;  %1119 = vmatmul.msk.bf16.gmra.mxu2 %vm463_vm0, %v987_v37 }
  0xbd   :  { %v1583_v45 = vpop.f32.mrf.mxu3  ;;  %v714_v46 = vpop.f32.mrf.mxu2 }
  0xbe   :  { %v531_v48 = vpop.f32.mrf.mxu0 }
  0xbf   :  { %v620_v50 = vpop.f32.mrf.mxu1 }
  0xc0   :  { %v621_v51 = vadd.f32 %v620_v50, %v531_v48 }
  0xc1   :  { %570 = vmatmul.bf16.gmra.mxu0 %v967_v47 }
  0xc2   :  { %v1585_v52 = vadd.f32 %v709_v24, %v621_v51  ;;  %659 = vmatmul.bf16.gmra.mxu1 %v971_v49 }
  0xc5   :  { %v1593_v55 = vpop.f32.mrf.mxu3  ;;  %v716_v56 = vpop.f32.mrf.mxu2 }
  0xc6   :  { %v533_v57 = vpop.f32.mrf.mxu0 }
  0xc7   :  { %v622_v59 = vpop.f32.mrf.mxu1 }
  0xc8   :  { %v623_v60 = vadd.f32 %v622_v59, %v533_v57 }
  0xca   :  { %v1595_v61 = vadd.f32 %v711_v35, %v623_v60  ;;  %1120 = vmatmul.msk.bf16.gmra.mxu2 %vm463_vm0, %v999_v58 }
  0xcd   :  { %v1610_v2 = vpop.f32.mrf.mxu3  ;;  %v719_v3 = vpop.f32.mrf.mxu2 }
  0xce   :  { %v536_v5 = vpop.f32.mrf.mxu0 }
  0xcf   :  { %v625_v8 = vpop.f32.mrf.mxu1 }
  0xd0   :  { %v626_v9 = vadd.f32 %v625_v8, %v536_v5 }
  0xd1   :  { %575 = vmatmul.bf16.gmra.mxu0 %v979_v4 }
  0xd2   :  { %v1612_v11 = vadd.f32 %v714_v46, %v626_v9  ;;  %664 = vmatmul.bf16.gmra.mxu1 %v983_v6 }
  0xd5   :  { %v1620_v14 = vpop.f32.mrf.mxu3  ;;  %v721_v15 = vpop.f32.mrf.mxu2 }
  0xd6   :  { %v538_v17 = vpop.f32.mrf.mxu0 }
  0xd7   :  { %v627_v19 = vpop.f32.mrf.mxu1 }
  0xd8   :  { %v628_v20 = vadd.f32 %v627_v19, %v538_v17 }
  0xda   :  { %v1622_v21 = vadd.f32 %v716_v56, %v628_v20  ;;  %1121 = vmatmul.msk.bf16.gmra.mxu2 %vm463_vm0, %v1011_v18 }
  0xdd   :  { %v1625_v22 = vpop.f32.mrf.mxu3  ;;  %v724_v24 = vpop.f32.mrf.mxu2 }
  0xde   :  { %v541_v25 = vpop.f32.mrf.mxu0 }
  0xdf   :  { %v630_v26 = vpop.f32.mrf.mxu1 }
  0xe0   :  { %v631_v27 = vadd.f32 %v630_v26, %v541_v25 }
  0xe2   :  { %v1627_v28 = vadd.f32 %v719_v3, %v631_v27 }
  0xe4   :  { %v779_v29 = vmax.f32 %v1523_v7, %v1627_v28 }
  0xe5   :  { %v670_v30 = vpop.f32.mrf.mxu3  ;;  %v726_v32 = vpop.f32.mrf.mxu2 }
  0xe6   :  { %v1632_v33 = vadd.f32 %v670_v30, %v1532_v10  ;;  %v543_v35 = vpop.f32.mrf.mxu0 }
  0xe7   :  { %v632_v36 = vpop.f32.mrf.mxu1 }
  0xe8   :  { %v633_v37 = vadd.f32 %v632_v36, %v543_v35 }
  0xea   :  { %v1634_v38 = vadd.f32 %v721_v15, %v633_v37 }
  0xec   :  { %v780_v39 = vmax.f32 %v1534_v16, %v1634_v38 }
  0xed   :  { %v672_v41 = vpop.f32.mrf.mxu3  ;;  %v729_v42 = vpop.f32.mrf.mxu2 }
  0xee   :  { %v1639_v43 = vadd.f32 %v672_v41, %v1555_v23  ;;  %v546_v44 = vpop.f32.mrf.mxu0 }
  0xef   :  { %v635_v46 = vpop.f32.mrf.mxu1 }
  0xf0   :  { %v636_v47 = vadd.f32 %v635_v46, %v546_v44 }
  0xf2   :  { %v1641_v48 = vadd.f32 %v724_v24, %v636_v47 }
  0xf4   :  { %v781_v10 = vmax.f32 %v1557_v31, %v1641_v48 }
  0xf5   :  { %v675_v49 = vpop.f32.mrf.mxu3  ;;  %v731_v50 = vpop.f32.mrf.mxu2 }
  0xf6   :  { %v1646_v51 = vadd.f32 %v675_v49, %v1566_v34  ;;  %v548_v53 = vpop.f32.mrf.mxu0 }
  0xf7   :  { %v637_v54 = vpop.f32.mrf.mxu1 }
  0xf8   :  { %v638_v56 = vadd.f32 %v637_v54, %v548_v53 }
  0xfa   :  { %v1648_v57 = vadd.f32 %v726_v32, %v638_v56 }
  0xfc   :  { %v782_v23 = vmax.f32 %v1568_v40, %v1648_v57 }
  0xfd   :  { %v677_v58 = vpop.f32.mrf.mxu3  ;;  %v734_v59 = vpop.f32.mrf.mxu2 }
  0xfe   :  { %v1653_v60 = vadd.f32 %v677_v58, %v1583_v45  ;;  %v551_v62 = vpop.f32.mrf.mxu0 }
  0xff   :  { %v640_v63 = vpop.f32.mrf.mxu1 }
 0x100   :  { %v641_v0 = vadd.f32 %v640_v63, %v551_v62 }
 0x102   :  { %v730_v1 = vadd.f32 %v729_v42, %v641_v0 }
 0x104   :  { %v783_v34 = vmax.f32 %v1585_v52, %v730_v1 }
 0x105   :  { %v736_v3 = vpop.f32.mrf.mxu2  ;;  %v680_v18 = vpop.f32.mrf.mxu3 }
 0x106   :  { %v553_v4 = vpop.f32.mrf.mxu0  ;;  %v681_v63 = vadd.f32 %v680_v18, %v1593_v55 }
 0x107   :  { %v642_v5 = vpop.f32.mrf.mxu1 }
 0x108   :  { %v643_v6 = vadd.f32 %v642_v5, %v553_v4 }
 0x10a   :  { %v732_v8 = vadd.f32 %v731_v50, %v643_v6  ;;  %v1683_v6 = vld [vmem:[%s1759_s2] ss:$0 sm:$0xff] }
 0x10c   :  { %v784_v9 = vmax.f32 %v1595_v61, %v732_v8 }
 0x10d   :  { %v739_v12 = vpop.f32.mrf.mxu2  ;;  %v682_v27 = vpop.f32.mrf.mxu3 }
 0x10e   :  { %v556_v13 = vpop.f32.mrf.mxu0 }
 0x10f   :  { %v645_v15 = vpop.f32.mrf.mxu1 }
 0x110   :  { %v646_v17 = vadd.f32 %v645_v15, %v556_v13 }
 0x112   :  { %v1657_v45 = vadd.f32 %v734_v59, %v646_v17 }
 0x114   :  { %v785_v19 = vmax.f32 %v1612_v11, %v1657_v45 }
 0x115   :  { %v1661_v20 = vpop.f32.mrf.mxu2  ;;  %v685_v36 = vpop.f32.mrf.mxu3 }
 0x116   :  { %v558_v52 = vpop.f32.mrf.mxu0 }
 0x117   :  { %v647_v24 = vpop.f32.mrf.mxu1 }
 0x118   :  { %v648_v25 = vadd.f32 %v647_v24, %v558_v52  ;;  %v683_v52 = vadd.f32 %v682_v27, %v1610_v2 }
 0x11a   :  { %v1663_v26 = vadd.f32 %v736_v3, %v648_v25 }
 0x11c   :  { %v786_v61 = vmax.f32 %v1622_v21, %v1663_v26 }
 0x11d   :  { %v1667_v30 = vpop.f32.mrf.mxu2  ;;  %v687_v47 = vpop.f32.mrf.mxu3 }
 0x11e   :  { %v561_v32 = vpop.f32.mrf.mxu0 }
 0x11f   :  { %v650_v35 = vpop.f32.mrf.mxu1 }
 0x120   :  { %v651_v55 = vadd.f32 %v650_v35, %v561_v32  ;;  %v686_v32 = vadd.f32 %v685_v36, %v1620_v14 }
 0x125   :  { %v1669_v37 = vpop.f32.mrf.mxu2  ;;  %v769_v56 = vpop.f32.mrf.mxu3 }
 0x126   :  { %v563_v41 = vpop.f32.mrf.mxu0  ;;  %v770_v1 = vadd.f32 %v769_v56, %v681_v63 }
 0x127   :  { %v652_v42 = vpop.f32.mrf.mxu1 }
 0x12d   :  { %v749_v44 = vpop.f32.mrf.mxu2  ;;  %v771_v4 = vpop.f32.mrf.mxu3 }
 0x12e   :  { %v1671_v46 = vpop.f32.mrf.mxu0  ;;  %v772_v18 = vadd.f32 %v771_v4, %v683_v52 }
 0x12f   :  { %v1673_v49 = vpop.f32.mrf.mxu1 }
 0x135   :  { %v751_v50 = vpop.f32.mrf.mxu2  ;;  %v774_v63 = vpop.f32.mrf.mxu3 }
 0x136   :  { %v1675_v53 = vpop.f32.mrf.mxu0 }
 0x137   :  { %v1677_v54 = vpop.f32.mrf.mxu1 }
 0x13d   :  { %v754_v58 = vpop.f32.mrf.mxu2 }
 0x13e   :  { %v571_v59 = vpop.f32.mrf.mxu0 }
 0x13f   :  { %v660_v62 = vpop.f32.mrf.mxu1 }
 0x140   :  { %v661_v0 = vadd.f32 %v660_v62, %v571_v59 }
 0x142   :  { %v750_v3 = vadd.f32 %v749_v44, %v661_v0 }
 0x144   :  { %v791_v5 = vmax.f32 %v750_v3, %v770_v1  ;;  %v740_v1 = vadd.f32 %v739_v12, %v651_v55 }
 0x145   :  { %v756_v8 = vpop.f32.mrf.mxu2 }
 0x146   :  { %v799_v13 = vmax.f32 %v783_v34, %v791_v5  ;;  %v573_v15 = vpop.f32.mrf.mxu0  ;;  %v653_v5 = vadd.f32 %v652_v42, %v563_v41  ;;  %v776_v41 = vpop.f32.mrf.mxu3 }
 0x147   :  { %v662_v17 = vpop.f32.mrf.mxu1 }
 0x148   :  { %v811_v24 = vadd.f32 %v1683_v6, %v799_v13  ;;  %v663_v25 = vadd.f32 %v662_v17, %v573_v15  ;;  %v775_v13 = vadd.f32 %v774_v63, %v686_v32  ;;  %v658_v63 = vadd.f32 %v1677_v54, %v1675_v53 }
 0x14a   :  { %v819_v56 = vmax.f32 %v811_v24, 0.0  ;;  %v752_v44 = vadd.f32 %v751_v50, %v663_v25  ;;  %v742_v25 = vadd.f32 %v1661_v20, %v653_v5 }
 0x14c   :  { %v827_v59 = vpack.c.bf16 %v819_v56, %v819_v56  ;;  %v792_v62 = vmax.f32 %v752_v44, %v772_v18  ;;  %v656_v56 = vadd.f32 %v1673_v49, %v1671_v46 }
 0x14d   :  { %v759_v0 = vpop.f32.mrf.mxu2 }
 0x14e   :  { %836 = vst.msk [vmem:[%s1760_s3 + $0x10] sm:$0xf] %vm831_vm1, %v827_v59  ;;  %v800_v34 = vmax.f32 %v784_v9, %v792_v62  ;;  %v760_v2 = vadd.f32 %v759_v0, %v1632_v33  ;;  %v576_v27 = vpop.f32.mrf.mxu0  ;;  %v745_v62 = vadd.f32 %v1667_v30, %v656_v56  ;;  %v747_v0 = vadd.f32 %v1669_v37, %v658_v63 }
 0x14f   :  { %v665_v3 = vpop.f32.mrf.mxu1 }
 0x150   :  { %v812_v35 = vadd.f32 %v1683_v6, %v800_v34  ;;  %v787_v50 = vmax.f32 %v740_v1, %v760_v2  ;;  %v666_v4 = vadd.f32 %v665_v3, %v576_v27 }
 0x152   :  { %v820_v15 = vmax.f32 %v812_v35, 0.0  ;;  %v795_v12 = vmax.f32 %v779_v29, %v787_v50  ;;  %v755_v17 = vadd.f32 %v754_v58, %v666_v4  ;;  %v688_v29 = vadd.f32 %v687_v47, %v1625_v22 }
 0x154   :  { %v828_v52 = vpack.c.bf16 %v820_v15, %v820_v15  ;;  %v807_v9 = vadd.f32 %v1683_v6, %v795_v12  ;;  %v793_v33 = vmax.f32 %v755_v17, %v775_v13  ;;  %v777_v44 = vadd.f32 %v776_v41, %v688_v29 }
 0x155   :  { %v761_v24 = vpop.f32.mrf.mxu2 }
 0x156   :  { %837 = vst.msk [vmem:[%s1760_s3 + $0x14] sm:$0xf] %vm831_vm1, %v828_v52  ;;  %v815_v14 = vmax.f32 %v807_v9, 0.0  ;;  %v801_v36 = vmax.f32 %v785_v19, %v793_v33  ;;  %v762_v7 = vadd.f32 %v761_v24, %v1639_v43  ;;  %v578_v28 = vpop.f32.mrf.mxu0 }
 0x157   :  { %v667_v42 = vpop.f32.mrf.mxu1 }
 0x158   :  { %v823_v58 = vpack.c.bf16 %v815_v14, %v815_v14  ;;  %v813_v20 = vadd.f32 %v1683_v6, %v801_v36  ;;  %v788_v55 = vmax.f32 %v742_v25, %v762_v7  ;;  %v668_v18 = vadd.f32 %v667_v42, %v578_v28 }
 0x15a   :  { %832 = vst.msk [vmem:[%s1760_s3] sm:$0xf] %vm831_vm1, %v823_v58  ;;  %v821_v11 = vmax.f32 %v813_v20, 0.0  ;;  %v796_v22 = vmax.f32 %v780_v39, %v788_v55  ;;  %v757_v43 = vadd.f32 %v756_v8, %v668_v18 }
 0x15c   :  { %v829_v45 = vpack.c.bf16 %v821_v11, %v821_v11  ;;  %v808_v19 = vadd.f32 %v1683_v6, %v796_v22  ;;  %v794_v47 = vmax.f32 %v757_v43, %v777_v44 }
 0x15d   :  { %v764_v59 = vpop.f32.mrf.mxu2 }
 0x15e   :  { %838 = vst.msk [vmem:[%s1760_s3 + $0x18] sm:$0xf] %vm831_vm1, %v829_v45  ;;  %v816_v46 = vmax.f32 %v808_v19, 0.0  ;;  %v802_v49 = vmax.f32 %v786_v61, %v794_v47  ;;  %v765_v16 = vadd.f32 %v764_v59, %v1646_v51 }
 0x160   :  { %v824_v38 = vpack.c.bf16 %v816_v46, %v816_v46  ;;  %v814_v39 = vadd.f32 %v1683_v6, %v802_v49  ;;  %v789_v8 = vmax.f32 %v745_v62, %v765_v16 }
 0x162   :  { %833 = vst.msk [vmem:[%s1760_s3 + $0x4] sm:$0xf] %vm831_vm1, %v824_v38  ;;  %v822_v30 = vmax.f32 %v814_v39, 0.0  ;;  %v797_v21 = vmax.f32 %v781_v10, %v789_v8 }
 0x164   :  { %v830_v26 = vpack.c.bf16 %v822_v30, %v822_v30  ;;  %v809_v51 = vadd.f32 %v1683_v6, %v797_v21 }
 0x165   :  { %v766_v61 = vpop.f32.mrf.mxu2 }
 0x166   :  { %839 = vst.msk [vmem:[%s1760_s3 + $0x1c] sm:$0xf] %vm831_vm1, %v830_v26  ;;  %v817_v53 = vmax.f32 %v809_v51, 0.0  ;;  %v767_v54 = vadd.f32 %v766_v61, %v1653_v60 }
 0x168   :  { %v825_v1 = vpack.c.bf16 %v817_v53, %v817_v53  ;;  %v790_v34 = vmax.f32 %v747_v0, %v767_v54 }
 0x16a   :  { %834 = vst.msk [vmem:[%s1760_s3 + $0x8] sm:$0xf] %vm831_vm1, %v825_v1  ;;  %v798_v31 = vmax.f32 %v782_v23, %v790_v34 }
 0x16c   :  { %v810_v48 = vadd.f32 %v1683_v6, %v798_v31 }
 0x16e   :  { %v818_v10 = vmax.f32 %v810_v48, 0.0 }
 0x170   :  { %v826_v37 = vpack.c.bf16 %v818_v10, %v818_v10 }
 0x172   :  { %835 = vst.msk [vmem:[%s1760_s3 + $0xc] sm:$0xf] %vm831_vm1, %v826_v37 }

// kernel: chess_opening_classifier_forward.5
= control target key start
LH: loop header
LB: loop body
LE: loop exit
PB: predicated region body
PF: predicated region fallthrough
CT: control target
= control target key end

     0   :  { %s5811_s0 = inlined_call_operand.vmem [shape: bf16[4,16,576], index: 0, kind: input, shape index: {}]   ;;  %s5812_s1 = inlined_call_operand.vmem [shape: bf16[576,128], index: 1, kind: input, shape index: {}]   ;;  %s5813_s2 = inlined_call_operand.vmem [shape: f32[1,128], index: 2, kind: input, shape index: {}]   ;;  %s5814_s3 = inlined_call_operand.vmem [shape: bf16[128,512], index: 3, kind: input, shape index: {}]   ;;  %s5815_s4 = inlined_call_operand.vmem [shape: bf16[128,512], index: 4, kind: input, shape index: {}]   ;;  %s5816_s5 = inlined_call_operand.vmem [shape: f32[1,512], index: 5, kind: input, shape index: {}]   ;;  %s5817_s6 = inlined_call_operand.vmem [shape: bf16[128,128], index: 6, kind: input, shape index: {}]   ;;  %s5818_s7 = inlined_call_operand.vmem [shape: f32[1,128], index: 7, kind: input, shape index: {}]   ;;  %s5819_s8 = inlined_call_operand.vmem [shape: bf16[128,10], index: 8, kind: input, shape index: {}]   ;;  %s5820_s9 = inlined_call_operand.vmem [shape: f32[1,10], index: 9, kind: input, shape index: {}]   ;;  %s5821_s10 = inlined_call_operand.hbm [shape: f32[2,10], index: 10, kind: output, shape index: {}]  }
   0x1   :  { %v3646_v0 = vld [vmem:[%s5812_s1 + $0x38] sm:$0xff]  ;;  %v3645_v4 = vld [vmem:[%s5812_s1 + $0x30] sm:$0xff]  ;;  %v3644_v8 = vld [vmem:[%s5812_s1 + $0x28] sm:$0xff] }
   0x2   :  { %v3654_v1 = vld [vmem:[%s5812_s1 + $0x78] sm:$0xff]  ;;  %462 = vmatpush.bf16.msra.mxu0 %v3646_v0  ;;  %v3653_v5 = vld [vmem:[%s5812_s1 + $0x70] sm:$0xff]  ;;  %v3652_v9 = vld [vmem:[%s5812_s1 + $0x68] sm:$0xff] }
   0x3   :  { %v3662_v2 = vld [vmem:[%s5812_s1 + $0xb8] sm:$0xff]  ;;  %491 = vmatpush.bf16.msra.mxu1 %v3654_v1  ;;  %v3661_v6 = vld [vmem:[%s5812_s1 + $0xb0] sm:$0xff]  ;;  %v3660_v10 = vld [vmem:[%s5812_s1 + $0xa8] sm:$0xff] }
   0x4   :  { %v3670_v3 = vld [vmem:[%s5812_s1 + $0xf8] sm:$0xff]  ;;  %520 = vmatpush.bf16.msra.mxu2 %v3662_v2  ;;  %v3669_v7 = vld [vmem:[%s5812_s1 + $0xf0] sm:$0xff]  ;;  %v3668_v11 = vld [vmem:[%s5812_s1 + $0xe8] sm:$0xff] }
   0x5   :  { %549 = vmatpush.bf16.msra.mxu3 %v3670_v3  ;;  %v3643_v12 = vld [vmem:[%s5812_s1 + $0x20] sm:$0xff]  ;;  %v3642_v16 = vld [vmem:[%s5812_s1 + $0x18] sm:$0xff] }
   0x6   :  { %463 = vmatpush.bf16.msra.mxu0 %v3645_v4  ;;  %v3651_v13 = vld [vmem:[%s5812_s1 + $0x60] sm:$0xff]  ;;  %v3650_v17 = vld [vmem:[%s5812_s1 + $0x58] sm:$0xff] }
   0x7   :  { %492 = vmatpush.bf16.msra.mxu1 %v3653_v5  ;;  %v3659_v14 = vld [vmem:[%s5812_s1 + $0xa0] sm:$0xff]  ;;  %v3658_v18 = vld [vmem:[%s5812_s1 + $0x98] sm:$0xff] }
   0x8   :  { %521 = vmatpush.bf16.msra.mxu2 %v3661_v6  ;;  %v3667_v15 = vld [vmem:[%s5812_s1 + $0xe0] sm:$0xff]  ;;  %v3666_v19 = vld [vmem:[%s5812_s1 + $0xd8] sm:$0xff] }
   0x9   :  { %550 = vmatpush.bf16.msra.mxu3 %v3669_v7 }
   0xa   :  { %464 = vmatpush.bf16.msra.mxu0 %v3644_v8 }
   0xb   :  { %493 = vmatpush.bf16.msra.mxu1 %v3652_v9 }
   0xc   :  { %522 = vmatpush.bf16.msra.mxu2 %v3660_v10 }
   0xd   :  { %551 = vmatpush.bf16.msra.mxu3 %v3668_v11 }
   0xe   :  { %465 = vmatpush.bf16.msra.mxu0 %v3643_v12 }
   0xf   :  { %494 = vmatpush.bf16.msra.mxu1 %v3651_v13 }
  0x10   :  { %523 = vmatpush.bf16.msra.mxu2 %v3659_v14 }
  0x11   :  { %552 = vmatpush.bf16.msra.mxu3 %v3667_v15 }
  0x12   :  { %15 = vsyncpa [#allocation3], 0  ;;  %466 = vmatpush.bf16.msra.mxu0 %v3642_v16  ;;  %v3641_v20 = vld [vmem:[%s5812_s1 + $0x10] sm:$0xff]  ;;  %v3640_v24 = vld [vmem:[%s5812_s1 + $0x8] sm:$0xff]  ;;  %vm449_vm0 = vcmask 523264   ;;  %s4043_s20 = smov [#allocation2]  }
  0x13   :  { %495 = vmatpush.bf16.msra.mxu1 %v3650_v17  ;;  %v3649_v21 = vld [vmem:[%s5812_s1 + $0x50] sm:$0xff]  ;;  %v3648_v25 = vld [vmem:[%s5812_s1 + $0x48] sm:$0xff]  ;;  %v3639_v28 = vld [vmem:[%s5812_s1] sm:$0xff]  ;;  %s3012_s21 = sshll.u32 %s4043_s20, 4  ;;  %s3013_s21 = int_to_ptr.vmem [resolvable:$true] %s3012_s21 }
  0x14   :  { %524 = vmatpush.bf16.msra.mxu2 %v3658_v18  ;;  %v3657_v22 = vld [vmem:[%s5812_s1 + $0x90] sm:$0xff]  ;;  %v3656_v26 = vld [vmem:[%s5812_s1 + $0x88] sm:$0xff]  ;;  %v3647_v29 = vld [vmem:[%s5812_s1 + $0x40] sm:$0xff] }
  0x15   :  { %553 = vmatpush.bf16.msra.mxu3 %v3666_v19  ;;  %v3665_v23 = vld [vmem:[%s5812_s1 + $0xd0] sm:$0xff]  ;;  %v3664_v27 = vld [vmem:[%s5812_s1 + $0xc8] sm:$0xff]  ;;  %v3655_v30 = vld [vmem:[%s5812_s1 + $0x80] sm:$0xff] }
  0x16   :  { %467 = vmatpush.bf16.msra.mxu0 %v3641_v20  ;;  %v3663_v31 = vld [vmem:[%s5812_s1 + $0xc0] sm:$0xff]  ;;  %v3621_v33 = vld [vmem:[%s5811_s0 + $0x10] sm:$0xf0]  ;;  %v3027_v35 = vld [vmem:[%s5811_s0 + $0x14] sm:$0xf0] }
  0x17   :  { %496 = vmatpush.bf16.msra.mxu1 %v3649_v21  ;;  %v3025_v32 = vld [vmem:[%s5811_s0] sm:$0xf]  ;;  %v3619_v34 = vld [vmem:[%s5811_s0 + $0x4] sm:$0xf]  ;;  %v3033_v36 = vld [vmem:[%s5811_s0 + $0x8] sm:$0xf] }
  0x18   :  { %525 = vmatpush.bf16.msra.mxu2 %v3657_v22  ;;  %v3622_v37 = vld [vmem:[%s5811_s0 + $0x18] sm:$0xf0]  ;;  %v3620_v38 = vld [vmem:[%s5811_s0 + $0xc] sm:$0xf]  ;;  %v3035_v39 = vld [vmem:[%s5811_s0 + $0x1c] sm:$0xf0]  ;;  %v3026_v41 = vor.u32 %v3621_v33, %v3025_v32  ;;  %v3030_v42 = vor.u32 %v3619_v34, %v3027_v35 }
  0x19   :  { %554 = vmatpush.bf16.msra.mxu3 %v3665_v23  ;;  %v3674_v40 = vld [vmem:[%s5812_s1 + $0x118] sm:$0xff]  ;;  %v3034_v43 = vor.u32 %v3622_v37, %v3033_v36  ;;  %v3038_v44 = vor.u32 %v3620_v38, %v3035_v39  ;;  %v3673_v45 = vld [vmem:[%s5812_s1 + $0x110] sm:$0xff]  ;;  %v3672_v46 = vld [vmem:[%s5812_s1 + $0x108] sm:$0xff] }
  0x1a   :  { %468 = vmatpush.bf16.msra.mxu0 %v3640_v24  ;;  %v3045_v47 = vld [vmem:[%s5811_s0 + $0x28] sm:$0xf]  ;;  %v3626_v48 = vld [vmem:[%s5811_s0 + $0x38] sm:$0xf0]  ;;  %v3624_v49 = vld [vmem:[%s5811_s0 + $0x2c] sm:$0xf] }
  0x1b   :  { %497 = vmatpush.bf16.msra.mxu1 %v3648_v25  ;;  %v3047_v50 = vld [vmem:[%s5811_s0 + $0x3c] sm:$0xf0]  ;;  %v3053_v51 = vld [vmem:[%s5811_s0 + $0x30] sm:$0xf]  ;;  %v3627_v52 = vld [vmem:[%s5811_s0 + $0x40] sm:$0xf0]  ;;  %v3046_v55 = vor.u32 %v3626_v48, %v3045_v47 }
  0x1c   :  { %526 = vmatpush.bf16.msra.mxu2 %v3656_v26  ;;  %v3625_v53 = vld [vmem:[%s5811_s0 + $0x34] sm:$0xf]  ;;  %v3055_v54 = vld [vmem:[%s5811_s0 + $0x44] sm:$0xf0]  ;;  %v3050_v56 = vor.u32 %v3624_v49, %v3047_v50  ;;  %v3054_v57 = vor.u32 %v3627_v52, %v3053_v51  ;;  %v3671_v59 = vld [vmem:[%s5812_s1 + $0x100] sm:$0xff] }
  0x1d   :  { %555 = vmatpush.bf16.msra.mxu3 %v3664_v27  ;;  %v3058_v58 = vor.u32 %v3625_v53, %v3055_v54  ;;  %v3065_v60 = vld [vmem:[%s5811_s0 + $0x50] sm:$0xf]  ;;  %v3631_v61 = vld [vmem:[%s5811_s0 + $0x60] sm:$0xf0]  ;;  %v3629_v62 = vld [vmem:[%s5811_s0 + $0x54] sm:$0xf] }
  0x1e   :  { %469 = vmatpush.bf16.msra.mxu0 %v3639_v28  ;;  %v3067_v63 = vld [vmem:[%s5811_s0 + $0x64] sm:$0xf0]  ;;  %v3073_v0 = vld [vmem:[%s5811_s0 + $0x58] sm:$0xf]  ;;  %v3632_v1 = vld [vmem:[%s5811_s0 + $0x68] sm:$0xf0]  ;;  %v3066_v4 = vor.u32 %v3631_v61, %v3065_v60 }
  0x1f   :  { %498 = vmatpush.bf16.msra.mxu1 %v3647_v29  ;;  %v3630_v2 = vld [vmem:[%s5811_s0 + $0x5c] sm:$0xf]  ;;  %v3075_v3 = vld [vmem:[%s5811_s0 + $0x6c] sm:$0xf0]  ;;  %v3070_v5 = vor.u32 %v3629_v62, %v3067_v63  ;;  %v3074_v6 = vor.u32 %v3632_v1, %v3073_v0  ;;  %v3085_v8 = vld [vmem:[%s5811_s0 + $0x78] sm:$0xf] }
  0x20   :  { %527 = vmatpush.bf16.msra.mxu2 %v3655_v30  ;;  %v3078_v7 = vor.u32 %v3630_v2, %v3075_v3  ;;  %v3636_v9 = vld [vmem:[%s5811_s0 + $0x88] sm:$0xf0]  ;;  %v3634_v10 = vld [vmem:[%s5811_s0 + $0x7c] sm:$0xf]  ;;  %v3087_v11 = vld [vmem:[%s5811_s0 + $0x8c] sm:$0xf0] }
  0x21   :  { %556 = vmatpush.bf16.msra.mxu3 %v3663_v31  ;;  %470 = vmatmul.bf16.vlgmr.msra.gmra.mxu0 %v3026_v41  ;;  %v3093_v12 = vld [vmem:[%s5811_s0 + $0x80] sm:$0xf]  ;;  %v3637_v13 = vld [vmem:[%s5811_s0 + $0x90] sm:$0xf0]  ;;  %v3635_v14 = vld [vmem:[%s5811_s0 + $0x84] sm:$0xf]  ;;  %v3086_v16 = vor.u32 %v3636_v9, %v3085_v8  ;;  %v3090_v17 = vor.u32 %v3634_v10, %v3087_v11 }
  0x22   :  { %582 = vmatpush.bf16.msrb.mxu0 %v3674_v40  ;;  %499 = vmatmul.bf16.vlgmr.msra.gmra.mxu1 %v3030_v42  ;;  %v3095_v15 = vld [vmem:[%s5811_s0 + $0x94] sm:$0xf0]  ;;  %v3094_v18 = vor.u32 %v3637_v13, %v3093_v12  ;;  %v3041_v20 = vld [vmem:[%s5811_s0 + $0x10] sm:$0xf]  ;;  %v3623_v21 = vld [vmem:[%s5811_s0 + $0x20] sm:$0xf0] }
  0x23   :  { %528 = vmatmul.bf16.vlgmr.msra.gmra.mxu2 %v3034_v43  ;;  %v3098_v19 = vor.u32 %v3635_v14, %v3095_v15  ;;  %v3042_v22 = vor.u32 %v3623_v21, %v3041_v20  ;;  %v3061_v23 = vld [vmem:[%s5811_s0 + $0x38] sm:$0xf]  ;;  %v3628_v24 = vld [vmem:[%s5811_s0 + $0x48] sm:$0xf0]  ;;  %v3081_v26 = vld [vmem:[%s5811_s0 + $0x60] sm:$0xf] }
  0x24   :  { %557 = vmatmul.bf16.vlgmr.msra.gmra.mxu3 %v3038_v44  ;;  %v3062_v25 = vor.u32 %v3628_v24, %v3061_v23  ;;  %v3633_v27 = vld [vmem:[%s5811_s0 + $0x70] sm:$0xf0]  ;;  %v3101_v29 = vld [vmem:[%s5811_s0 + $0x88] sm:$0xf]  ;;  %v3638_v30 = vld [vmem:[%s5811_s0 + $0x98] sm:$0xf0] }
  0x25   :  { %v3082_v28 = vor.u32 %v3633_v27, %v3081_v26  ;;  %v3102_v31 = vor.u32 %v3638_v30, %v3101_v29  ;;  %v3703_v37 = vld [vmem:[%s5814_s3 + $0xe4] sm:$0xf]  ;;  %v3367_v38 = vld [vmem:[%s5814_s3 + $0xf0] sm:$0xf0]  ;;  %v3373_v39 = vld [vmem:[%s5814_s3 + $0xe8] sm:$0xf] }
  0x26   :  { %583 = vmatpush.bf16.msrb.mxu0 %v3673_v45  ;;  %v3370_v40 = vor.u32 %v3703_v37, %v3367_v38  ;;  %v3706_v41 = vld [vmem:[%s5814_s3 + $0xf4] sm:$0xf0]  ;;  %v3365_v42 = vld [vmem:[%s5814_s3 + $0xe0] sm:$0xf]  ;;  %v3705_v43 = vld [vmem:[%s5814_s3 + $0xec] sm:$0xf0] }
  0x27   :  { %v3374_v44 = vor.u32 %v3706_v41, %v3373_v39  ;;  %v3366_v45 = vor.u32 %v3705_v43, %v3365_v42  ;;  %v3699_v48 = vld [vmem:[%s5814_s3 + $0xc4] sm:$0xf]  ;;  %v3351_v49 = vld [vmem:[%s5814_s3 + $0xd0] sm:$0xf0]  ;;  %v3357_v50 = vld [vmem:[%s5814_s3 + $0xc8] sm:$0xf] }
  0x28   :  { %838 = vmatpush.bf16.msrb.mxu2 %v3370_v40  ;;  %v3354_v52 = vor.u32 %v3699_v48, %v3351_v49  ;;  %v3702_v53 = vld [vmem:[%s5814_s3 + $0xd4] sm:$0xf0]  ;;  %v3349_v54 = vld [vmem:[%s5814_s3 + $0xc0] sm:$0xf]  ;;  %v3697_v62 = vld [vmem:[%s5814_s3 + $0xac] sm:$0xf0] }
  0x29   :  { %852 = vmatpush.bf16.msrb.mxu3 %v3374_v44  ;;  %824 = vmatpush.bf16.msrb.mxu1 %v3366_v45  ;;  %v3333_v61 = vld [vmem:[%s5814_s3 + $0xa0] sm:$0xf]  ;;  %v3695_v0 = vld [vmem:[%s5814_s3 + $0xa4] sm:$0xf]  ;;  %v3335_v1 = vld [vmem:[%s5814_s3 + $0xb0] sm:$0xf0] }
  0x2a   :  { %584 = vmatpush.bf16.msrb.mxu0 %v3672_v46  ;;  %v3334_v63 = vor.u32 %v3697_v62, %v3333_v61  ;;  %v3341_v2 = vld [vmem:[%s5814_s3 + $0xa8] sm:$0xf]  ;;  %v3693_v8 = vld [vmem:[%s5814_s3 + $0x8c] sm:$0xf0]  ;;  %v3301_v12 = vld [vmem:[%s5814_s3 + $0x60] sm:$0xf] }
  0x2b   :  { %v3689_v13 = vld [vmem:[%s5814_s3 + $0x6c] sm:$0xf0]  ;;  %v3694_v20 = vld [vmem:[%s5814_s3 + $0x94] sm:$0xf0]  ;;  %v3285_v23 = vld [vmem:[%s5814_s3 + $0x40] sm:$0xf] }
  0x2c   :  { %839 = vmatpush.bf16.msrb.mxu2 %v3354_v52  ;;  %v3302_v15 = vor.u32 %v3689_v13, %v3301_v12  ;;  %v3685_v24 = vld [vmem:[%s5814_s3 + $0x4c] sm:$0xf0]  ;;  %v3269_v27 = vld [vmem:[%s5814_s3 + $0x20] sm:$0xf]  ;;  %v3687_v29 = vld [vmem:[%s5814_s3 + $0x64] sm:$0xf] }
  0x2d   :  { %v3303_v37 = vld [vmem:[%s5814_s3 + $0x70] sm:$0xf0]  ;;  %v3309_v38 = vld [vmem:[%s5814_s3 + $0x68] sm:$0xf]  ;;  %v3690_v39 = vld [vmem:[%s5814_s3 + $0x74] sm:$0xf0] }
  0x2e   :  { %585 = vmatpush.bf16.msrb.mxu0 %v3671_v59  ;;  %v3306_v40 = vor.u32 %v3687_v29, %v3303_v37  ;;  %v3310_v41 = vor.u32 %v3690_v39, %v3309_v38  ;;  %v3253_v43 = vld [vmem:[%s5814_s3] sm:$0xf]  ;;  %v3677_v44 = vld [vmem:[%s5814_s3 + $0xc] sm:$0xf0]  ;;  %v3704_v48 = vld [vmem:[%s5814_s3 + $0xec] sm:$0xf] }
  0x2f   :  { %v3254_v45 = vor.u32 %v3677_v44, %v3253_v43  ;;  %v3375_v49 = vld [vmem:[%s5814_s3 + $0xf8] sm:$0xf0]  ;;  %v3293_v61 = vld [vmem:[%s5814_s3 + $0x48] sm:$0xf]  ;;  %v3679_v12 = vld [vmem:[%s5814_s3 + $0x24] sm:$0xf] }
  0x30   :  { %v3271_v13 = vld [vmem:[%s5814_s3 + $0x30] sm:$0xf0]  ;;  %v3678_v37 = vld [vmem:[%s5814_s3 + $0x14] sm:$0xf0]  ;;  %v3692_v38 = vld [vmem:[%s5814_s3 + $0x8c] sm:$0xf] }
  0x31   :  { %475 = vmatmul.bf16.gmra.mxu0 %v3046_v55  ;;  %v3701_v55 = vld [vmem:[%s5814_s3 + $0xcc] sm:$0xf0]  ;;  %v3255_v29 = vld [vmem:[%s5814_s3 + $0x10] sm:$0xf0]  ;;  %v3327_v39 = vld [vmem:[%s5814_s3 + $0x98] sm:$0xf0] }
  0x32   :  { %504 = vmatmul.bf16.gmra.mxu1 %v3050_v56  ;;  %v3358_v56 = vor.u32 %v3702_v53, %v3357_v50  ;;  %v3378_v53 = vor.u32 %v3704_v48, %v3375_v49  ;;  %v3493_v43 = vld [vmem:[%s5815_s4 + $0xe0] sm:$0xf]  ;;  %v3737_v44 = vld [vmem:[%s5815_s4 + $0xec] sm:$0xf0]  ;;  %v3735_v49 = vld [vmem:[%s5815_s4 + $0xe4] sm:$0xf] }
  0x33   :  { %533 = vmatmul.bf16.gmra.mxu2 %v3054_v57  ;;  %v3350_v57 = vor.u32 %v3701_v55, %v3349_v54  ;;  %v4572_v48 = vor.u32 %v3737_v44, %v3493_v43  ;;  %v3723_v43 = vld [vmem:[%s5815_s4 + $0x84] sm:$0xf] }
  0x34   :  { %562 = vmatmul.bf16.gmra.mxu3 %v3058_v58 }
  0x35   :  { %853 = vmatpush.bf16.msrb.mxu3 %v3358_v56  ;;  %825 = vmatpush.bf16.msrb.mxu1 %v3350_v57  ;;  %v3683_v56 = vld [vmem:[%s5814_s3 + $0x44] sm:$0xf]  ;;  %v3287_v57 = vld [vmem:[%s5814_s3 + $0x50] sm:$0xf0] }
  0x36   :  { %v3290_v62 = vor.u32 %v3683_v56, %v3287_v57  ;;  %v3730_v56 = vld [vmem:[%s5815_s4 + $0xb4] sm:$0xf0]  ;;  %v3688_v57 = vld [vmem:[%s5814_s3 + $0x6c] sm:$0xf] }
  0x39   :  { %826 = vmatpush.bf16.msrb.mxu1 %v3334_v63 }
  0x41   :  { %480 = vmatmul.bf16.gmra.mxu0 %v3066_v4  ;;  %v3338_v4 = vor.u32 %v3695_v0, %v3335_v1 }
  0x42   :  { %509 = vmatmul.bf16.gmra.mxu1 %v3070_v5  ;;  %v3698_v5 = vld [vmem:[%s5814_s3 + $0xb4] sm:$0xf0] }
  0x43   :  { %538 = vmatmul.bf16.gmra.mxu2 %v3074_v6  ;;  %v3342_v6 = vor.u32 %v3698_v5, %v3341_v2  ;;  %v3738_v5 = vld [vmem:[%s5815_s4 + $0xf4] sm:$0xf0] }
  0x44   :  { %567 = vmatmul.bf16.gmra.mxu3 %v3078_v7  ;;  %840 = vmatpush.bf16.msrb.mxu2 %v3338_v4  ;;  %v3317_v7 = vld [vmem:[%s5814_s3 + $0x80] sm:$0xf]  ;;  %v3501_v4 = vld [vmem:[%s5815_s4 + $0xe8] sm:$0xf] }
  0x45   :  { %854 = vmatpush.bf16.msrb.mxu3 %v3342_v6  ;;  %v3318_v9 = vor.u32 %v3693_v8, %v3317_v7  ;;  %v4505_v7 = vor.u32 %v3738_v5, %v3501_v4  ;;  %v3479_v4 = vld [vmem:[%s5815_s4 + $0xd0] sm:$0xf0]  ;;  %v3453_v5 = vld [vmem:[%s5815_s4 + $0x88] sm:$0xf] }
  0x47   :  { %827 = vmatpush.bf16.msrb.mxu1 %v3318_v9  ;;  %1098 = vmatpush.bf16.msra.mxu0 %v4505_v7 }
  0x4b   :  { %828 = vmatpush.bf16.msrb.mxu1 %v3302_v15 }
  0x51   :  { %485 = vmatmul.bf16.gmra.mxu0 %v3086_v16  ;;  %v3691_v16 = vld [vmem:[%s5814_s3 + $0x84] sm:$0xf] }
  0x52   :  { %514 = vmatmul.bf16.gmra.mxu1 %v3090_v17  ;;  %v3319_v17 = vld [vmem:[%s5814_s3 + $0x90] sm:$0xf0] }
  0x53   :  { %543 = vmatmul.bf16.gmra.mxu2 %v3094_v18  ;;  %v3325_v18 = vld [vmem:[%s5814_s3 + $0x88] sm:$0xf] }
  0x54   :  { %572 = vmatmul.bf16.gmra.mxu3 %v3098_v19  ;;  %v3322_v19 = vor.u32 %v3691_v16, %v3319_v17  ;;  %v3326_v21 = vor.u32 %v3694_v20, %v3325_v18  ;;  %v3274_v16 = vor.u32 %v3679_v12, %v3271_v13  ;;  %v3696_v17 = vld [vmem:[%s5814_s3 + $0xac] sm:$0xf]  ;;  %v3343_v18 = vld [vmem:[%s5814_s3 + $0xb8] sm:$0xf0] }
  0x55   :  { %v3684_v13 = vld [vmem:[%s5814_s3 + $0x4c] sm:$0xf] }
  0x56   :  { %841 = vmatpush.bf16.msrb.mxu2 %v3322_v19  ;;  %855 = vmatpush.bf16.msrb.mxu3 %v3326_v21 }
  0x5a   :  { %842 = vmatpush.bf16.msrb.mxu2 %v3306_v40  ;;  %856 = vmatpush.bf16.msrb.mxu3 %v3310_v41  ;;  %v3330_v41 = vor.u32 %v3692_v38, %v3327_v39 }
  0x5e   :  { %843 = vmatpush.bf16.msrb.mxu2 %v3290_v62 }
  0x61   :  { %3247 = vmatmul.msk.bf16.vlgmr.msrb.gmra.mxu0 %vm449_vm0, %v3042_v22 }
  0x62   :  { %844 = vmatpush.bf16.msrb.mxu2 %v3274_v16 }
  0x71   :  { %3248 = vmatmul.msk.bf16.gmra.mxu0 %vm449_vm0, %v3062_v25  ;;  %v3286_v25 = vor.u32 %v3685_v24, %v3285_v23  ;;  %v3485_v23 = vld [vmem:[%s5815_s4 + $0xc8] sm:$0xf]  ;;  %v3734_v24 = vld [vmem:[%s5815_s4 + $0xd4] sm:$0xf0] }
  0x73   :  { %829 = vmatpush.bf16.msrb.mxu1 %v3286_v25 }
  0x81   :  { %3249 = vmatmul.msk.bf16.gmra.mxu0 %vm449_vm0, %v3082_v28  ;;  %v3681_v28 = vld [vmem:[%s5814_s3 + $0x2c] sm:$0xf0] }
  0x91   :  { %3250 = vmatmul.msk.bf16.gmra.mxu0 %vm449_vm0, %v3102_v31  ;;  %v3270_v31 = vor.u32 %v3681_v28, %v3269_v27  ;;  %v4541_v27 = vor.u32 %v3734_v24, %v3485_v23  ;;  %v3675_v28 = vld [vmem:[%s5814_s3 + $0x4] sm:$0xf]  ;;  %v3437_v23 = vld [vmem:[%s5815_s4 + $0x68] sm:$0xf]  ;;  %v3722_v24 = vld [vmem:[%s5815_s4 + $0x74] sm:$0xf0] }
  0x93   :  { %830 = vmatpush.bf16.msrb.mxu1 %v3270_v31  ;;  %1099 = vmatpush.bf16.msra.mxu0 %v4541_v27  ;;  %v3258_v31 = vor.u32 %v3675_v28, %v3255_v29  ;;  %v4660_v29 = vor.u32 %v3722_v24, %v3437_v23  ;;  %v3717_v23 = vld [vmem:[%s5815_s4 + $0x4c] sm:$0xf0]  ;;  %v3715_v24 = vld [vmem:[%s5815_s4 + $0x44] sm:$0xf] }
  0x95   :  { %845 = vmatpush.bf16.msrb.mxu2 %v3258_v31  ;;  %v3279_v31 = vld [vmem:[%s5814_s3 + $0x38] sm:$0xf0] }
  0x97   :  { %831 = vmatpush.bf16.msrb.mxu1 %v3254_v45 }
  0x99   :  { %1072 = vmatpush.bf16.msra.mxu2 %v4572_v48 }
  0x9b   :  { %866 = vmatpush.bf16.msra.mxu1 %v3378_v53  ;;  %v3495_v53 = vld [vmem:[%s5815_s4 + $0xf0] sm:$0xf0] }
  0x9e   :  { %v4327_v32 = vpop.f32.mrf.mxu0 }
  0x9f   :  { %v4355_v46 = vpop.f32.mrf.mxu1 }
  0xa0   :  { %v501_v54 = vadd.f32 %v4355_v46, %v4327_v32  ;;  %v3686_v32 = vld [vmem:[%s5814_s3 + $0x54] sm:$0xf0]  ;;  %v3359_v46 = vld [vmem:[%s5814_s3 + $0xd8] sm:$0xf0] }
  0xa1   :  { %v3294_v1 = vor.u32 %v3686_v32, %v3293_v61  ;;  %v3311_v61 = vld [vmem:[%s5814_s3 + $0x78] sm:$0xf0] }
  0xa3   :  { %857 = vmatpush.bf16.msrb.mxu3 %v3294_v1 }
  0xa6   :  { %v4329_v33 = vpop.f32.mrf.mxu0  ;;  %v4368_v51 = vpop.f32.mrf.mxu2 }
  0xa7   :  { %v4379_v58 = vpop.f32.mrf.mxu3  ;;  %v4383_v60 = vpop.f32.mrf.mxu1  ;;  %v530_v63 = vadd.f32 %v4368_v51, %v501_v54  ;;  %v3469_v54 = vld [vmem:[%s5815_s4 + $0xa8] sm:$0xf] }
  0xa8   :  { %v4597_v32 = vor.u32 %v3730_v56, %v3469_v54  ;;  %v3718_v54 = vld [vmem:[%s5815_s4 + $0x54] sm:$0xf0] }
  0xa9   :  { %v559_v51 = vadd.f32 %v4379_v58, %v530_v63  ;;  %v3682_v58 = vld [vmem:[%s5814_s3 + $0x34] sm:$0xf0]  ;;  %v3733_v63 = vld [vmem:[%s5815_s4 + $0xcc] sm:$0xf0] }
  0xaa   :  { %1100 = vmatpush.bf16.msra.mxu0 %v4597_v32 }
  0xae   :  { %v4331_v34 = vpop.f32.mrf.mxu0  ;;  %v4400_v3 = vpop.f32.mrf.mxu2 }
  0xaf   :  { %v4411_v10 = vpop.f32.mrf.mxu3  ;;  %v505_v14 = vpop.f32.mrf.mxu1 }
  0xb0   :  { %v506_v55 = vadd.f32 %v505_v14, %v4331_v34  ;;  %v3700_v34 = vld [vmem:[%s5814_s3 + $0xcc] sm:$0xf]  ;;  %v3277_v14 = vld [vmem:[%s5814_s3 + $0x28] sm:$0xf] }
  0xb1   :  { %v3362_v2 = vor.u32 %v3700_v34, %v3359_v46  ;;  %v3278_v21 = vor.u32 %v3682_v58, %v3277_v14  ;;  %v3314_v34 = vor.u32 %v3688_v57, %v3311_v61  ;;  %v3477_v46 = vld [vmem:[%s5815_s4 + $0xc0] sm:$0xf]  ;;  %v3295_v14 = vld [vmem:[%s5814_s3 + $0x58] sm:$0xf0] }
  0xb2   :  { %v3298_v16 = vor.u32 %v3684_v13, %v3295_v14  ;;  %v3461_v58 = vld [vmem:[%s5815_s4 + $0xa0] sm:$0xf]  ;;  %v3431_v13 = vld [vmem:[%s5815_s4 + $0x70] sm:$0xf0]  ;;  %v3405_v14 = vld [vmem:[%s5815_s4 + $0x28] sm:$0xf] }
  0xb3   :  { %867 = vmatpush.bf16.msra.mxu1 %v3362_v2  ;;  %858 = vmatpush.bf16.msrb.mxu3 %v3278_v21  ;;  %v4611_v2 = vor.u32 %v3733_v63, %v3477_v46  ;;  %v3263_v46 = vld [vmem:[%s5814_s3 + $0x18] sm:$0xf0] }
  0xb5   :  { %1073 = vmatpush.bf16.msra.mxu2 %v4611_v2 }
  0xb6   :  { %v4333_v35 = vpop.f32.mrf.mxu0  ;;  %v534_v22 = vpop.f32.mrf.mxu2 }
  0xb7   :  { %v563_v30 = vpop.f32.mrf.mxu3  ;;  %v4457_v42 = vpop.f32.mrf.mxu1  ;;  %v535_v0 = vadd.f32 %v534_v22, %v506_v55  ;;  %v3346_v22 = vor.u32 %v3696_v17, %v3343_v18  ;;  %v4583_v55 = vor.u32 %v3735_v49, %v3495_v53  ;;  %v3729_v17 = vld [vmem:[%s5815_s4 + $0xac] sm:$0xf0]  ;;  %v3727_v18 = vld [vmem:[%s5815_s4 + $0xa4] sm:$0xf]  ;;  %v3447_v49 = vld [vmem:[%s5815_s4 + $0x90] sm:$0xf0] }
  0xb8   :  { %v4646_v21 = vor.u32 %v3729_v17, %v3461_v58  ;;  %v3421_v53 = vld [vmem:[%s5815_s4 + $0x48] sm:$0xf]  ;;  %v4695_v56 = vor.u32 %v3723_v43, %v3447_v49 }
  0xb9   :  { %v564_v8 = vadd.f32 %v563_v30, %v535_v0  ;;  %868 = vmatpush.bf16.msra.mxu1 %v3346_v22  ;;  %v3261_v30 = vld [vmem:[%s5814_s3 + $0x8] sm:$0xf]  ;;  %v3731_v0 = vld [vmem:[%s5815_s4 + $0xc4] sm:$0xf]  ;;  %v3463_v22 = vld [vmem:[%s5815_s4 + $0xb0] sm:$0xf0]  ;;  %v4697_v57 = vor.u32 %v3718_v54, %v3421_v53 }
  0xba   :  { %v3262_v40 = vor.u32 %v3678_v37, %v3261_v30  ;;  %v4658_v28 = vor.u32 %v3727_v18, %v3463_v22  ;;  %v3680_v30 = vld [vmem:[%s5814_s3 + $0x2c] sm:$0xf]  ;;  %1074 = vmatpush.bf16.msra.mxu2 %v4646_v21  ;;  %v3413_v22 = vld [vmem:[%s5815_s4 + $0x40] sm:$0xf] }
  0xbb   :  { %v3282_v39 = vor.u32 %v3680_v30, %v3279_v31  ;;  %v3415_v30 = vld [vmem:[%s5815_s4 + $0x50] sm:$0xf0] }
  0xbc   :  { %859 = vmatpush.bf16.msrb.mxu3 %v3262_v40  ;;  %v3445_v40 = vld [vmem:[%s5815_s4 + $0x80] sm:$0xf]  ;;  %v4759_v53 = vor.u32 %v3715_v24, %v3415_v30 }
  0xbd   :  { %869 = vmatpush.bf16.msra.mxu1 %v3330_v41  ;;  %v3725_v41 = vld [vmem:[%s5815_s4 + $0x8c] sm:$0xf0] }
  0xbe   :  { %v4335_v36 = vpop.f32.mrf.mxu0  ;;  %v4471_v50 = vpop.f32.mrf.mxu2  ;;  %v4683_v44 = vor.u32 %v3725_v41, %v3445_v40  ;;  %v3389_v40 = vld [vmem:[%s5815_s4 + $0x8] sm:$0xf]  ;;  %v3710_v41 = vld [vmem:[%s5815_s4 + $0x14] sm:$0xf0] }
  0xbf   :  { %v4503_v6 = vpop.f32.mrf.mxu3  ;;  %v4509_v9 = vpop.f32.mrf.mxu1 }
  0xc0   :  { %1085 = vmatpush.bf16.msra.mxu3 %v4583_v55  ;;  %1075 = vmatpush.bf16.msra.mxu2 %v4683_v44  ;;  %v511_v43 = vadd.f32 %v4509_v9, %v4335_v36  ;;  %v3711_v9 = vld [vmem:[%s5815_s4 + $0x24] sm:$0xf] }
  0xc1   :  { %870 = vmatpush.bf16.msra.mxu1 %v3314_v34  ;;  %v3676_v34 = vld [vmem:[%s5814_s3 + $0xc] sm:$0xf] }
  0xc2   :  { %v3266_v63 = vor.u32 %v3676_v34, %v3263_v46  ;;  %v4762_v34 = vor.u32 %v3710_v41, %v3389_v40  ;;  %v3397_v46 = vld [vmem:[%s5815_s4 + $0x20] sm:$0xf] }
  0xc4   :  { %5853 = vst [vmem:[#allocation6_spill] sm:$0xff] %v4762_v34 }
  0xc5   :  { %871 = vmatpush.bf16.msra.mxu1 %v3298_v16  ;;  %v3714_v16 = vld [vmem:[%s5815_s4 + $0x34] sm:$0xf0] }
  0xc6   :  { %v4357_v47 = vpop.f32.mrf.mxu0  ;;  %v4539_v25 = vpop.f32.mrf.mxu2  ;;  %v4730_v18 = vor.u32 %v3714_v16, %v3405_v14  ;;  %v3709_v14 = vld [vmem:[%s5815_s4 + $0xc] sm:$0xf0]  ;;  %v3707_v16 = vld [vmem:[%s5815_s4 + $0x4] sm:$0xf] }
  0xc7   :  { %v4570_v45 = vpop.f32.mrf.mxu3  ;;  %v4608_v1 = vpop.f32.mrf.mxu1  ;;  %v540_v36 = vadd.f32 %v4539_v25, %v511_v43  ;;  %v508_v25 = vadd.f32 %v4457_v42, %v4333_v35  ;;  %v3383_v42 = vld [vmem:[%s5815_s4 + $0x10] sm:$0xf0]  ;;  %v4042_v43 = vmov 0  }
  0xc8   :  { %5852 = vst [vmem:[#allocation5_spill] sm:$0xff] %v4730_v18  ;;  %v513_v24 = vadd.f32 %v4608_v1, %v4357_v47 }
  0xc9   :  { %872 = vmatpush.bf16.msra.mxu1 %v3282_v39  ;;  %v4747_v39 = vor.u32 %v3717_v23, %v3413_v22  ;;  %v569_v22 = vadd.f32 %v4570_v45, %v540_v36  ;;  %v537_v23 = vadd.f32 %v4471_v50, %v508_v25  ;;  %v4812_v50 = vor.u32 %v3707_v16, %v3383_v42  ;;  %v3732_v16 = vld [vmem:[%s5815_s4 + $0xcc] sm:$0xf]  ;;  %v3471_v42 = vld [vmem:[%s5815_s4 + $0xb8] sm:$0xf0] }
  0xcb   :  { %5856 = vst [vmem:[#allocation9_spill] sm:$0xff] %v4812_v50 }
  0xcd   :  { %873 = vmatpush.bf16.msra.mxu1 %v3266_v63  ;;  %v3713_v63 = vld [vmem:[%s5815_s4 + $0x2c] sm:$0xf0] }
  0xce   :  { %v4381_v59 = vpop.f32.mrf.mxu0 }
  0xcf   :  { %v4668_v37 = vpop.f32.mrf.mxu3  ;;  %v515_v61 = vpop.f32.mrf.mxu1 }
  0xd0   :  { %v516_v49 = vadd.f32 %v515_v61, %v4381_v59  ;;  %v3399_v61 = vld [vmem:[%s5815_s4 + $0x30] sm:$0xf0] }
  0xd6   :  { %v4413_v11 = vpop.f32.mrf.mxu0 }
  0xd7   :  { %v573_v54 = vpop.f32.mrf.mxu3 }
  0xde   :  { %v587_v26 = vpop.f32.mrf.mxu0 }
  0xdf   :  { %v4529_v19 = vadd.f32 %v587_v26, %v559_v51  ;;  %v3726_v51 = vld [vmem:[%s5815_s4 + $0x94] sm:$0xf0] }
  0xe0   :  { %v4625_v12 = vor.u32 %v3726_v51, %v3453_v5  ;;  %v3719_v5 = vld [vmem:[%s5815_s4 + $0x64] sm:$0xf] }
  0xe1   :  { %v4728_v17 = vor.u32 %v3719_v5, %v3431_v13  ;;  %v4781_v5 = vor.u32 %v3711_v9, %v3399_v61  ;;  %v3381_v13 = vld [vmem:[%s5815_s4] sm:$0xf] }
  0xe2   :  { %1101 = vmatpush.bf16.msra.mxu0 %v4625_v12 }
  0xe3   :  { %5854 = vst [vmem:[#allocation7_spill] sm:$0xff] %v4781_v5 }
  0xe6   :  { %v4473_v52 = vpop.f32.mrf.mxu0  ;;  %1102 = vmatpush.bf16.msra.mxu0 %v4660_v29 }
  0xea   :  { %1103 = vmatpush.bf16.msra.mxu0 %v4697_v57 }
  0xee   :  { %v592_v15 = vpop.f32.mrf.mxu0  ;;  %1104 = vmatpush.bf16.msra.mxu0 %v4730_v18 }
  0xef   :  { %v4531_v20 = vadd.f32 %v592_v15, %v564_v8  ;;  %v4623_v8 = vor.u32 %v3731_v0, %v3479_v4  ;;  %v4633_v15 = vpop.f32.mrf.mxu2  ;;  %v3429_v0 = vld [vmem:[%s5815_s4 + $0x60] sm:$0xf]  ;;  %v3721_v4 = vld [vmem:[%s5815_s4 + $0x6c] sm:$0xf0] }
  0xf0   :  { %v4716_v51 = vor.u32 %v3721_v4, %v3429_v0  ;;  %v4778_v0 = vor.u32 %v3713_v63, %v3397_v46  ;;  %v517_v4 = vpop.f32.mrf.mxu1 }
  0xf1   :  { %v607_v26 = vmax.f32 %v4529_v19, %v4531_v20  ;;  %1086 = vmatpush.bf16.msra.mxu3 %v4623_v8  ;;  %v518_v30 = vadd.f32 %v517_v4, %v4413_v11  ;;  %v542_v11 = vadd.f32 %v4633_v15, %v513_v24  ;;  %v3757_v19 = vld [vmem:[%s5813_s2] ss:$0 sm:$0xff]  ;;  %v3724_v24 = vld [vmem:[%s5815_s4 + $0x8c] sm:$0xf] }
  0xf2   :  { %1076 = vmatpush.bf16.msra.mxu2 %v4716_v51  ;;  %1105 = vmatpush.bf16.msra.mxu0 %v4762_v34 }
  0xf5   :  { %1087 = vmatpush.bf16.msra.mxu3 %v4658_v28  ;;  %1106 = vmatmul.bf16.vlgmr.msra.gmra.mxu0 %v4042_v43 }
  0xf6   :  { %v4594_v62 = vpop.f32.mrf.mxu0  ;;  %1077 = vmatpush.bf16.msra.mxu2 %v4747_v39  ;;  %1311 = vmatpush.bf16.msrb.mxu0 %v4505_v7 }
  0xf7   :  { %v544_v58 = vpop.f32.mrf.mxu2 }
  0xf8   :  { %v545_v59 = vadd.f32 %v544_v58, %v516_v49  ;;  %v503_v58 = vadd.f32 %v4383_v60, %v4329_v33  ;;  %v4807_v33 = vor.u32 %v3709_v14, %v3381_v13 }
  0xf9   :  { %1088 = vmatpush.bf16.msra.mxu3 %v4695_v56 }
  0xfa   :  { %v574_v35 = vadd.f32 %v573_v54, %v545_v59  ;;  %1078 = vmatpush.bf16.msra.mxu2 %v4778_v0  ;;  %5855 = vst [vmem:[#allocation8_spill] sm:$0xff] %v4807_v33  ;;  %v532_v47 = vadd.f32 %v4400_v3, %v503_v58  ;;  %1312 = vmatpush.bf16.msrb.mxu0 %v4541_v27  ;;  %v575_v54 = vpop.f32.mrf.mxu3  ;;  %v3487_v58 = vld [vmem:[%s5815_s4 + $0xd8] sm:$0xf0] }
  0xfb   :  { %v571_v3 = vadd.f32 %v4668_v37, %v542_v11  ;;  %v3423_v11 = vld [vmem:[%s5815_s4 + $0x58] sm:$0xf0] }
  0xfc   :  { %v561_v63 = vadd.f32 %v4411_v10, %v532_v47  ;;  %v3716_v47 = vld [vmem:[%s5815_s4 + $0x4c] sm:$0xf] }
  0xfd   :  { %1089 = vmatpush.bf16.msra.mxu3 %v4728_v17 }
  0xfe   :  { %v4670_v38 = vpop.f32.mrf.mxu0  ;;  %1079 = vmatpush.bf16.msra.mxu2 %v4807_v33  ;;  %1313 = vmatpush.bf16.msrb.mxu0 %v4597_v32  ;;  %v590_v9 = vadd.f32 %v4473_v52, %v561_v63  ;;  %v3503_v52 = vld [vmem:[%s5815_s4 + $0xf8] sm:$0xf0] }
  0xff   :  { %v546_v40 = vpop.f32.mrf.mxu2  ;;  %v598_v60 = vadd.f32 %v4670_v38, %v569_v22  ;;  %v566_v38 = vadd.f32 %v4503_v6, %v537_v23  ;;  %v4850_v22 = vor.u32 %v3732_v16, %v3487_v58  ;;  %v3391_v63 = vld [vmem:[%s5815_s4 + $0x18] sm:$0xf0] }
 0x100   :  { %v547_v1 = vadd.f32 %v546_v40, %v518_v30  ;;  %v3455_v30 = vld [vmem:[%s5815_s4 + $0x98] sm:$0xf0] }
 0x101   :  { %1090 = vmatpush.bf16.msra.mxu3 %v4759_v53  ;;  %v595_v36 = vadd.f32 %v4594_v62, %v566_v38  ;;  %v3736_v62 = vld [vmem:[%s5815_s4 + $0xec] sm:$0xf]  ;;  %v4875_v40 = vor.u32 %v3724_v24, %v3455_v30 }
 0x102   :  { %v576_v15 = vadd.f32 %v575_v54, %v547_v1  ;;  %1314 = vmatpush.bf16.msrb.mxu0 %v4625_v12  ;;  %v4840_v13 = vor.u32 %v3736_v62, %v3503_v52  ;;  %v4900_v1 = vor.u32 %v3716_v47, %v3423_v11  ;;  %v3407_v54 = vld [vmem:[%s5815_s4 + $0x38] sm:$0xf0] }
 0x105   :  { %1091 = vmatpush.bf16.msra.mxu3 %v4781_v5 }
 0x106   :  { %v4744_v31 = vpop.f32.mrf.mxu0  ;;  %1315 = vmatpush.bf16.msrb.mxu0 %v4660_v29 }
 0x107   :  { %v600_v6 = vadd.f32 %v4744_v31, %v571_v3 }
 0x109   :  { %1092 = vmatpush.bf16.msra.mxu3 %v4812_v50 }
 0x10a   :  { %1316 = vmatpush.bf16.msrb.mxu0 %v4697_v57 }
 0x10e   :  { %v602_v41 = vpop.f32.mrf.mxu0  ;;  %1317 = vmatpush.bf16.msrb.mxu0 %v4730_v18 }
 0x10f   :  { %v603_v45 = vadd.f32 %v602_v41, %v574_v35  ;;  %v3728_v35 = vld [vmem:[%s5815_s4 + $0xac] sm:$0xf] }
 0x110   :  { %v4862_v23 = vor.u32 %v3728_v35, %v3471_v42  ;;  %v3720_v41 = vld [vmem:[%s5815_s4 + $0x6c] sm:$0xf] }
 0x111   :  { %v609_v49 = vmax.f32 %v598_v60, %v603_v45  ;;  %v3439_v60 = vld [vmem:[%s5815_s4 + $0x78] sm:$0xf0] }
 0x112   :  { %1318 = vmatpush.bf16.msrb.mxu0 %v4762_v34  ;;  %v4887_v45 = vor.u32 %v3720_v41, %v3439_v60 }
 0x113   :  { %v611_v46 = vmax.f32 %v607_v26, %v609_v49  ;;  %v608_v26 = vmax.f32 %v590_v9, %v595_v36  ;;  %v3712_v49 = vld [vmem:[%s5815_s4 + $0x2c] sm:$0xf] }
 0x114   :  { %v4912_v38 = vor.u32 %v3712_v49, %v3407_v54 }
 0x115   :  { %v617_v10 = vadd.f32 %v3757_v19, %v611_v46  ;;  %v3708_v46 = vld [vmem:[%s5815_s4 + $0xc] sm:$0xf] }
 0x116   :  { %v604_v59 = vpop.f32.mrf.mxu0  ;;  %1529 = vmatpush.bf16.msra.mxu0 %v4505_v7  ;;  %5857 = vst [vmem:[#allocation10_spill] sm:$0xff] %v4912_v38  ;;  %v4924_v3 = vor.u32 %v3708_v46, %v3391_v63 }
 0x117   :  { %v605_v20 = vadd.f32 %v604_v59, %v576_v15  ;;  %v619_v31 = vmax.f32 %v617_v10, 0.0 }
 0x118   :  { %5858 = vst [vmem:[#allocation11_spill] sm:$0xff] %v4924_v3 }
 0x119   :  { %v610_v61 = vmax.f32 %v600_v6, %v605_v20 }
 0x11a   :  { %1530 = vmatpush.bf16.msra.mxu0 %v4541_v27 }
 0x11b   :  { %v612_v37 = vmax.f32 %v608_v26, %v610_v61 }
 0x11d   :  { %v618_v4 = vadd.f32 %v3757_v19, %v612_v37  ;;  %v654_v19 = vld [vmem:[%s5816_s5] sm:$0xf] }
 0x11e   :  { %1531 = vmatpush.bf16.msra.mxu0 %v4597_v32  ;;  %v656_v10 = vperm.slane %v654_v19, 0  ;;  %v657_v37 = vperm.slane %v654_v19, 1  ;;  %v658_v11 = vperm.slane %v654_v19, 2  ;;  %v659_v54 = vperm.slane %v654_v19, 3 }
 0x11f   :  { %v620_v25 = vmax.f32 %v618_v4, 0.0 }
 0x121   :  { %v621_v14 = vpack.c.bf16 %v620_v25, %v619_v31 }
 0x122   :  { %1532 = vmatpush.bf16.msra.mxu0 %v4625_v12 }
 0x123   :  { %832 = vmatmul.bf16.vlgmr.msrb.gmra.mxu1 %v621_v14  ;;  %846 = vmatmul.bf16.vlgmr.msrb.gmra.mxu2 %v621_v14 }
 0x124   :  { %860 = vmatmul.bf16.vlgmr.msrb.gmra.mxu3 %v621_v14  ;;  %1111 = vmatpush.bf16.msrb.mxu1 %v4840_v13 }
 0x125   :  { %1285 = vmatpush.bf16.msrb.mxu2 %v4572_v48  ;;  %1298 = vmatpush.bf16.msrb.mxu3 %v4583_v55 }
 0x126   :  { %1533 = vmatpush.bf16.msra.mxu0 %v4660_v29 }
 0x128   :  { %1112 = vmatpush.bf16.msrb.mxu1 %v4850_v22 }
 0x129   :  { %1286 = vmatpush.bf16.msrb.mxu2 %v4611_v2  ;;  %1299 = vmatpush.bf16.msrb.mxu3 %v4623_v8 }
 0x12a   :  { %1534 = vmatpush.bf16.msra.mxu0 %v4697_v57 }
 0x12c   :  { %1113 = vmatpush.bf16.msrb.mxu1 %v4862_v23 }
 0x12d   :  { %1287 = vmatpush.bf16.msrb.mxu2 %v4646_v21  ;;  %1300 = vmatpush.bf16.msrb.mxu3 %v4658_v28 }
 0x12e   :  { %1535 = vmatpush.bf16.msra.mxu0 %v4730_v18 }
 0x130   :  { %1114 = vmatpush.bf16.msrb.mxu1 %v4875_v40 }
 0x131   :  { %1288 = vmatpush.bf16.msrb.mxu2 %v4683_v44  ;;  %1301 = vmatpush.bf16.msrb.mxu3 %v4695_v56 }
 0x132   :  { %1536 = vmatpush.bf16.msra.mxu0 %v4762_v34 }
 0x133   :  { %874 = vmatmul.bf16.vlgmr.msra.gmra.mxu1 %v621_v14  ;;  %1080 = vmatmul.bf16.vlgmr.msra.gmra.mxu2 %v4042_v43 }
 0x134   :  { %1093 = vmatmul.bf16.vlgmr.msra.gmra.mxu3 %v4042_v43  ;;  %1115 = vmatpush.bf16.msrb.mxu1 %v4887_v45 }
 0x135   :  { %1289 = vmatpush.bf16.msrb.mxu2 %v4716_v51  ;;  %1302 = vmatpush.bf16.msrb.mxu3 %v4728_v17 }
 0x138   :  { %1116 = vmatpush.bf16.msrb.mxu1 %v4900_v1 }
 0x139   :  { %1290 = vmatpush.bf16.msrb.mxu2 %v4747_v39  ;;  %1303 = vmatpush.bf16.msrb.mxu3 %v4759_v53 }
 0x13c   :  { %1117 = vmatpush.bf16.msrb.mxu1 %v4912_v38 }
 0x13d   :  { %1291 = vmatpush.bf16.msrb.mxu2 %v4778_v0  ;;  %1304 = vmatpush.bf16.msrb.mxu3 %v4781_v5 }
 0x140   :  { %1118 = vmatpush.bf16.msrb.mxu1 %v4924_v3 }
 0x141   :  { %1292 = vmatpush.bf16.msrb.mxu2 %v4807_v33  ;;  %1305 = vmatpush.bf16.msrb.mxu3 %v4812_v50 }
 0x143   :  { %1119 = vmatmul.bf16.vlgmr.msrb.gmra.mxu1 %v4042_v43 }
 0x144   :  { %1324 = vmatpush.bf16.msra.mxu1 %v4840_v13 }
 0x145   :  { %1503 = vmatpush.bf16.msra.mxu2 %v4572_v48  ;;  %1516 = vmatpush.bf16.msra.mxu3 %v4583_v55 }
 0x148   :  { %1325 = vmatpush.bf16.msra.mxu1 %v4850_v22 }
 0x149   :  { %1504 = vmatpush.bf16.msra.mxu2 %v4611_v2  ;;  %1517 = vmatpush.bf16.msra.mxu3 %v4623_v8 }
 0x14c   :  { %1326 = vmatpush.bf16.msra.mxu1 %v4862_v23 }
 0x14d   :  { %1505 = vmatpush.bf16.msra.mxu2 %v4646_v21  ;;  %1518 = vmatpush.bf16.msra.mxu3 %v4658_v28 }
 0x150   :  { %1327 = vmatpush.bf16.msra.mxu1 %v4875_v40 }
 0x151   :  { %1506 = vmatpush.bf16.msra.mxu2 %v4683_v44  ;;  %1519 = vmatpush.bf16.msra.mxu3 %v4695_v56 }
 0x154   :  { %1328 = vmatpush.bf16.msra.mxu1 %v4887_v45 }
 0x155   :  { %1507 = vmatpush.bf16.msra.mxu2 %v4716_v51  ;;  %1520 = vmatpush.bf16.msra.mxu3 %v4728_v17 }
 0x158   :  { %1329 = vmatpush.bf16.msra.mxu1 %v4900_v1 }
 0x159   :  { %1508 = vmatpush.bf16.msra.mxu2 %v4747_v39  ;;  %1521 = vmatpush.bf16.msra.mxu3 %v4759_v53 }
 0x15c   :  { %1330 = vmatpush.bf16.msra.mxu1 %v4912_v38 }
 0x15d   :  { %1509 = vmatpush.bf16.msra.mxu2 %v4778_v0  ;;  %1522 = vmatpush.bf16.msra.mxu3 %v4781_v5 }
 0x160   :  { %1331 = vmatpush.bf16.msra.mxu1 %v4924_v3 }
 0x161   :  { %1510 = vmatpush.bf16.msra.mxu2 %v4807_v33  ;;  %1523 = vmatpush.bf16.msra.mxu3 %v4812_v50 }
 0x164   :  { %1542 = vmatpush.bf16.msrb.mxu1 %v4840_v13 }
 0x168   :  { %1543 = vmatpush.bf16.msrb.mxu1 %v4850_v22 }
 0x16c   :  { %1544 = vmatpush.bf16.msrb.mxu1 %v4862_v23 }
 0x170   :  { %1545 = vmatpush.bf16.msrb.mxu1 %v4875_v40 }
 0x172   :  { %v1107_v43 = vpop.f32.mrf.mxu0 }
 0x174   :  { %1546 = vmatpush.bf16.msrb.mxu1 %v4887_v45 }
 0x178   :  { %1547 = vmatpush.bf16.msrb.mxu1 %v4900_v1 }
 0x17a   :  { %v1109_v15 = vpop.f32.mrf.mxu0 }
 0x17c   :  { %1548 = vmatpush.bf16.msrb.mxu1 %v4912_v38 }
 0x180   :  { %1549 = vmatpush.bf16.msrb.mxu1 %v4924_v3 }
 0x1a0   :  { %v833_v36 = vpop.f32.mrf.mxu1 }
 0x1a1   :  { %v4971_v4 = vadd.f32 %v833_v36, %v656_v10 }
 0x1a3   :  { %5859 = vst [vmem:[#allocation12_spill] sm:$0xff] %v4971_v4 }
 0x1a6   :  { %v847_v59 = vpop.f32.mrf.mxu2 }
 0x1a7   :  { %v861_v9 = vpop.f32.mrf.mxu3  ;;  %v4973_v62 = vadd.f32 %v847_v59, %v657_v37 }
 0x1a8   :  { %v835_v6 = vpop.f32.mrf.mxu1  ;;  %v4983_v15 = vadd.f32 %v861_v9, %v658_v11 }
 0x1a9   :  { %5860 = vst [vmem:[#allocation13_spill] sm:$0xff] %v4973_v62  ;;  %v4975_v31 = vadd.f32 %v835_v6, %v656_v10  ;;  %v1130_v10 = vrot.slane %v1107_v43, 1 }
 0x1aa   :  { %5863 = vst [vmem:[#allocation16_spill] sm:$0xff] %v4983_v15 }
 0x1ab   :  { %5861 = vst [vmem:[#allocation14_spill] sm:$0xff] %v4975_v31 }
 0x1ae   :  { %v849_v20 = vpop.f32.mrf.mxu2 }
 0x1af   :  { %v863_v26 = vpop.f32.mrf.mxu3  ;;  %v4978_v58 = vadd.f32 %v849_v20, %v657_v37 }
 0x1b0   :  { %v875_v61 = vpop.f32.mrf.mxu1  ;;  %v4987_v37 = vadd.f32 %v863_v26, %v658_v11 }
 0x1b1   :  { %5862 = vst [vmem:[#allocation15_spill] sm:$0xff] %v4978_v58  ;;  %v4985_v59 = vadd.f32 %v875_v61, %v659_v54 }
 0x1b2   :  { %5865 = vst [vmem:[#allocation18_spill] sm:$0xff] %v4987_v37 }
 0x1b3   :  { %5864 = vst [vmem:[#allocation17_spill] sm:$0xff] %v4985_v59 }
 0x1b6   :  { %v1081_v52 = vpop.f32.mrf.mxu2 }
 0x1b7   :  { %v1128_v25 = vrot.slane %v1081_v52, 1  ;;  %v1140_v14 = vadd.f32 %v1081_v52, %v4971_v4  ;;  %v1094_v16 = vpop.f32.mrf.mxu3 }
 0x1b8   :  { %v1129_v35 = vrot.slane %v1094_v16, 1  ;;  %v1141_v42 = vadd.f32 %v1094_v16, %v4973_v62  ;;  %v877_v24 = vpop.f32.mrf.mxu1 }
 0x1b9   :  { %v1144_v30 = vadd.f32 %v1128_v25, %v4975_v31  ;;  %v3507_v41 = vmul.f32 -1.442695, %v1140_v14  ;;  %v4995_v61 = vadd.f32 %v877_v24, %v659_v54 }
 0x1ba   :  { %v1145_v60 = vadd.f32 %v1129_v35, %v4978_v58  ;;  %v3509_v47 = vmul.f32 -1.442695, %v1141_v42  ;;  %v1142_v35 = vadd.f32 %v1107_v43, %v4983_v15 }
 0x1bb   :  { %3760 = vpow2.f32 %v3507_v41  ;;  %v3508_v49 = vmul.f32 -1.442695, %v1144_v30  ;;  %5866 = vst [vmem:[#allocation19_spill] sm:$0xff] %v4995_v61  ;;  %v1146_v41 = vadd.f32 %v1130_v10, %v4987_v37 }
 0x1bc   :  { %3762 = vpow2.f32 %v3509_v47  ;;  %v3510_v46 = vmul.f32 -1.442695, %v1145_v60 }
 0x1bd   :  { %3764 = vpow2.f32 %v3508_v49 }
 0x1be   :  { %3766 = vpow2.f32 %v3510_v46  ;;  %v1083_v63 = vpop.f32.mrf.mxu2 }
 0x1bf   :  { %v1096_v36 = vpop.f32.mrf.mxu3 }
 0x1c0   :  { %v1120_v6 = vpop.f32.mrf.mxu1 }
 0x1c1   :  { %v3761_v20 = vpop.eup %3760  ;;  %v1131_v14 = vrot.slane %v1120_v6, 1  ;;  %v1143_v19 = vadd.f32 %v1120_v6, %v4985_v59 }
 0x1c2   :  { %v3763_v52 = vpop.eup %3762  ;;  %v1154_v25 = vadd.f32 1.0, %v3761_v20 }
 0x1c3   :  { %v3765_v16 = vpop.eup %3764  ;;  %v4991_v42 = vadd.f32 1.0, %v3763_v52  ;;  %v1147_v60 = vadd.f32 %v1131_v14, %v4995_v61  ;;  %v3511_v47 = vmul.f32 -1.442695, %v1143_v19 }
 0x1c4   :  { %v3767_v9 = vpop.eup %3766  ;;  %v4993_v30 = vadd.f32 1.0, %v3765_v16  ;;  %3768 = vrcp.f32 %v1154_v25  ;;  %v1165_v43 = vand.u32 2147483647, %v1154_v25  ;;  %v1167_v11 = vand.u32 2147483648, %v1154_v25 }
 0x1c5   :  { %v4998_v26 = vadd.f32 1.0, %v3767_v9  ;;  %3770 = vrcp.f32 %v4991_v42  ;;  %vm1161_vm1 = vweird.f32 %v1154_v25  ;;  %v3512_v46 = vmul.f32 -1.442695, %v1147_v60 }
 0x1c6   :  { %3772 = vrcp.f32 %v4993_v30  ;;  %v1180_v54 = vand.u32 2147483647, %v4993_v30  ;;  %vm5005_vm2 = vcmp.eq.f32.partialorder %v1165_v43, 8.507059e+37  ;;  %vm1176_vm3 = vweird.f32 %v4993_v30 }
 0x1c7   :  { %3774 = vtanh.f32 %v1142_v35  ;;  %vm1199_vm4 = vweird.f32 %v4991_v42  ;;  %v1168_v10 = vor.u32 1.1754944e-38, %v1167_v11  ;;  %v1182_v52 = vand.u32 2147483648, %v4993_v30 }
 0x1c8   :  { %3776 = vrcp.f32 %v4998_v26  ;;  %v1122_v49 = vpop.f32.mrf.mxu1  ;;  %v1203_v9 = vand.u32 2147483647, %v4991_v42  ;;  %vm5016_vm5 = vcmp.eq.f32.partialorder %v1180_v54, 8.507059e+37  ;;  %vm1214_vm6 = vweird.f32 %v4998_v26 }
 0x1c9   :  { %3778 = vtanh.f32 %v1146_v41  ;;  %v1205_v41 = vand.u32 2147483648, %v4991_v42  ;;  %v1218_v11 = vand.u32 2147483647, %v4998_v26  ;;  %v1183_v62 = vor.u32 1.1754944e-38, %v1182_v52 }
 0x1ca   :  { %v3769_v24 = vpop.eup %3768  ;;  %3780 = vpow2.f32 %v3511_v47  ;;  %vm1204_vm14 = vcmp.eq.f32.partialorder %v1203_v9, 8.507059e+37 }
 0x1cb   :  { %v3771_v63 = vpop.eup %3770  ;;  %v1157_v36 = vmul.f32 %v3769_v24, %v1154_v25  ;;  %3782 = vpow2.f32 %v3512_v46  ;;  %vm1162_vm7 = vweird.f32 %v3769_v24  ;;  %v1206_v3 = vor.u32 1.1754944e-38, %v1205_v41 }
 0x1cc   :  { %v3773_v20 = vpop.eup %3772  ;;  %v1195_v14 = vmul.f32 %v3771_v63, %v4991_v42  ;;  %vm1200_vm9 = vweird.f32 %v3771_v63  ;;  %vm1163_vm10 = vmor %vm1161_vm1, %vm1162_vm7  ;;  %vm1219_vm0 = vcmp.eq.f32.partialorder %v1218_v11, 8.507059e+37 }
 0x1cd   :  { %v3775_v19 = vpop.eup %3774  ;;  %v1158_v16 = vsub.f32 1.0, %v1157_v36  ;;  %v1172_v35 = vmul.f32 %v3773_v20, %v4993_v30  ;;  %vm1177_vm8 = vweird.f32 %v3773_v20  ;;  %vm1201_vm12 = vmor %vm1199_vm4, %vm1200_vm9  ;;  %vm1281_vm9 = vcmask 1041409  }
 0x1ce   :  { %v3777_v60 = vpop.eup %3776  ;;  %v1196_v43 = vsub.f32 1.0, %v1195_v14  ;;  %vm1178_vm13 = vmor %vm1176_vm3, %vm1177_vm8 }
 0x1cf   :  { %v3779_v49 = vpop.eup %3778  ;;  %v1159_v46 = vmul.f32 %v3769_v24, %v1158_v16  ;;  %v1173_v36 = vsub.f32 1.0, %v1172_v35  ;;  %v1210_v15 = vmul.f32 %v3777_v60, %v4998_v26  ;;  %vm1215_vm11 = vweird.f32 %v3777_v60 }
 0x1d0   :  { %v3781_v37 = vpop.eup %3780  ;;  %v1197_v4 = vmul.f32 %v3771_v63, %v1196_v43  ;;  %v1220_v16 = vand.u32 2147483648, %v4998_v26  ;;  %vm1216_vm15 = vmor %vm1214_vm6, %vm1215_vm11 }
 0x1d1   :  { %v1160_v54 = vadd.f32 %v3769_v24, %v1159_v46  ;;  %v1174_v58 = vmul.f32 %v3773_v20, %v1173_v36  ;;  %v1211_v31 = vsub.f32 1.0, %v1210_v15  ;;  %v1232_v59 = vadd.f32 1.0, %v3781_v37  ;;  %v3783_v14 = vpop.eup %3782 }
 0x1d2   :  { %v1198_v61 = vadd.f32 %v3771_v63, %v1197_v4  ;;  %v1233_v43 = vadd.f32 1.0, %v3783_v14 }
 0x1d3   :  { %v1164_v35 = vsel %vm1163_vm10, %v3769_v24, %v1160_v54  ;;  %v1175_v34 = vadd.f32 %v3773_v20, %v1174_v58  ;;  %v1212_v52 = vmul.f32 %v3777_v60, %v1211_v31  ;;  %3784 = vrcp.f32 %v1232_v59 }
 0x1d4   :  { %v1169_v46 = vsel %vm5005_vm2, %v1168_v10, %v1164_v35  ;;  %v1202_v15 = vsel %vm1201_vm12, %v3771_v63, %v1198_v61  ;;  %v1221_v31 = vor.u32 1.1754944e-38, %v1220_v16  ;;  %3786 = vrcp.f32 %v1233_v43 }
 0x1d5   :  { %v1179_v4 = vsel %vm1178_vm13, %v3773_v20, %v1175_v34  ;;  %v1266_v37 = vmul.f32 %v3775_v19, %v1169_v46  ;;  %v1207_v25 = vsel %vm1204_vm14, %v1206_v3, %v1202_v15  ;;  %v1213_v24 = vadd.f32 %v3777_v60, %v1212_v52 }
 0x1d6   :  { %v1184_v58 = vsel %vm5016_vm5, %v1183_v62, %v1179_v4  ;;  %v1264_v42 = vmul.f32 0.0, %v1207_v25  ;;  %v1245_v9 = vand.u32 2147483648, %v1232_v59  ;;  %v1243_v47 = vand.u32 2147483647, %v1232_v59 }
 0x1d7   :  { %v1267_v6 = vmul.f32 %v3779_v49, %v1184_v58  ;;  %v1217_v30 = vsel %vm1216_vm15, %v3777_v60, %v1213_v24  ;;  %vm1239_vm2 = vweird.f32 %v1232_v59  ;;  %v1260_v11 = vand.u32 2147483648, %v1233_v43 }
 0x1d8   :  { %v1222_v61 = vsel %vm1219_vm0, %v1221_v31, %v1217_v30  ;;  %v5037_v63 = vadd.f32 %v1266_v37, %v1264_v42  ;;  %v1258_v54 = vand.u32 2147483647, %v1233_v43  ;;  %v1246_v16 = vor.u32 1.1754944e-38, %v1245_v9 }
 0x1d9   :  { %v1265_v34 = vmul.f32 0.0, %v1222_v61  ;;  %v3785_v20 = vpop.eup %3784  ;;  %vm1254_vm5 = vweird.f32 %v1233_v43  ;;  %vm1244_vm6 = vcmp.eq.f32.partialorder %v1243_v47, 8.507059e+37  ;;  %v1261_v4 = vor.u32 1.1754944e-38, %v1260_v11 }
 0x1da   :  { %v1235_v3 = vmul.f32 %v3785_v20, %v1232_v59  ;;  %v3787_v19 = vpop.eup %3786  ;;  %3788 = vtanh.f32 %v5037_v63  ;;  %vm1240_vm1 = vweird.f32 %v3785_v20  ;;  %vm1259_vm8 = vcmp.eq.f32.partialorder %v1258_v54, 8.507059e+37 }
 0x1db   :  { %v5039_v10 = vadd.f32 %v1267_v6, %v1265_v34  ;;  %v1250_v26 = vmul.f32 %v3787_v19, %v1233_v43  ;;  %vm1255_vm3 = vweird.f32 %v3787_v19  ;;  %vm1241_vm4 = vmor %vm1239_vm2, %vm1240_vm1  ;;  %v5871_v34 = vld [vmem:[#allocation6_spill] sm:$0xff] }
 0x1dc   :  { %v1236_v62 = vsub.f32 1.0, %v1235_v3  ;;  %vm1256_vm7 = vmor %vm1254_vm5, %vm1255_vm3 }
 0x1dd   :  { %3790 = vtanh.f32 %v5039_v10  ;;  %v1251_v60 = vsub.f32 1.0, %v1250_v26  ;;  %v5873_v26 = vld [vmem:[#allocation19_spill] sm:$0xff] }
 0x1de   :  { %v1237_v41 = vmul.f32 %v3785_v20, %v1236_v62 }
 0x1df   :  { %v1252_v49 = vmul.f32 %v3787_v19, %v1251_v60 }
 0x1e0   :  { %v1238_v36 = vadd.f32 %v3785_v20, %v1237_v41  ;;  %v3789_v14 = vpop.eup %3788  ;;  %v5874_v41 = vld [vmem:[#allocation17_spill] sm:$0xff] }
 0x1e1   :  { %v1253_v52 = vadd.f32 %v3787_v19, %v1252_v49 }
 0x1e2   :  { %v1242_v35 = vsel %vm1241_vm4, %v3785_v20, %v1238_v36  ;;  %v5872_v20 = vld [vmem:[#allocation11_spill] sm:$0xff] }
 0x1e3   :  { %v3791_v46 = vpop.eup %3790  ;;  %v1247_v15 = vsel %vm1244_vm6, %v1246_v16, %v1242_v35  ;;  %v1257_v37 = vsel %vm1256_vm7, %v3787_v19, %v1253_v52  ;;  %v5876_v52 = vld [vmem:[#allocation15_spill] sm:$0xff] }
 0x1e4   :  { %v1272_v25 = vmul.f32 %v3789_v14, %v1247_v15  ;;  %v1262_v59 = vsel %vm1259_vm8, %v1261_v4, %v1257_v37  ;;  %v5875_v14 = vld [vmem:[#allocation14_spill] sm:$0xff]  ;;  %v5877_v15 = vld [vmem:[#allocation12_spill] sm:$0xff] }
 0x1e5   :  { %v1273_v24 = vmul.f32 %v3791_v46, %v1262_v59 }
 0x1e6   :  { %v1274_v58 = vpack.c.bf16 %v1272_v25, %v1272_v25  ;;  %v5878_v25 = vld [vmem:[#allocation13_spill] sm:$0xff] }
 0x1e7   :  { %v1275_v31 = vpack.c.bf16 %v1273_v24, %v1273_v24 }
 0x1e8   :  { %v1278_v6 = vunpack.c.l.b16 %v1274_v58 }
 0x1e9   :  { %v1279_v42 = vunpack.c.l.b16 %v1275_v31 }
 0x1eb   :  { %v1280_v30 = vrot.slane %v1279_v42, 7 }
 0x1ed   :  { %v1282_v43 = vsel %vm1281_vm9, %v1280_v30, %v1278_v6 }
 0x1ee   :  { %v1283_v61 = vpack.c.b16 %v1282_v43, %v1282_v43 }
 0x1f0   :  { %1293 = vmatmul.bf16.vlgmr.msrb.gmra.mxu2 %v1283_v61  ;;  %1306 = vmatmul.bf16.vlgmr.msrb.gmra.mxu3 %v1283_v61 }
 0x1f1   :  { %1319 = vmatmul.bf16.vlgmr.msrb.gmra.mxu0 %v1283_v61  ;;  %1332 = vmatmul.bf16.vlgmr.msra.gmra.mxu1 %v1283_v61 }
 0x1f2   :  { %1726 = vmatpush.bf16.msrb.mxu2 %v4572_v48  ;;  %1739 = vmatpush.bf16.msrb.mxu3 %v4583_v55 }
 0x1f3   :  { %1752 = vmatpush.bf16.msrb.mxu0 %v4505_v7  ;;  %1765 = vmatpush.bf16.msra.mxu1 %v4840_v13 }
 0x1f6   :  { %1727 = vmatpush.bf16.msrb.mxu2 %v4611_v2  ;;  %1740 = vmatpush.bf16.msrb.mxu3 %v4623_v8 }
 0x1f7   :  { %1753 = vmatpush.bf16.msrb.mxu0 %v4541_v27  ;;  %1766 = vmatpush.bf16.msra.mxu1 %v4850_v22 }
 0x1fa   :  { %1728 = vmatpush.bf16.msrb.mxu2 %v4646_v21  ;;  %1741 = vmatpush.bf16.msrb.mxu3 %v4658_v28 }
 0x1fb   :  { %1754 = vmatpush.bf16.msrb.mxu0 %v4597_v32  ;;  %1767 = vmatpush.bf16.msra.mxu1 %v4862_v23 }
 0x1fe   :  { %1729 = vmatpush.bf16.msrb.mxu2 %v4683_v44  ;;  %1742 = vmatpush.bf16.msrb.mxu3 %v4695_v56 }
 0x1ff   :  { %1755 = vmatpush.bf16.msrb.mxu0 %v4625_v12  ;;  %1768 = vmatpush.bf16.msra.mxu1 %v4875_v40 }
 0x202   :  { %1730 = vmatpush.bf16.msrb.mxu2 %v4716_v51  ;;  %1743 = vmatpush.bf16.msrb.mxu3 %v4728_v17 }
 0x203   :  { %1756 = vmatpush.bf16.msrb.mxu0 %v4660_v29  ;;  %1769 = vmatpush.bf16.msra.mxu1 %v4887_v45 }
 0x206   :  { %1731 = vmatpush.bf16.msrb.mxu2 %v4747_v39  ;;  %1744 = vmatpush.bf16.msrb.mxu3 %v4759_v53 }
 0x207   :  { %1757 = vmatpush.bf16.msrb.mxu0 %v4697_v57  ;;  %1770 = vmatpush.bf16.msra.mxu1 %v4900_v1 }
 0x20a   :  { %1732 = vmatpush.bf16.msrb.mxu2 %v4778_v0  ;;  %1745 = vmatpush.bf16.msrb.mxu3 %v4781_v5 }
 0x20b   :  { %1758 = vmatpush.bf16.msrb.mxu0 %v4730_v18  ;;  %1771 = vmatpush.bf16.msra.mxu1 %v4912_v38 }
 0x20e   :  { %1733 = vmatpush.bf16.msrb.mxu2 %v4807_v33  ;;  %1746 = vmatpush.bf16.msrb.mxu3 %v4812_v50 }
 0x20f   :  { %1759 = vmatpush.bf16.msrb.mxu0 %v5871_v34  ;;  %1772 = vmatpush.bf16.msra.mxu1 %v5872_v20 }
 0x26e   :  { %v1320_v3 = vpop.f32.mrf.mxu0  ;;  %v1333_v19 = vpop.f32.mrf.mxu1 }
 0x26f   :  { %v1344_v62 = vrot.slane %v1333_v19, 7  ;;  %v1360_v9 = vadd.f32 %v1333_v19, %v5873_v26 }
 0x271   :  { %v1356_v60 = vadd.f32 %v1344_v62, %v5874_v41  ;;  %v3518_v47 = vmul.f32 -1.442695, %v1360_v9 }
 0x273   :  { %v3517_v11 = vmul.f32 -1.442695, %v1356_v60  ;;  %v1294_v49 = vpop.f32.mrf.mxu2  ;;  %v1307_v36 = vpop.f32.mrf.mxu3  ;;  %3792 = vpow2.f32 %v3518_v47 }
 0x274   :  { %v1341_v54 = vrot.slane %v1294_v49, 7  ;;  %v1357_v16 = vadd.f32 %v1294_v49, %v5875_v14  ;;  %v1342_v35 = vrot.slane %v1307_v36, 7  ;;  %v1358_v46 = vadd.f32 %v1307_v36, %v5876_v52 }
 0x275   :  { %3794 = vpow2.f32 %v3517_v11  ;;  %v1343_v36 = vrot.slane %v1320_v3, 7 }
 0x276   :  { %v1353_v4 = vadd.f32 %v1341_v54, %v5877_v15  ;;  %v3514_v37 = vmul.f32 -1.442695, %v1357_v16  ;;  %v1354_v59 = vadd.f32 %v1342_v35, %v5878_v25  ;;  %v1322_v24 = vpop.f32.mrf.mxu0  ;;  %v1335_v58 = vpop.f32.mrf.mxu1  ;;  %v3516_v31 = vmul.f32 -1.442695, %v1358_v46 }
 0x277   :  { %v5880_v24 = vld [vmem:[#allocation16_spill] sm:$0xff] }
 0x278   :  { %v3513_v42 = vmul.f32 -1.442695, %v1353_v4  ;;  %3796 = vpow2.f32 %v3514_v37  ;;  %v3515_v6 = vmul.f32 -1.442695, %v1354_v59  ;;  %v5879_v4 = vld [vmem:[#allocation18_spill] sm:$0xff]  ;;  %v1355_v58 = vadd.f32 %v1343_v36, %v5880_v24 }
 0x279   :  { %3798 = vpow2.f32 %v3516_v31  ;;  %v3793_v30 = vpop.eup %3792  ;;  %v1359_v37 = vadd.f32 %v1320_v3, %v5879_v4  ;;  %v1480_v3 = vrot.slane %v5039_v10, 7 }
 0x27a   :  { %3800 = vpow2.f32 %v3513_v42  ;;  %v5082_v61 = vadd.f32 1.0, %v3793_v30 }
 0x27b   :  { %v3795_v43 = vpop.eup %3794  ;;  %3802 = vpow2.f32 %v3515_v6  ;;  %v1296_v19 = vpop.f32.mrf.mxu2 }
 0x27c   :  { %v1309_v62 = vpop.f32.mrf.mxu3  ;;  %v5084_v9 = vadd.f32 1.0, %v3795_v43  ;;  %3804 = vrcp.f32 %v5082_v61 }
 0x27e   :  { %v3797_v60 = vpop.eup %3796  ;;  %3806 = vrcp.f32 %v5084_v9 }
 0x27f   :  { %v3799_v47 = vpop.eup %3798  ;;  %v1368_v11 = vadd.f32 1.0, %v3797_v60 }
 0x280   :  { %v3801_v49 = vpop.eup %3800  ;;  %v5088_v54 = vadd.f32 1.0, %v3799_v47 }
 0x281   :  { %v3803_v16 = vpop.eup %3802  ;;  %v1367_v35 = vadd.f32 1.0, %v3801_v49  ;;  %3808 = vrcp.f32 %v1368_v11  ;;  %v1393_v31 = vand.u32 2147483647, %v1368_v11  ;;  %v1395_v42 = vand.u32 2147483648, %v1368_v11 }
 0x282   :  { %v5090_v46 = vadd.f32 1.0, %v3803_v16  ;;  %3810 = vrcp.f32 %v5088_v54  ;;  %v5094_v59 = vpop.eup %3804  ;;  %vm1389_vm10 = vweird.f32 %v1368_v11  ;;  %vm1427_vm11 = vweird.f32 %v5088_v54 }
 0x283   :  { %3812 = vrcp.f32 %v1367_v35  ;;  %v1378_v30 = vand.u32 2147483647, %v1367_v35  ;;  %v1463_v19 = vmul.f32 %v5094_v59, %v5082_v61  ;;  %v1380_v62 = vand.u32 2147483648, %v1367_v35 }
 0x284   :  { %3814 = vrcp.f32 %v5090_v46  ;;  %v5098_v6 = vpop.eup %3806  ;;  %vm1374_vm12 = vweird.f32 %v1367_v35  ;;  %vm5104_vm13 = vcmp.eq.f32.partialorder %v1393_v31, 8.507059e+37  ;;  %v1396_v16 = vor.u32 1.1754944e-38, %v1395_v42 }
 0x285   :  { %3816 = vtanh.f32 %v1359_v37  ;;  %v1448_v4 = vmul.f32 %v5098_v6, %v5084_v9  ;;  %vm5111_vm14 = vcmp.eq.f32.partialorder %v1378_v30, 8.507059e+37  ;;  %v1464_v25 = vsub.f32 1.0, %v1463_v19 }
 0x286   :  { %3818 = vtanh.f32 %v1355_v58  ;;  %v1381_v14 = vor.u32 1.1754944e-38, %v1380_v62  ;;  %v1433_v31 = vand.u32 2147483648, %v5088_v54  ;;  %vm1412_vm0 = vweird.f32 %v5090_v46 }
 0x287   :  { %v3809_v43 = vpop.eup %3808  ;;  %v1431_v30 = vand.u32 2147483647, %v5088_v54 }
 0x288   :  { %v3811_v60 = vpop.eup %3810  ;;  %v1385_v47 = vmul.f32 %v3809_v43, %v1368_v11  ;;  %vm1390_vm15 = vweird.f32 %v3809_v43  ;;  %v1434_v33 = vor.u32 1.1754944e-38, %v1433_v31 }
 0x289   :  { %v3813_v49 = vpop.eup %3812  ;;  %v1423_v37 = vmul.f32 %v3811_v60, %v5088_v54  ;;  %vm1428_vm1 = vweird.f32 %v3811_v60  ;;  %vm1391_vm3 = vmor %vm1389_vm10, %vm1390_vm15  ;;  %vm1432_vm7 = vcmp.eq.f32.partialorder %v1431_v30, 8.507059e+37  ;;  %vm1452_vm15 = vweird.f32 %v5084_v9 }
 0x28a   :  { %v1370_v24 = vmul.f32 %v3813_v49, %v1367_v35  ;;  %v1386_v58 = vsub.f32 1.0, %v1385_v47  ;;  %v3815_v52 = vpop.eup %3814  ;;  %vm1375_vm2 = vweird.f32 %v3813_v49  ;;  %vm1429_vm5 = vmor %vm1427_vm11, %vm1428_vm1  ;;  %vm1468_vm11 = vweird.f32 %v5094_v59 }
 0x28b   :  { %v1424_v15 = vsub.f32 1.0, %v1423_v37  ;;  %v1408_v42 = vmul.f32 %v3815_v52, %v5090_v46  ;;  %v3817_v20 = vpop.eup %3816  ;;  %v1418_v37 = vand.u32 2147483648, %v5090_v46  ;;  %vm1413_vm4 = vweird.f32 %v3815_v52  ;;  %vm1376_vm6 = vmor %vm1374_vm12, %vm1375_vm2 }
 0x28c   :  { %v1371_v26 = vsub.f32 1.0, %v1370_v24  ;;  %v1387_v41 = vmul.f32 %v3809_v43, %v1386_v58  ;;  %v3819_v50 = vpop.eup %3818  ;;  %v1416_v24 = vand.u32 2147483647, %v5090_v46  ;;  %vm1414_vm8 = vmor %vm1412_vm0, %vm1413_vm4  ;;  %vm1467_vm12 = vweird.f32 %v5082_v61 }
 0x28d   :  { %v1425_v34 = vmul.f32 %v3811_v60, %v1424_v15  ;;  %v1409_v62 = vsub.f32 1.0, %v1408_v42  ;;  %v1419_v54 = vor.u32 1.1754944e-38, %v1418_v37 }
 0x28e   :  { %v1372_v47 = vmul.f32 %v3813_v49, %v1371_v26  ;;  %v1388_v19 = vadd.f32 %v3809_v43, %v1387_v41  ;;  %v1449_v26 = vsub.f32 1.0, %v1448_v4  ;;  %v1479_v4 = vrot.slane %v5037_v63, 7 }
 0x28f   :  { %v1426_v58 = vadd.f32 %v3811_v60, %v1425_v34  ;;  %v1410_v5 = vmul.f32 %v3815_v52, %v1409_v62  ;;  %vm1417_vm10 = vcmp.eq.f32.partialorder %v1416_v24, 8.507059e+37  ;;  %v1471_v63 = vand.u32 2147483647, %v5082_v61 }
 0x290   :  { %v1373_v38 = vadd.f32 %v3813_v49, %v1372_v47  ;;  %v1392_v18 = vsel %vm1391_vm3, %v3809_v43, %v1388_v19  ;;  %v1465_v43 = vmul.f32 %v5094_v59, %v1464_v25  ;;  %v1473_v25 = vand.u32 2147483648, %v5082_v61 }
 0x291   :  { %v1397_v41 = vsel %vm5104_vm13, %v1396_v16, %v1392_v18  ;;  %v1430_v15 = vsel %vm1429_vm5, %v3811_v60, %v1426_v58  ;;  %v1411_v34 = vadd.f32 %v3815_v52, %v1410_v5  ;;  %vm1453_vm13 = vweird.f32 %v5098_v6 }
 0x292   :  { %v1377_v11 = vsel %vm1376_vm6, %v3813_v49, %v1373_v38  ;;  %v1486_v42 = vmul.f32 %v3817_v20, %v1397_v41  ;;  %v1435_v31 = vsel %vm1432_vm7, %v1434_v33, %v1430_v15  ;;  %v1450_v38 = vmul.f32 %v5098_v6, %v1449_v26  ;;  %vm1454_vm0 = vmor %vm1452_vm15, %vm1453_vm13 }
 0x293   :  { %v1382_v47 = vsel %vm5111_vm14, %v1381_v14, %v1377_v11  ;;  %v1484_v35 = vmul.f32 %v1480_v3, %v1435_v31  ;;  %v1415_v18 = vsel %vm1414_vm8, %v3815_v52, %v1411_v34  ;;  %v1466_v14 = vadd.f32 %v5094_v59, %v1465_v43  ;;  %vm1469_vm14 = vmor %vm1467_vm12, %vm1468_vm11  ;;  %v5887_v34 = vld [vmem:[#allocation10_spill] sm:$0xff]  ;;  %v5888_v31 = vld [vmem:[#allocation8_spill] sm:$0xff] }
 0x294   :  { %v1485_v36 = vmul.f32 %v3819_v50, %v1382_v47  ;;  %v1420_v20 = vsel %vm1417_vm10, %v1419_v54, %v1415_v18  ;;  %v1451_v50 = vadd.f32 %v5098_v6, %v1450_v38  ;;  %v1458_v52 = vand.u32 2147483648, %v5084_v9  ;;  %v5889_v43 = vld [vmem:[#allocation9_spill] sm:$0xff]  ;;  %v5890_v47 = vld [vmem:[#allocation6_spill] sm:$0xff]  ;;  %v5891_v54 = vld [vmem:[#allocation11_spill] sm:$0xff] }
 0x295   :  { %v5135_v5 = vadd.f32 %v1486_v42, %v1484_v35  ;;  %v1483_v33 = vmul.f32 %v1479_v4, %v1420_v20  ;;  %v1456_v3 = vand.u32 2147483647, %v5084_v9  ;;  %v1470_v60 = vsel %vm1469_vm14, %v5094_v59, %v1466_v14  ;;  %v5886_v42 = vld [vmem:[#allocation5_spill] sm:$0xff] }
 0x296   :  { %v1474_v49 = vor.u32 1.1754944e-38, %v1473_v25  ;;  %v1455_v10 = vsel %vm1454_vm0, %v5098_v6, %v1451_v50  ;;  %vm1472_vm1 = vcmp.eq.f32.partialorder %v1471_v63, 8.507059e+37  ;;  %v1459_v30 = vor.u32 1.1754944e-38, %v1458_v52  ;;  %v5885_v6 = vld [vmem:[#allocation7_spill] sm:$0xff]  ;;  %v5892_v38 = vld [vmem:[#allocation17_spill] sm:$0xff] }
 0x297   :  { %3820 = vtanh.f32 %v5135_v5  ;;  %v5141_v46 = vadd.f32 %v1485_v36, %v1483_v33  ;;  %vm1457_vm2 = vcmp.eq.f32.partialorder %v1456_v3, 8.507059e+37  ;;  %v5893_v33 = vld [vmem:[#allocation19_spill] sm:$0xff] }
 0x298   :  { %v1475_v19 = vsel %vm1472_vm1, %v1474_v49, %v1470_v60  ;;  %v1460_v24 = vsel %vm1457_vm2, %v1459_v30, %v1455_v10  ;;  %v5894_v10 = vld [vmem:[#allocation12_spill] sm:$0xff] }
 0x299   :  { %3822 = vtanh.f32 %v5141_v46 }
 0x29d   :  { %v3821_v16 = vpop.eup %3820 }
 0x29e   :  { %v1492_v61 = vmul.f32 %v3821_v16, %v1475_v19  ;;  %v5895_v19 = vld [vmem:[#allocation14_spill] sm:$0xff] }
 0x29f   :  { %v3823_v62 = vpop.eup %3822 }
 0x2a0   :  { %v1491_v37 = vmul.f32 %v3823_v62, %v1460_v24  ;;  %v1494_v26 = vpack.c.bf16 %v1492_v61, %v1492_v61  ;;  %v5896_v62 = vld [vmem:[#allocation13_spill] sm:$0xff] }
 0x2a2   :  { %v1493_v58 = vpack.c.bf16 %v1491_v37, %v1491_v37  ;;  %v1498_v15 = vunpack.c.l.b16 %v1494_v26  ;;  %v5897_v26 = vld [vmem:[#allocation15_spill] sm:$0xff] }
 0x2a4   :  { %v1497_v41 = vunpack.c.l.b16 %v1493_v58 }
 0x2a6   :  { %v1499_v9 = vrot.slane %v1497_v41, 1 }
 0x2a8   :  { %v1500_v59 = vsel %vm1281_vm9, %v1498_v15, %v1499_v9 }
 0x2a9   :  { %v1501_v11 = vpack.c.b16 %v1500_v59, %v1500_v59 }
 0x2ab   :  { %1511 = vmatmul.bf16.vlgmr.msra.gmra.mxu2 %v1501_v11  ;;  %1524 = vmatmul.bf16.vlgmr.msra.gmra.mxu3 %v1501_v11 }
 0x2ac   :  { %1537 = vmatmul.bf16.vlgmr.msra.gmra.mxu0 %v1501_v11  ;;  %1550 = vmatmul.bf16.vlgmr.msrb.gmra.mxu1 %v1501_v11 }
 0x2ad   :  { %1949 = vmatpush.bf16.msra.mxu2 %v4572_v48  ;;  %1962 = vmatpush.bf16.msra.mxu3 %v4583_v55 }
 0x2ae   :  { %1975 = vmatpush.bf16.msra.mxu0 %v4505_v7  ;;  %1988 = vmatpush.bf16.msrb.mxu1 %v4840_v13 }
 0x2b1   :  { %1950 = vmatpush.bf16.msra.mxu2 %v4611_v2  ;;  %1963 = vmatpush.bf16.msra.mxu3 %v4623_v8 }
 0x2b2   :  { %1976 = vmatpush.bf16.msra.mxu0 %v4541_v27  ;;  %1989 = vmatpush.bf16.msrb.mxu1 %v4850_v22 }
 0x2b5   :  { %1951 = vmatpush.bf16.msra.mxu2 %v4646_v21  ;;  %1964 = vmatpush.bf16.msra.mxu3 %v4658_v28 }
 0x2b6   :  { %1977 = vmatpush.bf16.msra.mxu0 %v4597_v32  ;;  %1990 = vmatpush.bf16.msrb.mxu1 %v4862_v23 }
 0x2b9   :  { %1952 = vmatpush.bf16.msra.mxu2 %v4683_v44  ;;  %1965 = vmatpush.bf16.msra.mxu3 %v4695_v56 }
 0x2ba   :  { %1978 = vmatpush.bf16.msra.mxu0 %v4625_v12  ;;  %1991 = vmatpush.bf16.msrb.mxu1 %v4875_v40 }
 0x2bd   :  { %1953 = vmatpush.bf16.msra.mxu2 %v4716_v51  ;;  %1966 = vmatpush.bf16.msra.mxu3 %v4728_v17 }
 0x2be   :  { %1979 = vmatpush.bf16.msra.mxu0 %v4660_v29  ;;  %1992 = vmatpush.bf16.msrb.mxu1 %v4887_v45 }
 0x2c1   :  { %1954 = vmatpush.bf16.msra.mxu2 %v4747_v39  ;;  %1967 = vmatpush.bf16.msra.mxu3 %v4759_v53 }
 0x2c2   :  { %1980 = vmatpush.bf16.msra.mxu0 %v4697_v57  ;;  %1993 = vmatpush.bf16.msrb.mxu1 %v4900_v1 }
 0x2c5   :  { %1955 = vmatpush.bf16.msra.mxu2 %v4778_v0  ;;  %1968 = vmatpush.bf16.msra.mxu3 %v5885_v6 }
 0x2c6   :  { %1981 = vmatpush.bf16.msra.mxu0 %v5886_v42  ;;  %1994 = vmatpush.bf16.msrb.mxu1 %v5887_v34 }
 0x2c9   :  { %1956 = vmatpush.bf16.msra.mxu2 %v5888_v31  ;;  %1969 = vmatpush.bf16.msra.mxu3 %v5889_v43 }
 0x2ca   :  { %1982 = vmatpush.bf16.msra.mxu0 %v5890_v47  ;;  %1995 = vmatpush.bf16.msrb.mxu1 %v5891_v54 }
 0x329   :  { %v1538_v35 = vpop.f32.mrf.mxu0  ;;  %v1551_v4 = vpop.f32.mrf.mxu1 }
 0x32a   :  { %v1562_v36 = vrot.slane %v1551_v4, 6  ;;  %v1566_v18 = vrot.slane %v1551_v4, 7 }
 0x32c   :  { %v1578_v20 = vadd.f32 %v1562_v36, %v5892_v38  ;;  %v1582_v14 = vadd.f32 %v1566_v18, %v5893_v33 }
 0x32e   :  { %v3523_v25 = vmul.f32 -1.442695, %v1578_v20  ;;  %v3524_v50 = vmul.f32 -1.442695, %v1582_v14  ;;  %v1512_v63 = vpop.f32.mrf.mxu2  ;;  %v1525_v52 = vpop.f32.mrf.mxu3 }
 0x32f   :  { %v1559_v3 = vrot.slane %v1512_v63, 6  ;;  %v1563_v60 = vrot.slane %v1512_v63, 7  ;;  %v1560_v49 = vrot.slane %v1525_v52, 6  ;;  %v1564_v16 = vrot.slane %v1525_v52, 7 }
 0x330   :  { %3824 = vpow2.f32 %v3523_v25 }
 0x331   :  { %3826 = vpow2.f32 %v3524_v50  ;;  %v1575_v30 = vadd.f32 %v1559_v3, %v5894_v10  ;;  %v1579_v61 = vadd.f32 %v1563_v60, %v5895_v19  ;;  %v1576_v24 = vadd.f32 %v1560_v49, %v5896_v62  ;;  %v1540_v37 = vpop.f32.mrf.mxu0  ;;  %v1553_v58 = vpop.f32.mrf.mxu1 }
 0x332   :  { %v1580_v41 = vadd.f32 %v1564_v16, %v5897_v26  ;;  %v1561_v60 = vrot.slane %v1538_v35, 6 }
 0x333   :  { %v3519_v15 = vmul.f32 -1.442695, %v1575_v30  ;;  %v3520_v9 = vmul.f32 -1.442695, %v1579_v61  ;;  %v3521_v59 = vmul.f32 -1.442695, %v1576_v24 }
 0x334   :  { %v3522_v11 = vmul.f32 -1.442695, %v1580_v41  ;;  %v1565_v30 = vrot.slane %v1538_v35, 7  ;;  %v5898_v24 = vld [vmem:[#allocation16_spill] sm:$0xff] }
 0x335   :  { %3828 = vpow2.f32 %v3519_v15  ;;  %v1577_v37 = vadd.f32 %v1561_v60, %v5898_v24  ;;  %v5899_v15 = vld [vmem:[#allocation18_spill] sm:$0xff]  ;;  %v1701_v60 = vrot.slane %v5141_v46, 7 }
 0x336   :  { %v3825_v4 = vpop.eup %3824  ;;  %3830 = vpow2.f32 %v3520_v9  ;;  %v1514_v36 = vpop.f32.mrf.mxu2  ;;  %v1581_v9 = vadd.f32 %v1565_v30, %v5899_v15 }
 0x337   :  { %v1527_v18 = vpop.f32.mrf.mxu3  ;;  %v3827_v20 = vpop.eup %3826  ;;  %3832 = vpow2.f32 %v3521_v59  ;;  %v5192_v14 = vadd.f32 1.0, %v3825_v4 }
 0x338   :  { %3834 = vpow2.f32 %v3522_v11  ;;  %v5194_v25 = vadd.f32 1.0, %v3827_v20 }
 0x339   :  { %3836 = vrcp.f32 %v5192_v14 }
 0x33a   :  { %3838 = vrcp.f32 %v5194_v25 }
 0x33b   :  { %v3829_v50 = vpop.eup %3828 }
 0x33c   :  { %v3831_v63 = vpop.eup %3830  ;;  %v1589_v52 = vadd.f32 1.0, %v3829_v50 }
 0x33d   :  { %v3833_v3 = vpop.eup %3832  ;;  %v1590_v49 = vadd.f32 1.0, %v3831_v63 }
 0x33e   :  { %v3835_v16 = vpop.eup %3834  ;;  %3840 = vrcp.f32 %v1589_v52  ;;  %v5198_v61 = vadd.f32 1.0, %v3833_v3  ;;  %v1600_v35 = vand.u32 2147483647, %v1589_v52  ;;  %v1602_v4 = vand.u32 2147483648, %v1589_v52 }
 0x33f   :  { %3842 = vrcp.f32 %v1590_v49  ;;  %v5201_v58 = vadd.f32 1.0, %v3835_v16  ;;  %v5203_v41 = vpop.eup %3836  ;;  %v1615_v50 = vand.u32 2147483647, %v1590_v49  ;;  %v1617_v3 = vand.u32 2147483648, %v1590_v49 }
 0x340   :  { %3844 = vrcp.f32 %v5198_v61  ;;  %v5207_v59 = vpop.eup %3838  ;;  %v1670_v16 = vmul.f32 %v5203_v41, %v5192_v14  ;;  %vm1596_vm3 = vweird.f32 %v1589_v52  ;;  %vm1611_vm4 = vweird.f32 %v1590_v49 }
 0x341   :  { %3846 = vrcp.f32 %v5201_v58  ;;  %v1685_v24 = vmul.f32 %v5207_v59, %v5194_v25  ;;  %vm5216_vm5 = vcmp.eq.f32.partialorder %v1600_v35, 8.507059e+37  ;;  %vm5220_vm7 = vcmp.eq.f32.partialorder %v1615_v50, 8.507059e+37 }
 0x342   :  { %3848 = vtanh.f32 %v1577_v37  ;;  %v1603_v37 = vor.u32 1.1754944e-38, %v1602_v4  ;;  %v1618_v10 = vor.u32 1.1754944e-38, %v1617_v3  ;;  %v1671_v38 = vsub.f32 1.0, %v1670_v16 }
 0x343   :  { %3850 = vtanh.f32 %v1581_v9  ;;  %v1638_v4 = vand.u32 2147483647, %v5198_v61  ;;  %v1653_v31 = vand.u32 2147483647, %v5201_v58  ;;  %vm1634_vm14 = vweird.f32 %v5198_v61 }
 0x344   :  { %v3841_v11 = vpop.eup %3840  ;;  %vm1649_vm0 = vweird.f32 %v5201_v58 }
 0x345   :  { %v3843_v36 = vpop.eup %3842  ;;  %v1592_v20 = vmul.f32 %v3841_v11, %v1589_v52  ;;  %vm1597_vm6 = vweird.f32 %v3841_v11  ;;  %vm1639_vm1 = vcmp.eq.f32.partialorder %v1638_v4, 8.507059e+37 }
 0x346   :  { %v1607_v63 = vmul.f32 %v3843_v36, %v1590_v49  ;;  %v3845_v15 = vpop.eup %3844  ;;  %vm1612_vm8 = vweird.f32 %v3843_v36  ;;  %vm1598_vm10 = vmor %vm1596_vm3, %vm1597_vm6  ;;  %vm1654_vm3 = vcmp.eq.f32.partialorder %v1653_v31, 8.507059e+37  ;;  %vm1674_vm6 = vweird.f32 %v5192_v14 }
 0x347   :  { %v1593_v30 = vsub.f32 1.0, %v1592_v20  ;;  %v3847_v26 = vpop.eup %3846  ;;  %v1630_v20 = vmul.f32 %v3845_v15, %v5198_v61  ;;  %vm1613_vm11 = vmor %vm1611_vm4, %vm1612_vm8  ;;  %vm1635_vm12 = vweird.f32 %v3845_v15  ;;  %vm1675_vm4 = vweird.f32 %v5203_v41 }
 0x348   :  { %v1608_v9 = vsub.f32 1.0, %v1607_v63  ;;  %v1645_v33 = vmul.f32 %v3847_v26, %v5201_v58  ;;  %v3849_v35 = vpop.eup %3848  ;;  %vm1650_vm13 = vweird.f32 %v3847_v26  ;;  %vm1636_vm15 = vmor %vm1634_vm14, %vm1635_vm12  ;;  %v1678_v31 = vand.u32 2147483647, %v5192_v14 }
 0x349   :  { %v1594_v62 = vmul.f32 %v3841_v11, %v1593_v30  ;;  %v1631_v47 = vsub.f32 1.0, %v1630_v20  ;;  %v3851_v63 = vpop.eup %3850  ;;  %v1640_v30 = vand.u32 2147483648, %v5198_v61  ;;  %vm1651_vm2 = vmor %vm1649_vm0, %vm1650_vm13 }
 0x34a   :  { %v1609_v19 = vmul.f32 %v3843_v36, %v1608_v9  ;;  %v1646_v43 = vsub.f32 1.0, %v1645_v33  ;;  %vm1676_vm8 = vmor %vm1674_vm6, %vm1675_vm4 }
 0x34b   :  { %v1595_v54 = vadd.f32 %v3841_v11, %v1594_v62  ;;  %v1632_v3 = vmul.f32 %v3845_v15, %v1631_v47  ;;  %v1655_v62 = vand.u32 2147483648, %v5201_v58  ;;  %v1641_v47 = vor.u32 1.1754944e-38, %v1640_v30 }
 0x34c   :  { %v1610_v50 = vadd.f32 %v3843_v36, %v1609_v19  ;;  %v1647_v52 = vmul.f32 %v3847_v26, %v1646_v43  ;;  %v1686_v19 = vsub.f32 1.0, %v1685_v24 }
 0x34d   :  { %v1599_v9 = vsel %vm1598_vm10, %v3841_v11, %v1595_v54  ;;  %v1633_v34 = vadd.f32 %v3845_v15, %v1632_v3  ;;  %v1672_v54 = vmul.f32 %v5203_v41, %v1671_v38  ;;  %v1656_v43 = vor.u32 1.1754944e-38, %v1655_v62 }
 0x34e   :  { %v1604_v16 = vsel %vm5216_vm5, %v1603_v37, %v1599_v9  ;;  %v1614_v20 = vsel %vm1613_vm11, %v3843_v36, %v1610_v50  ;;  %v1648_v49 = vadd.f32 %v3847_v26, %v1647_v52  ;;  %v5904_v38 = vrot.slane %v5135_v5, 7 }
 0x34f   :  { %v1619_v33 = vsel %vm5220_vm7, %v1618_v10, %v1614_v20  ;;  %v1707_v11 = vmul.f32 %v3849_v35, %v1604_v16  ;;  %v1637_v18 = vsel %vm1636_vm15, %v3845_v15, %v1633_v34  ;;  %v1687_v10 = vmul.f32 %v5207_v59, %v1686_v19 }
 0x350   :  { %v1708_v36 = vmul.f32 %v3851_v63, %v1619_v33  ;;  %v1642_v24 = vsel %vm1639_vm1, %v1641_v47, %v1637_v18  ;;  %v1652_v37 = vsel %vm1651_vm2, %v3847_v26, %v1648_v49  ;;  %v1673_v58 = vadd.f32 %v5203_v41, %v1672_v54  ;;  %v5906_v18 = vld [vmem:[#allocation8_spill] sm:$0xff] }
 0x351   :  { %v1657_v46 = vsel %vm1654_vm3, %v1656_v43, %v1652_v37  ;;  %v1705_v61 = vmul.f32 %v1701_v60, %v1642_v24  ;;  %v1680_v15 = vand.u32 2147483648, %v5192_v14  ;;  %v1688_v26 = vadd.f32 %v5207_v59, %v1687_v10  ;;  %v5907_v43 = vld [vmem:[#allocation9_spill] sm:$0xff]  ;;  %v5909_v24 = vld [vmem:[#allocation11_spill] sm:$0xff] }
 0x352   :  { %v1706_v50 = vmul.f32 %v5904_v38, %v1657_v46  ;;  %vm1690_vm5 = vweird.f32 %v5207_v59  ;;  %v1695_v5 = vand.u32 2147483648, %v5194_v25  ;;  %vm1689_vm7 = vweird.f32 %v5194_v25  ;;  %v5910_v38 = vld [vmem:[#allocation17_spill] sm:$0xff] }
 0x353   :  { %v5243_v30 = vadd.f32 %v1707_v11, %v1705_v61  ;;  %v1693_v60 = vand.u32 2147483647, %v5194_v25  ;;  %v1677_v35 = vsel %vm1676_vm8, %v5203_v41, %v1673_v58  ;;  %vm1691_vm10 = vmor %vm1689_vm7, %vm1690_vm5  ;;  %v1681_v4 = vor.u32 1.1754944e-38, %v1680_v15  ;;  %v5911_v58 = vld [vmem:[#allocation19_spill] sm:$0xff] }
 0x354   :  { %v5247_v34 = vadd.f32 %v1708_v36, %v1706_v50  ;;  %v1692_v63 = vsel %vm1691_vm10, %v5207_v59, %v1688_v26  ;;  %vm1679_vm11 = vcmp.eq.f32.partialorder %v1678_v31, 8.507059e+37  ;;  %v1696_v9 = vor.u32 1.1754944e-38, %v1695_v5  ;;  %v5905_v59 = vld [vmem:[#allocation10_spill] sm:$0xff] }
 0x355   :  { %3852 = vtanh.f32 %v5243_v30  ;;  %v1682_v62 = vsel %vm1679_vm11, %v1681_v4, %v1677_v35  ;;  %vm1694_vm12 = vcmp.eq.f32.partialorder %v1693_v60, 8.507059e+37  ;;  %v5908_v36 = vld [vmem:[#allocation6_spill] sm:$0xff] }
 0x356   :  { %3854 = vtanh.f32 %v5247_v34  ;;  %v1697_v14 = vsel %vm1694_vm12, %v1696_v9, %v1692_v63 }
 0x35b   :  { %v3853_v3 = vpop.eup %3852 }
 0x35c   :  { %v3855_v16 = vpop.eup %3854  ;;  %v1713_v20 = vmul.f32 %v3853_v3, %v1682_v62  ;;  %v5912_v3 = vld [vmem:[#allocation12_spill] sm:$0xff] }
 0x35d   :  { %v1714_v52 = vmul.f32 %v3855_v16, %v1697_v14  ;;  %v5913_v16 = vld [vmem:[#allocation14_spill] sm:$0xff] }
 0x35e   :  { %v1715_v19 = vpack.c.bf16 %v1713_v20, %v1713_v20  ;;  %v5914_v20 = vld [vmem:[#allocation13_spill] sm:$0xff] }
 0x35f   :  { %v1716_v33 = vpack.c.bf16 %v1714_v52, %v1714_v52 }
 0x360   :  { %v1719_v54 = vunpack.c.l.b16 %v1715_v19 }
 0x361   :  { %v1720_v47 = vunpack.c.l.b16 %v1716_v33 }
 0x362   :  { %v1721_v25 = vrot.slane %v1719_v54, 2  ;;  %v5915_v54 = vld [vmem:[#allocation15_spill] sm:$0xff] }
 0x363   :  { %v1722_v49 = vrot.slane %v1720_v47, 1 }
 0x365   :  { %v1723_v41 = vsel %vm1281_vm9, %v1722_v49, %v1721_v25 }
 0x366   :  { %v1724_v11 = vpack.c.b16 %v1723_v41, %v1723_v41 }
 0x368   :  { %1734 = vmatmul.bf16.vlgmr.msrb.gmra.mxu2 %v1724_v11  ;;  %1747 = vmatmul.bf16.vlgmr.msrb.gmra.mxu3 %v1724_v11 }
 0x369   :  { %1760 = vmatmul.bf16.vlgmr.msrb.gmra.mxu0 %v1724_v11  ;;  %1773 = vmatmul.bf16.vlgmr.msra.gmra.mxu1 %v1724_v11 }
 0x36a   :  { %2172 = vmatpush.bf16.msrb.mxu2 %v4572_v48  ;;  %2185 = vmatpush.bf16.msrb.mxu3 %v4583_v55 }
 0x36b   :  { %2198 = vmatpush.bf16.msrb.mxu0 %v4505_v7  ;;  %2211 = vmatpush.bf16.msra.mxu1 %v4840_v13 }
 0x36e   :  { %2173 = vmatpush.bf16.msrb.mxu2 %v4611_v2  ;;  %2186 = vmatpush.bf16.msrb.mxu3 %v4623_v8 }
 0x36f   :  { %2199 = vmatpush.bf16.msrb.mxu0 %v4541_v27  ;;  %2212 = vmatpush.bf16.msra.mxu1 %v4850_v22 }
 0x372   :  { %2174 = vmatpush.bf16.msrb.mxu2 %v4646_v21  ;;  %2187 = vmatpush.bf16.msrb.mxu3 %v4658_v28 }
 0x373   :  { %2200 = vmatpush.bf16.msrb.mxu0 %v4597_v32  ;;  %2213 = vmatpush.bf16.msra.mxu1 %v4862_v23 }
 0x376   :  { %2175 = vmatpush.bf16.msrb.mxu2 %v4683_v44  ;;  %2188 = vmatpush.bf16.msrb.mxu3 %v4695_v56 }
 0x377   :  { %2201 = vmatpush.bf16.msrb.mxu0 %v4625_v12  ;;  %2214 = vmatpush.bf16.msra.mxu1 %v4875_v40 }
 0x37a   :  { %2176 = vmatpush.bf16.msrb.mxu2 %v4716_v51  ;;  %2189 = vmatpush.bf16.msrb.mxu3 %v4728_v17 }
 0x37b   :  { %2202 = vmatpush.bf16.msrb.mxu0 %v4660_v29  ;;  %2215 = vmatpush.bf16.msra.mxu1 %v4887_v45 }
 0x37e   :  { %2177 = vmatpush.bf16.msrb.mxu2 %v4747_v39  ;;  %2190 = vmatpush.bf16.msrb.mxu3 %v4759_v53 }
 0x37f   :  { %2203 = vmatpush.bf16.msrb.mxu0 %v4697_v57  ;;  %2216 = vmatpush.bf16.msra.mxu1 %v4900_v1 }
 0x382   :  { %2178 = vmatpush.bf16.msrb.mxu2 %v4778_v0  ;;  %2191 = vmatpush.bf16.msrb.mxu3 %v5885_v6 }
 0x383   :  { %2204 = vmatpush.bf16.msrb.mxu0 %v5886_v42  ;;  %2217 = vmatpush.bf16.msra.mxu1 %v5905_v59 }
 0x386   :  { %2179 = vmatpush.bf16.msrb.mxu2 %v5906_v18  ;;  %2192 = vmatpush.bf16.msrb.mxu3 %v5907_v43 }
 0x387   :  { %2205 = vmatpush.bf16.msrb.mxu0 %v5908_v36  ;;  %2218 = vmatpush.bf16.msra.mxu1 %v5909_v24 }
 0x3e6   :  { %v1761_v37 = vpop.f32.mrf.mxu0  ;;  %v1774_v10 = vpop.f32.mrf.mxu1 }
 0x3e7   :  { %v1785_v46 = vrot.slane %v1774_v10, 5  ;;  %v1789_v61 = vrot.slane %v1774_v10, 6 }
 0x3e9   :  { %v1801_v50 = vadd.f32 %v1785_v46, %v5910_v38  ;;  %v1805_v15 = vadd.f32 %v1789_v61, %v5911_v58 }
 0x3eb   :  { %v3529_v26 = vmul.f32 -1.442695, %v1801_v50  ;;  %v3530_v5 = vmul.f32 -1.442695, %v1805_v15  ;;  %v1735_v31 = vpop.f32.mrf.mxu2  ;;  %v1748_v60 = vpop.f32.mrf.mxu3 }
 0x3ec   :  { %v1782_v35 = vrot.slane %v1735_v31, 5  ;;  %v1786_v4 = vrot.slane %v1735_v31, 6  ;;  %v1783_v63 = vrot.slane %v1748_v60, 5  ;;  %v1787_v9 = vrot.slane %v1748_v60, 6 }
 0x3ed   :  { %3856 = vpow2.f32 %v3529_v26 }
 0x3ee   :  { %3858 = vpow2.f32 %v3530_v5  ;;  %v1798_v62 = vadd.f32 %v1782_v35, %v5912_v3  ;;  %v1802_v14 = vadd.f32 %v1786_v4, %v5913_v16  ;;  %v1799_v52 = vadd.f32 %v1783_v63, %v5914_v20  ;;  %v1763_v19 = vpop.f32.mrf.mxu0  ;;  %v1776_v33 = vpop.f32.mrf.mxu1 }
 0x3ef   :  { %v1803_v47 = vadd.f32 %v1787_v9, %v5915_v54  ;;  %v1784_v4 = vrot.slane %v1761_v37, 5 }
 0x3f0   :  { %v3525_v25 = vmul.f32 -1.442695, %v1798_v62  ;;  %v3526_v49 = vmul.f32 -1.442695, %v1802_v14  ;;  %v3527_v41 = vmul.f32 -1.442695, %v1799_v52 }
 0x3f1   :  { %v3528_v11 = vmul.f32 -1.442695, %v1803_v47  ;;  %v1788_v62 = vrot.slane %v1761_v37, 6  ;;  %v5916_v52 = vld [vmem:[#allocation16_spill] sm:$0xff] }
 0x3f2   :  { %3860 = vpow2.f32 %v3525_v25  ;;  %v1800_v19 = vadd.f32 %v1784_v4, %v5916_v52  ;;  %v5917_v25 = vld [vmem:[#allocation18_spill] sm:$0xff]  ;;  %v1925_v4 = vrot.slane %v5247_v34, 7 }
 0x3f3   :  { %v3857_v10 = vpop.eup %3856  ;;  %3862 = vpow2.f32 %v3526_v49  ;;  %v1737_v46 = vpop.f32.mrf.mxu2  ;;  %v1804_v49 = vadd.f32 %v1788_v62, %v5917_v25 }
 0x3f4   :  { %v1750_v61 = vpop.f32.mrf.mxu3  ;;  %v3859_v50 = vpop.eup %3858  ;;  %3864 = vpow2.f32 %v3527_v41  ;;  %v5300_v15 = vadd.f32 1.0, %v3857_v10 }
 0x3f5   :  { %3866 = vpow2.f32 %v3528_v11  ;;  %v5302_v26 = vadd.f32 1.0, %v3859_v50 }
 0x3f6   :  { %3868 = vrcp.f32 %v5300_v15 }
 0x3f7   :  { %3870 = vrcp.f32 %v5302_v26 }
 0x3f8   :  { %v3861_v5 = vpop.eup %3860 }
 0x3f9   :  { %v3863_v31 = vpop.eup %3862  ;;  %v1812_v60 = vadd.f32 1.0, %v3861_v5 }
 0x3fa   :  { %v3865_v35 = vpop.eup %3864  ;;  %v1813_v63 = vadd.f32 1.0, %v3863_v31 }
 0x3fb   :  { %v3867_v9 = vpop.eup %3866  ;;  %3872 = vrcp.f32 %v1812_v60  ;;  %v5306_v14 = vadd.f32 1.0, %v3865_v35  ;;  %v1823_v37 = vand.u32 2147483647, %v1812_v60  ;;  %v1825_v10 = vand.u32 2147483648, %v1812_v60 }
 0x3fc   :  { %3874 = vrcp.f32 %v1813_v63  ;;  %v5309_v33 = vadd.f32 1.0, %v3867_v9  ;;  %v5311_v47 = vpop.eup %3868  ;;  %v1838_v50 = vand.u32 2147483647, %v1813_v63  ;;  %v1840_v35 = vand.u32 2147483648, %v1813_v63 }
 0x3fd   :  { %3876 = vrcp.f32 %v5306_v14  ;;  %v5315_v41 = vpop.eup %3870  ;;  %v1893_v9 = vmul.f32 %v5311_v47, %v5300_v15  ;;  %vm1819_vm13 = vweird.f32 %v1812_v60  ;;  %vm1834_vm14 = vweird.f32 %v1813_v63 }
 0x3fe   :  { %3878 = vrcp.f32 %v5309_v33  ;;  %v1908_v52 = vmul.f32 %v5315_v41, %v5302_v26  ;;  %vm5324_vm15 = vcmp.eq.f32.partialorder %v1823_v37, 8.507059e+37  ;;  %v1826_v5 = vor.u32 1.1754944e-38, %v1825_v10 }
 0x3ff   :  { %3880 = vtanh.f32 %v1800_v19  ;;  %vm5328_vm1 = vcmp.eq.f32.partialorder %v1838_v50, 8.507059e+37  ;;  %v1841_v3 = vor.u32 1.1754944e-38, %v1840_v35  ;;  %v1894_v38 = vsub.f32 1.0, %v1893_v9 }
 0x400   :  { %3882 = vtanh.f32 %v1804_v49  ;;  %v1861_v10 = vand.u32 2147483647, %v5306_v14  ;;  %v1876_v18 = vand.u32 2147483647, %v5309_v33  ;;  %vm1857_vm7 = vweird.f32 %v5306_v14 }
 0x401   :  { %v3873_v11 = vpop.eup %3872  ;;  %vm1872_vm10 = vweird.f32 %v5309_v33 }
 0x402   :  { %v3875_v46 = vpop.eup %3874  ;;  %v1815_v61 = vmul.f32 %v3873_v11, %v1812_v60  ;;  %vm1820_vm0 = vweird.f32 %v3873_v11  ;;  %vm1862_vm11 = vcmp.eq.f32.partialorder %v1861_v10, 8.507059e+37 }
 0x403   :  { %v1830_v31 = vmul.f32 %v3875_v46, %v1813_v63  ;;  %v3877_v25 = vpop.eup %3876  ;;  %vm1835_vm2 = vweird.f32 %v3875_v46  ;;  %vm1821_vm3 = vmor %vm1819_vm13, %vm1820_vm0  ;;  %vm1877_vm13 = vcmp.eq.f32.partialorder %v1876_v18, 8.507059e+37  ;;  %vm1897_vm0 = vweird.f32 %v5300_v15 }
 0x404   :  { %v1816_v62 = vsub.f32 1.0, %v1815_v61  ;;  %v3879_v54 = vpop.eup %3878  ;;  %v1853_v61 = vmul.f32 %v3877_v25, %v5306_v14  ;;  %vm1836_vm4 = vmor %vm1834_vm14, %vm1835_vm2  ;;  %vm1858_vm5 = vweird.f32 %v3877_v25  ;;  %vm1898_vm14 = vweird.f32 %v5311_v47 }
 0x405   :  { %v1831_v49 = vsub.f32 1.0, %v1830_v31  ;;  %v1868_v58 = vmul.f32 %v3879_v54, %v5309_v33  ;;  %v3881_v37 = vpop.eup %3880  ;;  %vm1873_vm6 = vweird.f32 %v3879_v54  ;;  %vm1859_vm8 = vmor %vm1857_vm7, %vm1858_vm5  ;;  %v1901_v18 = vand.u32 2147483647, %v5300_v15 }
 0x406   :  { %v1817_v20 = vmul.f32 %v3873_v11, %v1816_v62  ;;  %v1854_v36 = vsub.f32 1.0, %v1853_v61  ;;  %v3883_v31 = vpop.eup %3882  ;;  %v1863_v62 = vand.u32 2147483648, %v5306_v14  ;;  %vm1874_vm12 = vmor %vm1872_vm10, %vm1873_vm6  ;;  %v5922_v14 = vrot.slane %v5243_v30, 7 }
 0x407   :  { %v1832_v16 = vmul.f32 %v3875_v46, %v1831_v49  ;;  %v1869_v43 = vsub.f32 1.0, %v1868_v58  ;;  %v1918_v30 = vand.u32 2147483648, %v5302_v26  ;;  %vm1899_vm2 = vmor %vm1897_vm0, %vm1898_vm14 }
 0x408   :  { %v1818_v24 = vadd.f32 %v3873_v11, %v1817_v20  ;;  %v1855_v35 = vmul.f32 %v3877_v25, %v1854_v36  ;;  %v1878_v20 = vand.u32 2147483648, %v5309_v33  ;;  %v1864_v36 = vor.u32 1.1754944e-38, %v1863_v62 }
 0x409   :  { %v1833_v50 = vadd.f32 %v3875_v46, %v1832_v16  ;;  %v1870_v60 = vmul.f32 %v3879_v54, %v1869_v43  ;;  %v1909_v16 = vsub.f32 1.0, %v1908_v52 }
 0x40a   :  { %v1822_v49 = vsel %vm1821_vm3, %v3873_v11, %v1818_v24  ;;  %v1856_v59 = vadd.f32 %v3877_v25, %v1855_v35  ;;  %v1895_v24 = vmul.f32 %v5311_v47, %v1894_v38  ;;  %v1879_v43 = vor.u32 1.1754944e-38, %v1878_v20 }
 0x40b   :  { %v1827_v9 = vsel %vm5324_vm15, %v1826_v5, %v1822_v49  ;;  %v1837_v61 = vsel %vm1836_vm4, %v3875_v46, %v1833_v50  ;;  %v1871_v63 = vadd.f32 %v3879_v54, %v1870_v60  ;;  %vm1913_vm15 = vweird.f32 %v5315_v41 }
 0x40c   :  { %v1842_v58 = vsel %vm5328_vm1, %v1841_v3, %v1837_v61  ;;  %v1930_v11 = vmul.f32 %v3881_v37, %v1827_v9  ;;  %v1860_v19 = vsel %vm1859_vm8, %v3877_v25, %v1856_v59  ;;  %v1910_v3 = vmul.f32 %v5315_v41, %v1909_v16 }
 0x40d   :  { %v1931_v46 = vmul.f32 %v3883_v31, %v1842_v58  ;;  %v1865_v52 = vsel %vm1862_vm11, %v1864_v36, %v1860_v19  ;;  %v1875_v5 = vsel %vm1874_vm12, %v3879_v54, %v1871_v63  ;;  %v1896_v33 = vadd.f32 %v5311_v47, %v1895_v24  ;;  %v5924_v19 = vld [vmem:[#allocation8_spill] sm:$0xff] }
 0x40e   :  { %v1880_v34 = vsel %vm1877_vm13, %v1879_v43, %v1875_v5  ;;  %v1928_v38 = vmul.f32 %v5922_v14, %v1865_v52  ;;  %v1903_v25 = vand.u32 2147483648, %v5300_v15  ;;  %v1911_v54 = vadd.f32 %v5315_v41, %v1910_v3  ;;  %v5925_v43 = vld [vmem:[#allocation9_spill] sm:$0xff]  ;;  %v5927_v52 = vld [vmem:[#allocation11_spill] sm:$0xff] }
 0x40f   :  { %v1929_v50 = vmul.f32 %v1925_v4, %v1880_v34  ;;  %vm1912_vm1 = vweird.f32 %v5302_v26  ;;  %v1916_v4 = vand.u32 2147483647, %v5302_v26  ;;  %v1900_v37 = vsel %vm1899_vm2, %v5311_v47, %v1896_v33  ;;  %v5929_v33 = vld [vmem:[#allocation19_spill] sm:$0xff] }
 0x410   :  { %v5351_v62 = vadd.f32 %v1930_v11, %v1928_v38  ;;  %vm1914_vm3 = vmor %vm1912_vm1, %vm1913_vm15  ;;  %v1904_v10 = vor.u32 1.1754944e-38, %v1903_v25  ;;  %vm1902_vm4 = vcmp.eq.f32.partialorder %v1901_v18, 8.507059e+37  ;;  %v1919_v49 = vor.u32 1.1754944e-38, %v1918_v30  ;;  %v5928_v38 = vld [vmem:[#allocation17_spill] sm:$0xff] }
 0x411   :  { %v5355_v59 = vadd.f32 %v1931_v46, %v1929_v50  ;;  %v1915_v31 = vsel %vm1914_vm3, %v5315_v41, %v1911_v54  ;;  %vm1917_vm5 = vcmp.eq.f32.partialorder %v1916_v4, 8.507059e+37  ;;  %v5923_v41 = vld [vmem:[#allocation10_spill] sm:$0xff] }
 0x412   :  { %3884 = vtanh.f32 %v5351_v62  ;;  %v1905_v20 = vsel %vm1902_vm4, %v1904_v10, %v1900_v37  ;;  %v1920_v15 = vsel %vm1917_vm5, %v1919_v49, %v1915_v31  ;;  %v5926_v46 = vld [vmem:[#allocation6_spill] sm:$0xff] }
 0x413   :  { %3886 = vtanh.f32 %v5355_v59 }
 0x418   :  { %v3885_v35 = vpop.eup %3884 }
 0x419   :  { %v3887_v9 = vpop.eup %3886  ;;  %v1936_v61 = vmul.f32 %v3885_v35, %v1905_v20  ;;  %v5930_v35 = vld [vmem:[#allocation12_spill] sm:$0xff] }
 0x41a   :  { %v1937_v60 = vmul.f32 %v3887_v9, %v1920_v15  ;;  %v5931_v9 = vld [vmem:[#allocation14_spill] sm:$0xff] }
 0x41b   :  { %v1938_v16 = vpack.c.bf16 %v1936_v61, %v1936_v61  ;;  %v5932_v61 = vld [vmem:[#allocation13_spill] sm:$0xff] }
 0x41c   :  { %v1939_v58 = vpack.c.bf16 %v1937_v60, %v1937_v60 }
 0x41d   :  { %v1942_v24 = vunpack.c.l.b16 %v1938_v16 }
 0x41e   :  { %v1943_v36 = vunpack.c.l.b16 %v1939_v58 }
 0x41f   :  { %v1944_v26 = vrot.slane %v1942_v24, 3  ;;  %v5933_v24 = vld [vmem:[#allocation15_spill] sm:$0xff] }
 0x420   :  { %v1945_v63 = vrot.slane %v1943_v36, 2 }
 0x422   :  { %v1946_v47 = vsel %vm1281_vm9, %v1945_v63, %v1944_v26 }
 0x423   :  { %v1947_v11 = vpack.c.b16 %v1946_v47, %v1946_v47 }
 0x425   :  { %1957 = vmatmul.bf16.vlgmr.msra.gmra.mxu2 %v1947_v11  ;;  %1970 = vmatmul.bf16.vlgmr.msra.gmra.mxu3 %v1947_v11 }
 0x426   :  { %1983 = vmatmul.bf16.vlgmr.msra.gmra.mxu0 %v1947_v11  ;;  %1996 = vmatmul.bf16.vlgmr.msrb.gmra.mxu1 %v1947_v11 }
 0x427   :  { %2395 = vmatpush.bf16.msra.mxu2 %v4572_v48  ;;  %2408 = vmatpush.bf16.msra.mxu3 %v4583_v55 }
 0x428   :  { %2421 = vmatpush.bf16.msra.mxu0 %v4505_v7  ;;  %2434 = vmatpush.bf16.msrb.mxu1 %v4840_v13 }
 0x42b   :  { %2396 = vmatpush.bf16.msra.mxu2 %v4611_v2  ;;  %2409 = vmatpush.bf16.msra.mxu3 %v4623_v8 }
 0x42c   :  { %2422 = vmatpush.bf16.msra.mxu0 %v4541_v27  ;;  %2435 = vmatpush.bf16.msrb.mxu1 %v4850_v22 }
 0x42f   :  { %2397 = vmatpush.bf16.msra.mxu2 %v4646_v21  ;;  %2410 = vmatpush.bf16.msra.mxu3 %v4658_v28 }
 0x430   :  { %2423 = vmatpush.bf16.msra.mxu0 %v4597_v32  ;;  %2436 = vmatpush.bf16.msrb.mxu1 %v4862_v23 }
 0x433   :  { %2398 = vmatpush.bf16.msra.mxu2 %v4683_v44  ;;  %2411 = vmatpush.bf16.msra.mxu3 %v4695_v56 }
 0x434   :  { %2424 = vmatpush.bf16.msra.mxu0 %v4625_v12  ;;  %2437 = vmatpush.bf16.msrb.mxu1 %v4875_v40 }
 0x437   :  { %2399 = vmatpush.bf16.msra.mxu2 %v4716_v51  ;;  %2412 = vmatpush.bf16.msra.mxu3 %v4728_v17 }
 0x438   :  { %2425 = vmatpush.bf16.msra.mxu0 %v4660_v29  ;;  %2438 = vmatpush.bf16.msrb.mxu1 %v4887_v45 }
 0x43b   :  { %2400 = vmatpush.bf16.msra.mxu2 %v4747_v39  ;;  %2413 = vmatpush.bf16.msra.mxu3 %v4759_v53 }
 0x43c   :  { %2426 = vmatpush.bf16.msra.mxu0 %v4697_v57  ;;  %2439 = vmatpush.bf16.msrb.mxu1 %v4900_v1 }
 0x43f   :  { %2401 = vmatpush.bf16.msra.mxu2 %v4778_v0  ;;  %2414 = vmatpush.bf16.msra.mxu3 %v5885_v6 }
 0x440   :  { %2427 = vmatpush.bf16.msra.mxu0 %v5886_v42  ;;  %2440 = vmatpush.bf16.msrb.mxu1 %v5923_v41 }
 0x443   :  { %2402 = vmatpush.bf16.msra.mxu2 %v5924_v19  ;;  %2415 = vmatpush.bf16.msra.mxu3 %v5925_v43 }
 0x444   :  { %2428 = vmatpush.bf16.msra.mxu0 %v5926_v46  ;;  %2441 = vmatpush.bf16.msrb.mxu1 %v5927_v52 }
 0x4a3   :  { %v1984_v5 = vpop.f32.mrf.mxu0  ;;  %v1997_v3 = vpop.f32.mrf.mxu1 }
 0x4a4   :  { %v2008_v34 = vrot.slane %v1997_v3, 4  ;;  %v2012_v14 = vrot.slane %v1997_v3, 5 }
 0x4a6   :  { %v2024_v50 = vadd.f32 %v2008_v34, %v5928_v38  ;;  %v2028_v25 = vadd.f32 %v2012_v14, %v5929_v33 }
 0x4a8   :  { %v3535_v54 = vmul.f32 -1.442695, %v2024_v50  ;;  %v3536_v30 = vmul.f32 -1.442695, %v2028_v25  ;;  %v1958_v18 = vpop.f32.mrf.mxu2  ;;  %v1971_v4 = vpop.f32.mrf.mxu3 }
 0x4a9   :  { %v2005_v37 = vrot.slane %v1958_v18, 4  ;;  %v2009_v10 = vrot.slane %v1958_v18, 5  ;;  %v2006_v31 = vrot.slane %v1971_v4, 4  ;;  %v2010_v49 = vrot.slane %v1971_v4, 5 }
 0x4aa   :  { %3888 = vpow2.f32 %v3535_v54 }
 0x4ab   :  { %3890 = vpow2.f32 %v3536_v30  ;;  %v2021_v20 = vadd.f32 %v2005_v37, %v5930_v35  ;;  %v2025_v15 = vadd.f32 %v2009_v10, %v5931_v9  ;;  %v2022_v60 = vadd.f32 %v2006_v31, %v5932_v61  ;;  %v1986_v16 = vpop.f32.mrf.mxu0  ;;  %v1999_v58 = vpop.f32.mrf.mxu1 }
 0x4ac   :  { %v2026_v36 = vadd.f32 %v2010_v49, %v5933_v24  ;;  %v2007_v10 = vrot.slane %v1984_v5, 4 }
 0x4ad   :  { %v3531_v26 = vmul.f32 -1.442695, %v2021_v20  ;;  %v3532_v63 = vmul.f32 -1.442695, %v2025_v15  ;;  %v3533_v47 = vmul.f32 -1.442695, %v2022_v60 }
 0x4ae   :  { %v3534_v11 = vmul.f32 -1.442695, %v2026_v36  ;;  %v2011_v20 = vrot.slane %v1984_v5, 5  ;;  %v5934_v60 = vld [vmem:[#allocation16_spill] sm:$0xff] }
 0x4af   :  { %3892 = vpow2.f32 %v3531_v26  ;;  %v2023_v16 = vadd.f32 %v2007_v10, %v5934_v60  ;;  %v5935_v26 = vld [vmem:[#allocation18_spill] sm:$0xff]  ;;  %v2148_v10 = vrot.slane %v5355_v59, 7 }
 0x4b0   :  { %v3889_v3 = vpop.eup %3888  ;;  %3894 = vpow2.f32 %v3532_v63  ;;  %v1960_v34 = vpop.f32.mrf.mxu2  ;;  %v2027_v63 = vadd.f32 %v2011_v20, %v5935_v26 }
 0x4b1   :  { %v1973_v14 = vpop.f32.mrf.mxu3  ;;  %v3891_v50 = vpop.eup %3890  ;;  %3896 = vpow2.f32 %v3533_v47  ;;  %v5408_v25 = vadd.f32 1.0, %v3889_v3 }
 0x4b2   :  { %3898 = vpow2.f32 %v3534_v11  ;;  %v5410_v54 = vadd.f32 1.0, %v3891_v50 }
 0x4b3   :  { %3900 = vrcp.f32 %v5408_v25 }
 0x4b4   :  { %3902 = vrcp.f32 %v5410_v54 }
 0x4b5   :  { %v3893_v30 = vpop.eup %3892 }
 0x4b6   :  { %v3895_v18 = vpop.eup %3894  ;;  %v2035_v4 = vadd.f32 1.0, %v3893_v30 }
 0x4b7   :  { %v3897_v37 = vpop.eup %3896  ;;  %v2036_v31 = vadd.f32 1.0, %v3895_v18 }
 0x4b8   :  { %v3899_v49 = vpop.eup %3898  ;;  %3904 = vrcp.f32 %v2035_v4  ;;  %v5414_v15 = vadd.f32 1.0, %v3897_v37  ;;  %v2046_v5 = vand.u32 2147483647, %v2035_v4  ;;  %v2048_v3 = vand.u32 2147483648, %v2035_v4 }
 0x4b9   :  { %3906 = vrcp.f32 %v2036_v31  ;;  %v5417_v58 = vadd.f32 1.0, %v3899_v49  ;;  %v5419_v36 = vpop.eup %3900  ;;  %v2061_v50 = vand.u32 2147483647, %v2036_v31  ;;  %v2063_v37 = vand.u32 2147483648, %v2036_v31 }
 0x4ba   :  { %3908 = vrcp.f32 %v5414_v15  ;;  %v5423_v47 = vpop.eup %3902  ;;  %v2116_v49 = vmul.f32 %v5419_v36, %v5408_v25  ;;  %vm2042_vm6 = vweird.f32 %v2035_v4  ;;  %vm2057_vm7 = vweird.f32 %v2036_v31 }
 0x4bb   :  { %3910 = vrcp.f32 %v5417_v58  ;;  %v2131_v60 = vmul.f32 %v5423_v47, %v5410_v54  ;;  %vm5432_vm8 = vcmp.eq.f32.partialorder %v2046_v5, 8.507059e+37  ;;  %v2049_v30 = vor.u32 1.1754944e-38, %v2048_v3 }
 0x4bc   :  { %3912 = vtanh.f32 %v2023_v16  ;;  %vm5436_vm11 = vcmp.eq.f32.partialorder %v2061_v50, 8.507059e+37  ;;  %v2064_v35 = vor.u32 1.1754944e-38, %v2063_v37  ;;  %v2117_v38 = vsub.f32 1.0, %v2116_v49 }
 0x4bd   :  { %3914 = vtanh.f32 %v2027_v63  ;;  %v2084_v3 = vand.u32 2147483647, %v5414_v15  ;;  %v2099_v19 = vand.u32 2147483647, %v5417_v58  ;;  %vm2080_vm1 = vweird.f32 %v5414_v15 }
 0x4be   :  { %v3905_v11 = vpop.eup %3904  ;;  %vm2095_vm3 = vweird.f32 %v5417_v58 }
 0x4bf   :  { %v3907_v34 = vpop.eup %3906  ;;  %v2038_v14 = vmul.f32 %v3905_v11, %v2035_v4  ;;  %vm2043_vm10 = vweird.f32 %v3905_v11  ;;  %vm2085_vm4 = vcmp.eq.f32.partialorder %v2084_v3, 8.507059e+37 }
 0x4c0   :  { %v2053_v18 = vmul.f32 %v3907_v34, %v2036_v31  ;;  %v3909_v26 = vpop.eup %3908  ;;  %vm2058_vm12 = vweird.f32 %v3907_v34  ;;  %vm2044_vm13 = vmor %vm2042_vm6, %vm2043_vm10  ;;  %vm2100_vm6 = vcmp.eq.f32.partialorder %v2099_v19, 8.507059e+37  ;;  %vm2120_vm10 = vweird.f32 %v5408_v25 }
 0x4c1   :  { %v2039_v20 = vsub.f32 1.0, %v2038_v14  ;;  %v3911_v24 = vpop.eup %3910  ;;  %v2076_v14 = vmul.f32 %v3909_v26, %v5414_v15  ;;  %vm2059_vm14 = vmor %vm2057_vm7, %vm2058_vm12  ;;  %vm2081_vm15 = vweird.f32 %v3909_v26  ;;  %vm2121_vm7 = vweird.f32 %v5419_v36 }
 0x4c2   :  { %v2054_v63 = vsub.f32 1.0, %v2053_v18  ;;  %v2091_v33 = vmul.f32 %v3911_v24, %v5417_v58  ;;  %v3913_v5 = vpop.eup %3912  ;;  %vm2096_vm0 = vweird.f32 %v3911_v24  ;;  %vm2082_vm2 = vmor %vm2080_vm1, %vm2081_vm15  ;;  %v2124_v19 = vand.u32 2147483647, %v5408_v25 }
 0x4c3   :  { %v2040_v61 = vmul.f32 %v3905_v11, %v2039_v20  ;;  %v2077_v46 = vsub.f32 1.0, %v2076_v14  ;;  %v3915_v18 = vpop.eup %3914  ;;  %v2086_v20 = vand.u32 2147483648, %v5414_v15  ;;  %vm2097_vm5 = vmor %vm2095_vm3, %vm2096_vm0  ;;  %v5940_v15 = vrot.slane %v5351_v62, 7 }
 0x4c4   :  { %v2055_v9 = vmul.f32 %v3907_v34, %v2054_v63  ;;  %v2092_v43 = vsub.f32 1.0, %v2091_v33  ;;  %v2141_v62 = vand.u32 2147483648, %v5410_v54  ;;  %vm2122_vm12 = vmor %vm2120_vm10, %vm2121_vm7 }
 0x4c5   :  { %v2041_v52 = vadd.f32 %v3905_v11, %v2040_v61  ;;  %v2078_v37 = vmul.f32 %v3909_v26, %v2077_v46  ;;  %v2101_v61 = vand.u32 2147483648, %v5417_v58  ;;  %v2087_v46 = vor.u32 1.1754944e-38, %v2086_v20 }
 0x4c6   :  { %v2056_v50 = vadd.f32 %v3907_v34, %v2055_v9  ;;  %v2093_v4 = vmul.f32 %v3911_v24, %v2092_v43  ;;  %v2132_v9 = vsub.f32 1.0, %v2131_v60 }
 0x4c7   :  { %v2045_v63 = vsel %vm2044_vm13, %v3905_v11, %v2041_v52  ;;  %v2079_v41 = vadd.f32 %v3909_v26, %v2078_v37  ;;  %v2118_v52 = vmul.f32 %v5419_v36, %v2117_v38  ;;  %v2102_v43 = vor.u32 1.1754944e-38, %v2101_v61 }
 0x4c8   :  { %v2050_v49 = vsel %vm5432_vm8, %v2049_v30, %v2045_v63  ;;  %v2060_v14 = vsel %vm2059_vm14, %v3907_v34, %v2056_v50  ;;  %v2094_v31 = vadd.f32 %v3911_v24, %v2093_v4  ;;  %vm2136_vm8 = vweird.f32 %v5423_v47 }
 0x4c9   :  { %v2065_v33 = vsel %vm5436_vm11, %v2064_v35, %v2060_v14  ;;  %v2153_v11 = vmul.f32 %v3913_v5, %v2050_v49  ;;  %v2083_v16 = vsel %vm2082_vm2, %v3909_v26, %v2079_v41  ;;  %v2133_v35 = vmul.f32 %v5423_v47, %v2132_v9 }
 0x4ca   :  { %v2154_v34 = vmul.f32 %v3915_v18, %v2065_v33  ;;  %v2088_v60 = vsel %vm2085_vm4, %v2087_v46, %v2083_v16  ;;  %v2098_v30 = vsel %vm2097_vm5, %v3911_v24, %v2094_v31  ;;  %v2119_v58 = vadd.f32 %v5419_v36, %v2118_v52 }
 0x4cb   :  { %v2103_v59 = vsel %vm2100_vm6, %v2102_v43, %v2098_v30  ;;  %v2151_v38 = vmul.f32 %v5940_v15, %v2088_v60  ;;  %v2126_v26 = vand.u32 2147483648, %v5408_v25  ;;  %v2134_v24 = vadd.f32 %v5423_v47, %v2133_v35  ;;  %v5951_v43 = vld [vmem:[#allocation15_spill] sm:$0xff] }
 0x4cc   :  { %v2152_v50 = vmul.f32 %v2148_v10, %v2103_v59  ;;  %vm2135_vm11 = vweird.f32 %v5410_v54  ;;  %v2139_v10 = vand.u32 2147483647, %v5410_v54  ;;  %v2123_v5 = vsel %vm2122_vm12, %v5419_v36, %v2119_v58 }
 0x4cd   :  { %v5459_v20 = vadd.f32 %v2153_v11, %v2151_v38  ;;  %vm2137_vm13 = vmor %vm2135_vm11, %vm2136_vm8  ;;  %v2127_v3 = vor.u32 1.1754944e-38, %v2126_v26  ;;  %vm2125_vm14 = vcmp.eq.f32.partialorder %v2124_v19, 8.507059e+37  ;;  %v2142_v63 = vor.u32 1.1754944e-38, %v2141_v62 }
 0x4ce   :  { %v5463_v41 = vadd.f32 %v2154_v34, %v2152_v50  ;;  %v2138_v18 = vsel %vm2137_vm13, %v5423_v47, %v2134_v24  ;;  %vm2140_vm15 = vcmp.eq.f32.partialorder %v2139_v10, 8.507059e+37 }
 0x4cf   :  { %3916 = vtanh.f32 %v5459_v20  ;;  %v2128_v61 = vsel %vm2125_vm14, %v2127_v3, %v2123_v5  ;;  %v2143_v25 = vsel %vm2140_vm15, %v2142_v63, %v2138_v18 }
 0x4d0   :  { %3918 = vtanh.f32 %v5463_v41 }
 0x4d5   :  { %v3917_v37 = vpop.eup %3916 }
 0x4d6   :  { %v3919_v49 = vpop.eup %3918  ;;  %v2159_v14 = vmul.f32 %v3917_v37, %v2128_v61 }
 0x4d7   :  { %v2160_v4 = vmul.f32 %v3919_v49, %v2143_v25  ;;  %v5952_v49 = vld [vmem:[#allocation16_spill] sm:$0xff] }
 0x4d8   :  { %v2161_v9 = vpack.c.bf16 %v2159_v14, %v2159_v14 }
 0x4d9   :  { %v2162_v33 = vpack.c.bf16 %v2160_v4, %v2160_v4 }
 0x4da   :  { %v2165_v52 = vunpack.c.l.b16 %v2161_v9  ;;  %v5953_v9 = vld [vmem:[#allocation18_spill] sm:$0xff] }
 0x4db   :  { %v2166_v46 = vunpack.c.l.b16 %v2162_v33 }
 0x4dc   :  { %v2167_v54 = vrot.slane %v2165_v52, 4 }
 0x4dd   :  { %v2168_v31 = vrot.slane %v2166_v46, 3 }
 0x4df   :  { %v2169_v36 = vsel %vm1281_vm9, %v2168_v31, %v2167_v54 }
 0x4e0   :  { %v2170_v11 = vpack.c.b16 %v2169_v36, %v2169_v36 }
 0x4e2   :  { %2180 = vmatmul.bf16.vlgmr.msrb.gmra.mxu2 %v2170_v11  ;;  %2193 = vmatmul.bf16.vlgmr.msrb.gmra.mxu3 %v2170_v11 }
 0x4e3   :  { %2206 = vmatmul.bf16.vlgmr.msrb.gmra.mxu0 %v2170_v11  ;;  %2219 = vmatmul.bf16.vlgmr.msra.gmra.mxu1 %v2170_v11 }
 0x4e4   :  { %2618 = vmatpush.bf16.msrb.mxu2 %v4572_v48  ;;  %2631 = vmatpush.bf16.msrb.mxu3 %v4583_v55  ;;  %v5943_v48 = vld [vmem:[#allocation9_spill] sm:$0xff]  ;;  %v5944_v55 = vld [vmem:[#allocation6_spill] sm:$0xff] }
 0x4e5   :  { %2644 = vmatpush.bf16.msrb.mxu0 %v4505_v7  ;;  %2657 = vmatpush.bf16.msra.mxu1 %v4840_v13  ;;  %v5941_v7 = vld [vmem:[#allocation10_spill] sm:$0xff] }
 0x4e8   :  { %2619 = vmatpush.bf16.msrb.mxu2 %v4611_v2  ;;  %2632 = vmatpush.bf16.msrb.mxu3 %v4623_v8 }
 0x4e9   :  { %2645 = vmatpush.bf16.msrb.mxu0 %v4541_v27  ;;  %2658 = vmatpush.bf16.msra.mxu1 %v4850_v22  ;;  %v5942_v27 = vld [vmem:[#allocation8_spill] sm:$0xff] }
 0x4ec   :  { %2620 = vmatpush.bf16.msrb.mxu2 %v4646_v21  ;;  %2633 = vmatpush.bf16.msrb.mxu3 %v4658_v28  ;;  %v5946_v28 = vld [vmem:[#allocation17_spill] sm:$0xff] }
 0x4ed   :  { %2646 = vmatpush.bf16.msrb.mxu0 %v4597_v32  ;;  %2659 = vmatpush.bf16.msra.mxu1 %v4862_v23  ;;  %v5945_v32 = vld [vmem:[#allocation11_spill] sm:$0xff]  ;;  %v5948_v23 = vld [vmem:[#allocation12_spill] sm:$0xff] }
 0x4f0   :  { %2621 = vmatpush.bf16.msrb.mxu2 %v4683_v44  ;;  %2634 = vmatpush.bf16.msrb.mxu3 %v4695_v56  ;;  %v5947_v44 = vld [vmem:[#allocation19_spill] sm:$0xff] }
 0x4f1   :  { %2647 = vmatpush.bf16.msrb.mxu0 %v4625_v12  ;;  %2660 = vmatpush.bf16.msra.mxu1 %v4875_v40 }
 0x4f4   :  { %2622 = vmatpush.bf16.msrb.mxu2 %v4716_v51  ;;  %2635 = vmatpush.bf16.msrb.mxu3 %v4728_v17 }
 0x4f5   :  { %2648 = vmatpush.bf16.msrb.mxu0 %v4660_v29  ;;  %2661 = vmatpush.bf16.msra.mxu1 %v4887_v45  ;;  %v5949_v45 = vld [vmem:[#allocation14_spill] sm:$0xff] }
 0x4f8   :  { %2623 = vmatpush.bf16.msrb.mxu2 %v4747_v39  ;;  %2636 = vmatpush.bf16.msrb.mxu3 %v4759_v53 }
 0x4f9   :  { %2649 = vmatpush.bf16.msrb.mxu0 %v4697_v57  ;;  %2662 = vmatpush.bf16.msra.mxu1 %v4900_v1 }
 0x4fc   :  { %2624 = vmatpush.bf16.msrb.mxu2 %v4778_v0  ;;  %2637 = vmatpush.bf16.msrb.mxu3 %v5885_v6  ;;  %v5950_v6 = vld [vmem:[#allocation13_spill] sm:$0xff] }
 0x4fd   :  { %2650 = vmatpush.bf16.msrb.mxu0 %v5886_v42  ;;  %2663 = vmatpush.bf16.msra.mxu1 %v5941_v7 }
 0x500   :  { %2625 = vmatpush.bf16.msrb.mxu2 %v5942_v27  ;;  %2638 = vmatpush.bf16.msrb.mxu3 %v5943_v48  ;;  %v2370_v27 = vrot.slane %v5459_v20, 7 }
 0x501   :  { %2651 = vmatpush.bf16.msrb.mxu0 %v5944_v55  ;;  %2664 = vmatpush.bf16.msra.mxu1 %v5945_v32  ;;  %v2371_v32 = vrot.slane %v5463_v41, 7 }
 0x560   :  { %v2207_v2 = vpop.f32.mrf.mxu0  ;;  %v2220_v8 = vpop.f32.mrf.mxu1 }
 0x561   :  { %v2231_v12 = vrot.slane %v2220_v8, 3  ;;  %v2235_v21 = vrot.slane %v2220_v8, 4  ;;  %v2230_v3 = vrot.slane %v2207_v2, 3  ;;  %v2234_v37 = vrot.slane %v2207_v2, 4 }
 0x563   :  { %v2247_v29 = vadd.f32 %v2231_v12, %v5946_v28  ;;  %v2251_v56 = vadd.f32 %v2235_v21, %v5947_v44  ;;  %v2246_v25 = vadd.f32 %v2230_v3, %v5952_v49  ;;  %v2250_v33 = vadd.f32 %v2234_v37, %v5953_v9 }
 0x565   :  { %v3541_v57 = vmul.f32 -1.442695, %v2247_v29  ;;  %v3542_v51 = vmul.f32 -1.442695, %v2251_v56  ;;  %v2181_v17 = vpop.f32.mrf.mxu2  ;;  %v2194_v39 = vpop.f32.mrf.mxu3 }
 0x566   :  { %v2228_v53 = vrot.slane %v2181_v17, 3  ;;  %v2232_v0 = vrot.slane %v2181_v17, 4  ;;  %v2229_v13 = vrot.slane %v2194_v39, 3  ;;  %v2233_v22 = vrot.slane %v2194_v39, 4 }
 0x567   :  { %3920 = vpow2.f32 %v3541_v57 }
 0x568   :  { %3922 = vpow2.f32 %v3542_v51  ;;  %v2244_v40 = vadd.f32 %v2228_v53, %v5948_v23  ;;  %v2248_v1 = vadd.f32 %v2232_v0, %v5949_v45  ;;  %v2245_v42 = vadd.f32 %v2229_v13, %v5950_v6  ;;  %v2209_v47 = vpop.f32.mrf.mxu0  ;;  %v2222_v16 = vpop.f32.mrf.mxu1 }
 0x569   :  { %v2249_v34 = vadd.f32 %v2233_v22, %v5951_v43 }
 0x56a   :  { %v3537_v60 = vmul.f32 -1.442695, %v2244_v40  ;;  %v3538_v30 = vmul.f32 -1.442695, %v2248_v1  ;;  %v3539_v35 = vmul.f32 -1.442695, %v2245_v42 }
 0x56b   :  { %v3540_v59 = vmul.f32 -1.442695, %v2249_v34 }
 0x56c   :  { %3924 = vpow2.f32 %v3537_v60 }
 0x56d   :  { %v3921_v15 = vpop.eup %3920  ;;  %3926 = vpow2.f32 %v3538_v30  ;;  %v2183_v38 = vpop.f32.mrf.mxu2 }
 0x56e   :  { %v2196_v50 = vpop.f32.mrf.mxu3  ;;  %v3923_v58 = vpop.eup %3922  ;;  %3928 = vpow2.f32 %v3539_v35  ;;  %v5516_v26 = vadd.f32 1.0, %v3921_v15 }
 0x56f   :  { %3930 = vpow2.f32 %v3540_v59  ;;  %v5518_v24 = vadd.f32 1.0, %v3923_v58 }
 0x570   :  { %3932 = vrcp.f32 %v5516_v26 }
 0x571   :  { %3934 = vrcp.f32 %v5518_v24  ;;  %v2364_v20 = vand.u32 2147483648, %v5518_v24 }
 0x572   :  { %v3925_v62 = vpop.eup %3924 }
 0x573   :  { %v3927_v19 = vpop.eup %3926  ;;  %v2258_v10 = vadd.f32 1.0, %v3925_v62 }
 0x574   :  { %v3929_v5 = vpop.eup %3928  ;;  %v2259_v18 = vadd.f32 1.0, %v3927_v19 }
 0x575   :  { %v3931_v63 = vpop.eup %3930  ;;  %3936 = vrcp.f32 %v2258_v10  ;;  %v5522_v61 = vadd.f32 1.0, %v3929_v5  ;;  %v2269_v54 = vand.u32 2147483647, %v2258_v10  ;;  %v2271_v31 = vand.u32 2147483648, %v2258_v10 }
 0x576   :  { %3938 = vrcp.f32 %v2259_v18  ;;  %v5525_v14 = vadd.f32 1.0, %v3931_v63  ;;  %v5527_v4 = vpop.eup %3932  ;;  %v2284_v7 = vand.u32 2147483647, %v2259_v18  ;;  %v2286_v55 = vand.u32 2147483648, %v2259_v18 }
 0x577   :  { %3940 = vrcp.f32 %v5522_v61  ;;  %v5531_v52 = vpop.eup %3934  ;;  %v2339_v2 = vmul.f32 %v5527_v4, %v5516_v26  ;;  %vm2265_vm0 = vweird.f32 %v2258_v10  ;;  %vm2280_vm1 = vweird.f32 %v2259_v18 }
 0x578   :  { %3942 = vrcp.f32 %v5525_v14  ;;  %v2354_v21 = vmul.f32 %v5531_v52, %v5518_v24  ;;  %vm5540_vm2 = vcmp.eq.f32.partialorder %v2269_v54, 8.507059e+37  ;;  %v2272_v56 = vor.u32 1.1754944e-38, %v2271_v31 }
 0x579   :  { %3944 = vtanh.f32 %v2246_v25  ;;  %vm5544_vm4 = vcmp.eq.f32.partialorder %v2284_v7, 8.507059e+37  ;;  %v2287_v0 = vor.u32 1.1754944e-38, %v2286_v55  ;;  %v2340_v40 = vsub.f32 1.0, %v2339_v2 }
 0x57a   :  { %3946 = vtanh.f32 %v2250_v33  ;;  %v2307_v47 = vand.u32 2147483647, %v5522_v61  ;;  %v2309_v60 = vand.u32 2147483648, %v5522_v61  ;;  %v2322_v35 = vand.u32 2147483647, %v5525_v14 }
 0x57b   :  { %v3937_v46 = vpop.eup %3936  ;;  %v2324_v38 = vand.u32 2147483648, %v5525_v14  ;;  %v2355_v19 = vsub.f32 1.0, %v2354_v21  ;;  %vm2303_vm11 = vweird.f32 %v5522_v61  ;;  %v2341_v3 = vmul.f32 %v5527_v4, %v2340_v40 }
 0x57c   :  { %v3939_v36 = vpop.eup %3938  ;;  %v2261_v11 = vmul.f32 %v3937_v46, %v2258_v10  ;;  %vm2266_vm3 = vweird.f32 %v3937_v46  ;;  %vm2318_vm13 = vweird.f32 %v5525_v14  ;;  %vm2308_vm14 = vcmp.eq.f32.partialorder %v2307_v47, 8.507059e+37 }
 0x57d   :  { %v2276_v48 = vmul.f32 %v3939_v36, %v2259_v18  ;;  %v3941_v12 = vpop.eup %3940  ;;  %vm2281_vm5 = vweird.f32 %v3939_v36  ;;  %vm2267_vm6 = vmor %vm2265_vm0, %vm2266_vm3  ;;  %v2310_v18 = vor.u32 1.1754944e-38, %v2309_v60  ;;  %v2325_v33 = vor.u32 1.1754944e-38, %v2324_v38 }
 0x57e   :  { %v2262_v8 = vsub.f32 1.0, %v2261_v11  ;;  %v3943_v51 = vpop.eup %3942  ;;  %v2299_v39 = vmul.f32 %v3941_v12, %v5522_v61  ;;  %vm2282_vm7 = vmor %vm2280_vm1, %vm2281_vm5  ;;  %vm2304_vm8 = vweird.f32 %v3941_v12  ;;  %vm2323_vm0 = vcmp.eq.f32.partialorder %v2322_v35, 8.507059e+37 }
 0x57f   :  { %v2277_v57 = vsub.f32 1.0, %v2276_v48  ;;  %v2314_v13 = vmul.f32 %v3943_v51, %v5525_v14  ;;  %v3945_v22 = vpop.eup %3944  ;;  %vm2319_vm10 = vweird.f32 %v3943_v51  ;;  %vm2305_vm12 = vmor %vm2303_vm11, %vm2304_vm8  ;;  %v2342_v14 = vadd.f32 %v5527_v4, %v2341_v3 }
 0x580   :  { %v2263_v17 = vmul.f32 %v3937_v46, %v2262_v8  ;;  %v2300_v42 = vsub.f32 1.0, %v2299_v39  ;;  %v3947_v16 = vpop.eup %3946  ;;  %vm2320_vm15 = vmor %vm2318_vm13, %vm2319_vm10  ;;  %vm2344_vm1 = vweird.f32 %v5527_v4  ;;  %v2349_v2 = vand.u32 2147483648, %v5516_v26 }
 0x581   :  { %v2278_v53 = vmul.f32 %v3939_v36, %v2277_v57  ;;  %v2315_v30 = vsub.f32 1.0, %v2314_v13  ;;  %vm2343_vm3 = vweird.f32 %v5516_v26 }
 0x582   :  { %v2264_v1 = vadd.f32 %v3937_v46, %v2263_v17  ;;  %v2301_v15 = vmul.f32 %v3941_v12, %v2300_v42  ;;  %vm2345_vm5 = vmor %vm2343_vm3, %vm2344_vm1  ;;  %v2350_v21 = vor.u32 1.1754944e-38, %v2349_v2 }
 0x583   :  { %v2279_v34 = vadd.f32 %v3939_v36, %v2278_v53  ;;  %v2316_v62 = vmul.f32 %v3943_v51, %v2315_v30 }
 0x584   :  { %v2268_v59 = vsel %vm2267_vm6, %v3937_v46, %v2264_v1  ;;  %v2302_v5 = vadd.f32 %v3941_v12, %v2301_v15 }
 0x585   :  { %v2273_v50 = vsel %vm5540_vm2, %v2272_v56, %v2268_v59  ;;  %v2283_v58 = vsel %vm2282_vm7, %v3939_v36, %v2279_v34  ;;  %v2317_v63 = vadd.f32 %v3943_v51, %v2316_v62  ;;  %v2356_v36 = vmul.f32 %v5531_v52, %v2355_v19 }
 0x586   :  { %v2288_v10 = vsel %vm5544_vm4, %v2287_v0, %v2283_v58  ;;  %v2376_v37 = vmul.f32 %v3945_v22, %v2273_v50  ;;  %v2306_v25 = vsel %vm2305_vm12, %v3941_v12, %v2302_v5  ;;  %vm2359_vm2 = vweird.f32 %v5531_v52 }
 0x587   :  { %v2377_v46 = vmul.f32 %v3947_v16, %v2288_v10  ;;  %v2311_v54 = vsel %vm2308_vm14, %v2310_v18, %v2306_v25  ;;  %v2321_v31 = vsel %vm2320_vm15, %v3943_v51, %v2317_v63  ;;  %v2357_v8 = vadd.f32 %v5531_v52, %v2356_v36 }
 0x588   :  { %v2326_v11 = vsel %vm2323_vm0, %v2325_v33, %v2321_v31  ;;  %v2374_v61 = vmul.f32 %v2370_v27, %v2311_v54  ;;  %v2347_v27 = vand.u32 2147483647, %v5516_v26  ;;  %vm2358_vm4 = vweird.f32 %v5518_v24 }
 0x589   :  { %v2375_v7 = vmul.f32 %v2371_v32, %v2326_v11  ;;  %v2362_v32 = vand.u32 2147483647, %v5518_v24  ;;  %v2346_v12 = vsel %vm2345_vm5, %v5527_v4, %v2342_v14  ;;  %vm2360_vm6 = vmor %vm2358_vm4, %vm2359_vm2  ;;  %v2365_v56 = vor.u32 1.1754944e-38, %v2364_v20 }
 0x58a   :  { %v5567_v48 = vadd.f32 %v2376_v37, %v2374_v61  ;;  %v2361_v29 = vsel %vm2360_vm6, %v5531_v52, %v2357_v8  ;;  %vm2348_vm7 = vcmp.eq.f32.partialorder %v2347_v27, 8.507059e+37 }
 0x58b   :  { %v5571_v55 = vadd.f32 %v2377_v46, %v2375_v7  ;;  %v2351_v51 = vsel %vm2348_vm7, %v2350_v21, %v2346_v12  ;;  %vm2363_vm8 = vcmp.eq.f32.partialorder %v2362_v32, 8.507059e+37 }
 0x58c   :  { %3948 = vtanh.f32 %v5567_v48  ;;  %v2366_v26 = vsel %vm2363_vm8, %v2365_v56, %v2361_v29 }
 0x58d   :  { %3950 = vtanh.f32 %v5571_v55 }
 0x592   :  { %v3949_v57 = vpop.eup %3948 }
 0x593   :  { %v3951_v17 = vpop.eup %3950  ;;  %v2382_v41 = vmul.f32 %v3949_v57, %v2351_v51 }
 0x594   :  { %v2383_v39 = vmul.f32 %v3951_v17, %v2366_v26 }
 0x595   :  { %v2384_v53 = vpack.c.bf16 %v2382_v41, %v2382_v41 }
 0x596   :  { %v2385_v0 = vpack.c.bf16 %v2383_v39, %v2383_v39 }
 0x597   :  { %v2388_v13 = vunpack.c.l.b16 %v2384_v53 }
 0x598   :  { %v2389_v22 = vunpack.c.l.b16 %v2385_v0 }
 0x599   :  { %v2390_v24 = vrot.slane %v2388_v13, 5 }
 0x59a   :  { %v2391_v40 = vrot.slane %v2389_v22, 4  ;;  %v2593_v22 = vrot.slane %v5567_v48, 7 }
 0x59c   :  { %v2392_v4 = vsel %vm1281_vm9, %v2391_v40, %v2390_v24 }
 0x59d   :  { %v2393_v1 = vpack.c.b16 %v2392_v4, %v2392_v4 }
 0x59f   :  { %2403 = vmatmul.bf16.vlgmr.msra.gmra.mxu2 %v2393_v1  ;;  %2416 = vmatmul.bf16.vlgmr.msra.gmra.mxu3 %v2393_v1 }
 0x5a0   :  { %2429 = vmatmul.bf16.vlgmr.msra.gmra.mxu0 %v2393_v1  ;;  %2442 = vmatmul.bf16.vlgmr.msrb.gmra.mxu1 %v2393_v1 }
 0x61d   :  { %v2430_v52 = vpop.f32.mrf.mxu0  ;;  %v2443_v42 = vpop.f32.mrf.mxu1 }
 0x61e   :  { %v2454_v47 = vrot.slane %v2443_v42, 2  ;;  %v2458_v16 = vrot.slane %v2443_v42, 3  ;;  %v2453_v12 = vrot.slane %v2430_v52, 2  ;;  %v2457_v21 = vrot.slane %v2430_v52, 3 }
 0x620   :  { %v2470_v34 = vadd.f32 %v2454_v47, %v5946_v28  ;;  %v2474_v60 = vadd.f32 %v2458_v16, %v5947_v44  ;;  %v2469_v17 = vadd.f32 %v2453_v12, %v5952_v49  ;;  %v2473_v41 = vadd.f32 %v2457_v21, %v5953_v9 }
 0x622   :  { %v2404_v30 = vpop.f32.mrf.mxu2  ;;  %v2417_v35 = vpop.f32.mrf.mxu3  ;;  %v3547_v59 = vmul.f32 -1.442695, %v2470_v34  ;;  %v3548_v58 = vmul.f32 -1.442695, %v2474_v60 }
 0x623   :  { %v2451_v15 = vrot.slane %v2404_v30, 2  ;;  %v2455_v38 = vrot.slane %v2404_v30, 3  ;;  %v2452_v50 = vrot.slane %v2417_v35, 2  ;;  %v2456_v62 = vrot.slane %v2417_v35, 3 }
 0x624   :  { %3952 = vpow2.f32 %v3547_v59 }
 0x625   :  { %v2467_v19 = vadd.f32 %v2451_v15, %v5948_v23  ;;  %v2471_v10 = vadd.f32 %v2455_v38, %v5949_v45  ;;  %v2468_v5 = vadd.f32 %v2452_v50, %v5950_v6  ;;  %v2432_v3 = vpop.f32.mrf.mxu0  ;;  %v2445_v18 = vpop.f32.mrf.mxu1  ;;  %v2472_v63 = vadd.f32 %v2456_v62, %v5951_v43 }
 0x626   :  { %3954 = vpow2.f32 %v3548_v58 }
 0x627   :  { %v3543_v37 = vmul.f32 -1.442695, %v2467_v19  ;;  %v3544_v25 = vmul.f32 -1.442695, %v2471_v10  ;;  %v3545_v33 = vmul.f32 -1.442695, %v2468_v5 }
 0x628   :  { %v3546_v46 = vmul.f32 -1.442695, %v2472_v63 }
 0x629   :  { %3956 = vpow2.f32 %v3543_v37 }
 0x62a   :  { %3958 = vpow2.f32 %v3544_v25  ;;  %v2406_v54 = vpop.f32.mrf.mxu2  ;;  %v2419_v31 = vpop.f32.mrf.mxu3 }
 0x62b   :  { %v3953_v36 = vpop.eup %3952  ;;  %3960 = vpow2.f32 %v3545_v33 }
 0x62c   :  { %v3955_v11 = vpop.eup %3954  ;;  %3962 = vpow2.f32 %v3546_v46  ;;  %v5592_v8 = vadd.f32 1.0, %v3953_v36 }
 0x62d   :  { %v5594_v27 = vadd.f32 1.0, %v3955_v11 }
 0x62f   :  { %v3957_v61 = vpop.eup %3956 }
 0x630   :  { %v3959_v7 = vpop.eup %3958  ;;  %v2481_v14 = vadd.f32 1.0, %v3957_v61 }
 0x631   :  { %v2482_v2 = vadd.f32 1.0, %v3959_v7  ;;  %v3961_v20 = vpop.eup %3960 }
 0x632   :  { %3964 = vrcp.f32 %v2481_v14  ;;  %v3963_v32 = vpop.eup %3962  ;;  %v5597_v29 = vadd.f32 1.0, %v3961_v20  ;;  %v2492_v4 = vand.u32 2147483647, %v2481_v14  ;;  %v2494_v52 = vand.u32 2147483648, %v2481_v14 }
 0x633   :  { %3966 = vrcp.f32 %v2482_v2  ;;  %v5600_v56 = vadd.f32 1.0, %v3963_v32  ;;  %v2507_v47 = vand.u32 2147483647, %v2482_v2  ;;  %vm2488_vm11 = vweird.f32 %v2481_v14 }
 0x634   :  { %3968 = vrcp.f32 %v5592_v8  ;;  %v2509_v34 = vand.u32 2147483648, %v2482_v2  ;;  %vm2503_vm13 = vweird.f32 %v2482_v2  ;;  %vm2493_vm15 = vcmp.eq.f32.partialorder %v2492_v4, 8.507059e+37 }
 0x635   :  { %3970 = vrcp.f32 %v5594_v27  ;;  %v2495_v58 = vor.u32 1.1754944e-38, %v2494_v52  ;;  %vm5622_vm0 = vcmp.eq.f32.partialorder %v2507_v47, 8.507059e+37  ;;  %v2532_v19 = vand.u32 2147483648, %v5597_v29 }
 0x636   :  { %3972 = vrcp.f32 %v5597_v29  ;;  %v2510_v18 = vor.u32 1.1754944e-38, %v2509_v34  ;;  %v2530_v37 = vand.u32 2147483647, %v5597_v29  ;;  %vm2526_vm3 = vweird.f32 %v5597_v29 }
 0x637   :  { %3974 = vrcp.f32 %v5600_v56  ;;  %v2547_v61 = vand.u32 2147483648, %v5600_v56  ;;  %v2533_v7 = vor.u32 1.1754944e-38, %v2532_v19  ;;  %vm2541_vm7 = vweird.f32 %v5600_v56 }
 0x638   :  { %v3965_v57 = vpop.eup %3964  ;;  %3976 = vtanh.f32 %v2469_v17  ;;  %vm2531_vm6 = vcmp.eq.f32.partialorder %v2530_v37, 8.507059e+37  ;;  %v2585_v34 = vand.u32 2147483647, %v5594_v27 }
 0x639   :  { %v3967_v51 = vpop.eup %3966  ;;  %v2484_v26 = vmul.f32 %v3965_v57, %v2481_v14  ;;  %vm2489_vm10 = vweird.f32 %v3965_v57  ;;  %3978 = vtanh.f32 %v2473_v41 }
 0x63a   :  { %v2499_v39 = vmul.f32 %v3967_v51, %v2482_v2  ;;  %v5606_v0 = vpop.eup %3968  ;;  %vm5614_vm12 = vmor %vm2488_vm11, %vm2489_vm10  ;;  %vm2504_vm14 = vweird.f32 %v3967_v51  ;;  %v2545_v2 = vand.u32 2147483647, %v5600_v56 }
 0x63b   :  { %v2485_v53 = vsub.f32 1.0, %v2484_v26  ;;  %v5609_v24 = vpop.eup %3970  ;;  %v2562_v30 = vmul.f32 %v5606_v0, %v5592_v8  ;;  %vm5628_vm1 = vmor %vm2503_vm13, %vm2504_vm14  ;;  %vm2567_vm11 = vweird.f32 %v5606_v0 }
 0x63c   :  { %v2500_v13 = vsub.f32 1.0, %v2499_v39  ;;  %v3973_v1 = vpop.eup %3972  ;;  %v2577_v15 = vmul.f32 %v5609_v24, %v5594_v27  ;;  %vm2546_vm10 = vcmp.eq.f32.partialorder %v2545_v2, 8.507059e+37  ;;  %v2594_v39 = vrot.slane %v5571_v55, 7 }
 0x63d   :  { %v2486_v40 = vmul.f32 %v3965_v57, %v2485_v53  ;;  %v2522_v60 = vmul.f32 %v3973_v1, %v5597_v29  ;;  %v3975_v59 = vpop.eup %3974  ;;  %vm2527_vm2 = vweird.f32 %v3973_v1  ;;  %v2563_v33 = vsub.f32 1.0, %v2562_v30 }
 0x63e   :  { %v2501_v42 = vmul.f32 %v3967_v51, %v2500_v13  ;;  %v2537_v10 = vmul.f32 %v3975_v59, %v5600_v56  ;;  %v3977_v5 = vpop.eup %3976  ;;  %v2578_v36 = vsub.f32 1.0, %v2577_v15  ;;  %vm2528_vm4 = vmor %vm2526_vm3, %vm2527_vm2  ;;  %vm2542_vm5 = vweird.f32 %v3975_v59 }
 0x63f   :  { %v2487_v16 = vadd.f32 %v3965_v57, %v2486_v40  ;;  %v2523_v50 = vsub.f32 1.0, %v2522_v60  ;;  %v3979_v25 = vpop.eup %3978  ;;  %v2564_v21 = vmul.f32 %v5606_v0, %v2563_v33  ;;  %vm2543_vm8 = vmor %vm2541_vm7, %vm2542_vm5  ;;  %v2548_v29 = vor.u32 1.1754944e-38, %v2547_v61 }
 0x640   :  { %v2502_v35 = vadd.f32 %v3967_v51, %v2501_v42  ;;  %v2538_v31 = vsub.f32 1.0, %v2537_v10  ;;  %v2579_v53 = vmul.f32 %v5609_v24, %v2578_v36  ;;  %v2572_v56 = vand.u32 2147483648, %v5592_v8 }
 0x641   :  { %v2491_v38 = vsel %vm5614_vm12, %v3965_v57, %v2487_v16  ;;  %v2524_v63 = vmul.f32 %v3973_v1, %v2523_v50  ;;  %v2565_v4 = vadd.f32 %v5606_v0, %v2564_v21  ;;  %vm2566_vm12 = vweird.f32 %v5592_v8  ;;  %v3745_v21 = vld [vmem:[%s5817_s6 + $0x30] sm:$0xff] }
 0x642   :  { %v2496_v46 = vsel %vm2493_vm15, %v2495_v58, %v2491_v38  ;;  %v2506_v54 = vsel %vm5628_vm1, %v3967_v51, %v2502_v35  ;;  %v2539_v14 = vmul.f32 %v3975_v59, %v2538_v31  ;;  %vm2568_vm13 = vmor %vm2566_vm12, %vm2567_vm11  ;;  %v2580_v55 = vadd.f32 %v5609_v24, %v2579_v53 }
 0x643   :  { %v2525_v11 = vadd.f32 %v3973_v1, %v2524_v63  ;;  %v2511_v20 = vsel %vm5622_vm0, %v2510_v18, %v2506_v54  ;;  %v2599_v32 = vmul.f32 %v3977_v5, %v2496_v46  ;;  %vm2582_vm14 = vweird.f32 %v5609_v24  ;;  %v3746_v54 = vld [vmem:[%s5817_s6 + $0x38] sm:$0xff] }
 0x644   :  { %v2540_v51 = vadd.f32 %v3975_v59, %v2539_v14  ;;  %v2600_v26 = vmul.f32 %v3979_v25, %v2511_v20  ;;  %v2587_v42 = vand.u32 2147483648, %v5594_v27  ;;  %v2569_v47 = vsel %vm2568_vm13, %v5606_v0, %v2565_v4  ;;  %2909 = vmatpush.bf16.msra.mxu2 %v3746_v54  ;;  %v3742_v4 = vld [vmem:[%s5817_s6 + $0x18] sm:$0xff] }
 0x645   :  { %v2529_v12 = vsel %vm2528_vm4, %v3973_v1, %v2525_v11  ;;  %v2573_v16 = vor.u32 1.1754944e-38, %v2572_v56  ;;  %vm2581_vm15 = vweird.f32 %v5594_v27  ;;  %vm2586_vm2 = vcmp.eq.f32.partialorder %v2585_v34, 8.507059e+37 }
 0x646   :  { %v2534_v57 = vsel %vm2531_vm6, %v2533_v7, %v2529_v12  ;;  %v2544_v41 = vsel %vm2543_vm8, %v3975_v59, %v2540_v51  ;;  %vm2583_vm1 = vmor %vm2581_vm15, %vm2582_vm14  ;;  %v2588_v48 = vor.u32 1.1754944e-38, %v2587_v42 }
 0x647   :  { %v2597_v17 = vmul.f32 %v2593_v22, %v2534_v57  ;;  %v2549_v13 = vsel %vm2546_vm10, %v2548_v29, %v2544_v41  ;;  %v2570_v22 = vand.u32 2147483647, %v5592_v8  ;;  %v2584_v30 = vsel %vm2583_vm1, %v5609_v24, %v2580_v55  ;;  %v3743_v41 = vld [vmem:[%s5817_s6 + $0x20] sm:$0xff] }
 0x648   :  { %v2598_v1 = vmul.f32 %v2594_v39, %v2549_v13  ;;  %v2589_v15 = vsel %vm2586_vm2, %v2588_v48, %v2584_v30  ;;  %2910 = vmatpush.bf16.msra.mxu2 %v3745_v21  ;;  %v3740_v48 = vld [vmem:[%s5817_s6 + $0x8] sm:$0xff] }
 0x649   :  { %v5644_v40 = vadd.f32 %v2599_v32, %v2597_v17  ;;  %vm2571_vm0 = vcmp.eq.f32.partialorder %v2570_v22, 8.507059e+37 }
 0x64a   :  { %v5652_v52 = vadd.f32 %v2600_v26, %v2598_v1  ;;  %v2574_v60 = vsel %vm2571_vm0, %v2573_v16, %v2569_v47  ;;  %v3741_v47 = vld [vmem:[%s5817_s6 + $0x10] sm:$0xff] }
 0x64b   :  { %3980 = vtanh.f32 %v5644_v40 }
 0x64c   :  { %3982 = vtanh.f32 %v5652_v52 }
 0x651   :  { %v3981_v8 = vpop.eup %3980 }
 0x652   :  { %v2605_v35 = vmul.f32 %v3981_v8, %v2574_v60  ;;  %v3983_v59 = vpop.eup %3982 }
 0x653   :  { %v2606_v0 = vmul.f32 %v3983_v59, %v2589_v15 }
 0x654   :  { %v2607_v38 = vpack.c.bf16 %v2605_v35, %v2605_v35 }
 0x655   :  { %v2608_v58 = vpack.c.bf16 %v2606_v0, %v2606_v0 }
 0x656   :  { %v2611_v50 = vunpack.c.l.b16 %v2607_v38 }
 0x657   :  { %v2612_v62 = vunpack.c.l.b16 %v2608_v58 }
 0x658   :  { %v2613_v19 = vrot.slane %v2611_v50, 6 }
 0x659   :  { %v2614_v10 = vrot.slane %v2612_v62, 5 }
 0x65b   :  { %v2615_v27 = vsel %vm1281_vm9, %v2614_v10, %v2613_v19  ;;  %v2816_v19 = vrot.slane %v5644_v40, 7  ;;  %v3739_v10 = vld [vmem:[%s5817_s6] sm:$0xff] }
 0x65c   :  { %v2616_v5 = vpack.c.b16 %v2615_v27, %v2615_v27  ;;  %v3751_v40 = vld [vmem:[%s5819_s8 + $0x20] sm:$0xff] }
 0x65e   :  { %2626 = vmatmul.bf16.vlgmr.msrb.gmra.mxu2 %v2616_v5  ;;  %2639 = vmatmul.bf16.vlgmr.msrb.gmra.mxu3 %v2616_v5 }
 0x65f   :  { %2652 = vmatmul.bf16.vlgmr.msrb.gmra.mxu0 %v2616_v5  ;;  %2665 = vmatmul.bf16.vlgmr.msra.gmra.mxu1 %v2616_v5 }
 0x6dc   :  { %v5663_v24 = vpop.f32.mrf.mxu0  ;;  %v2666_v3 = vpop.f32.mrf.mxu1 }
 0x6dd   :  { %v2677_v18 = vrot.slane %v2666_v3, 1  ;;  %v2681_v63 = vrot.slane %v2666_v3, 2  ;;  %v2676_v16 = vrot.slane %v5663_v24, 1  ;;  %v2680_v34 = vrot.slane %v5663_v24, 2 }
 0x6df   :  { %v2693_v37 = vadd.f32 %v2677_v18, %v5946_v28  ;;  %v2697_v25 = vadd.f32 %v2681_v63, %v5947_v44  ;;  %v2692_v59 = vadd.f32 %v2676_v16, %v5952_v49  ;;  %v2696_v38 = vadd.f32 %v2680_v34, %v5953_v9  ;;  %v3752_v34 = vld [vmem:[%s5819_s8 + $0x28] sm:$0xff] }
 0x6e1   :  { %v2627_v33 = vpop.f32.mrf.mxu2  ;;  %v2640_v46 = vpop.f32.mrf.mxu3  ;;  %v3553_v31 = vmul.f32 -1.442695, %v2693_v37  ;;  %v3554_v7 = vmul.f32 -1.442695, %v2697_v25 }
 0x6e2   :  { %v2674_v36 = vrot.slane %v2627_v33, 1  ;;  %v2678_v11 = vrot.slane %v2627_v33, 2  ;;  %v2675_v61 = vrot.slane %v2640_v46, 1  ;;  %v2679_v14 = vrot.slane %v2640_v46, 2 }
 0x6e3   :  { %3984 = vpow2.f32 %v3553_v31 }
 0x6e4   :  { %v2690_v2 = vadd.f32 %v2674_v36, %v5948_v23  ;;  %v2694_v20 = vadd.f32 %v2678_v11, %v5949_v45  ;;  %v2691_v28 = vadd.f32 %v2675_v61, %v5950_v6  ;;  %v2655_v44 = vpop.f32.mrf.mxu0  ;;  %v2668_v32 = vpop.f32.mrf.mxu1  ;;  %v2695_v12 = vadd.f32 %v2679_v14, %v5951_v43  ;;  %v3744_v6 = vld [vmem:[%s5817_s6 + $0x28] sm:$0xff] }
 0x6e5   :  { %3986 = vpow2.f32 %v3554_v7  ;;  %2911 = vmatpush.bf16.msra.mxu2 %v3744_v6  ;;  %v3753_v6 = vld [vmem:[%s5819_s8 + $0x30] sm:$0xff] }
 0x6e6   :  { %v3549_v57 = vmul.f32 -1.442695, %v2690_v2  ;;  %v3550_v51 = vmul.f32 -1.442695, %v2694_v20  ;;  %v3551_v29 = vmul.f32 -1.442695, %v2691_v28 }
 0x6e7   :  { %v3552_v23 = vmul.f32 -1.442695, %v2695_v12  ;;  %v3754_v28 = vld [vmem:[%s5819_s8 + $0x38] sm:$0xff] }
 0x6e8   :  { %3988 = vpow2.f32 %v3549_v57  ;;  %2992 = vmatpush.bf16.msra.mxu3 %v3754_v28  ;;  %v3758_v28 = vld [vmem:[%s5818_s7] ss:$0 sm:$0xff] }
 0x6e9   :  { %3990 = vpow2.f32 %v3550_v51  ;;  %v2629_v45 = vpop.f32.mrf.mxu2  ;;  %v2642_v17 = vpop.f32.mrf.mxu3  ;;  %2912 = vmatpush.bf16.msra.mxu2 %v3743_v41 }
 0x6ea   :  { %v3985_v43 = vpop.eup %3984  ;;  %3992 = vpow2.f32 %v3551_v29 }
 0x6eb   :  { %v3987_v26 = vpop.eup %3986  ;;  %3994 = vpow2.f32 %v3552_v23  ;;  %v5688_v56 = vadd.f32 1.0, %v3985_v43 }
 0x6ec   :  { %v5690_v55 = vadd.f32 1.0, %v3987_v26  ;;  %2993 = vmatpush.bf16.msra.mxu3 %v3753_v6 }
 0x6ed   :  { %2913 = vmatpush.bf16.msra.mxu2 %v3742_v4 }
 0x6ee   :  { %v3989_v39 = vpop.eup %3988 }
 0x6ef   :  { %v3991_v53 = vpop.eup %3990  ;;  %v2704_v13 = vadd.f32 1.0, %v3989_v39 }
 0x6f0   :  { %v5686_v1 = vadd.f32 1.0, %v3991_v53  ;;  %v3993_v22 = vpop.eup %3992  ;;  %2994 = vmatpush.bf16.msra.mxu3 %v3752_v34 }
 0x6f1   :  { %3996 = vrcp.f32 %v2704_v13  ;;  %v3995_v42 = vpop.eup %3994  ;;  %v5699_v8 = vadd.f32 1.0, %v3993_v22  ;;  %2914 = vmatpush.bf16.msra.mxu2 %v3741_v47  ;;  %v2715_v27 = vand.u32 2147483647, %v2704_v13  ;;  %v2717_v24 = vand.u32 2147483648, %v2704_v13 }
 0x6f2   :  { %3998 = vrcp.f32 %v5686_v1  ;;  %v5702_v60 = vadd.f32 1.0, %v3995_v42  ;;  %v2730_v18 = vand.u32 2147483647, %v5686_v1  ;;  %vm2711_vm4 = vweird.f32 %v2704_v13 }
 0x6f3   :  { %4000 = vrcp.f32 %v5688_v56  ;;  %v2732_v37 = vand.u32 2147483648, %v5686_v1  ;;  %vm2726_vm6 = vweird.f32 %v5686_v1  ;;  %vm2716_vm8 = vcmp.eq.f32.partialorder %v2715_v27, 8.507059e+37 }
 0x6f4   :  { %4002 = vrcp.f32 %v5690_v55  ;;  %v2718_v7 = vor.u32 1.1754944e-38, %v2717_v24  ;;  %vm5740_vm10 = vcmp.eq.f32.partialorder %v2730_v18, 8.507059e+37  ;;  %v2755_v2 = vand.u32 2147483648, %v5699_v8  ;;  %2995 = vmatpush.bf16.msra.mxu3 %v3751_v40 }
 0x6f5   :  { %4004 = vrcp.f32 %v5699_v8  ;;  %2915 = vmatpush.bf16.msra.mxu2 %v3740_v48  ;;  %v2733_v12 = vor.u32 1.1754944e-38, %v2732_v37  ;;  %v2753_v57 = vand.u32 2147483647, %v5699_v8  ;;  %vm2749_vm13 = vweird.f32 %v5699_v8 }
 0x6f6   :  { %4006 = vrcp.f32 %v5702_v60  ;;  %v2770_v41 = vand.u32 2147483648, %v5702_v60  ;;  %v2756_v39 = vor.u32 1.1754944e-38, %v2755_v2  ;;  %vm2764_vm1 = vweird.f32 %v5702_v60  ;;  %v3748_v2 = vld [vmem:[%s5819_s8 + $0x8] sm:$0xff] }
 0x6f7   :  { %v3997_v30 = vpop.eup %3996  ;;  %4008 = vtanh.f32 %v2692_v59  ;;  %vm2754_vm0 = vcmp.eq.f32.partialorder %v2753_v57, 8.507059e+37  ;;  %v2817_v59 = vrot.slane %v5652_v52, 7  ;;  %v2793_v52 = vand.u32 2147483647, %v5688_v56 }
 0x6f8   :  { %v5708_v35 = vpop.eup %3998  ;;  %v2707_v15 = vmul.f32 %v3997_v30, %v2704_v13  ;;  %vm2712_vm3 = vweird.f32 %v3997_v30  ;;  %4010 = vtanh.f32 %v2696_v38  ;;  %v2768_v13 = vand.u32 2147483647, %v5702_v60 }
 0x6f9   :  { %v2722_v0 = vmul.f32 %v5708_v35, %v5686_v1  ;;  %v5715_v58 = vpop.eup %4000  ;;  %vm5729_vm5 = vmor %vm2711_vm4, %vm2712_vm3  ;;  %vm2727_vm7 = vweird.f32 %v5708_v35  ;;  %2916 = vmatpush.bf16.msra.mxu2 %v3739_v10 }
 0x6fa   :  { %v2708_v50 = vsub.f32 1.0, %v2707_v15  ;;  %v5721_v49 = vpop.eup %4002  ;;  %v2785_v33 = vmul.f32 %v5715_v58, %v5688_v56  ;;  %vm5749_vm11 = vmor %vm2726_vm6, %vm2727_vm7  ;;  %vm2769_vm3 = vcmp.eq.f32.partialorder %v2768_v13, 8.507059e+37  ;;  %vm2790_vm4 = vweird.f32 %v5715_v58 }
 0x6fb   :  { %v2723_v62 = vsub.f32 1.0, %v2722_v0  ;;  %v4005_v5 = vpop.eup %4004  ;;  %v2800_v36 = vmul.f32 %v5721_v49, %v5690_v55  ;;  %vm2805_vm7 = vweird.f32 %v5721_v49 }
 0x6fc   :  { %v2709_v9 = vmul.f32 %v3997_v30, %v2708_v50  ;;  %v2745_v25 = vmul.f32 %v4005_v5, %v5699_v8  ;;  %v4007_v31 = vpop.eup %4006  ;;  %vm2750_vm12 = vweird.f32 %v4005_v5  ;;  %v2786_v29 = vsub.f32 1.0, %v2785_v33 }
 0x6fd   :  { %v2724_v3 = vmul.f32 %v5708_v35, %v2723_v62  ;;  %v2760_v20 = vmul.f32 %v4007_v31, %v5702_v60  ;;  %v4009_v44 = vpop.eup %4008  ;;  %v2801_v43 = vsub.f32 1.0, %v2800_v36  ;;  %vm2751_vm14 = vmor %vm2749_vm13, %vm2750_vm12  ;;  %vm2765_vm15 = vweird.f32 %v4007_v31 }
 0x6fe   :  { %v2710_v63 = vadd.f32 %v3997_v30, %v2709_v9  ;;  %v2746_v61 = vsub.f32 1.0, %v2745_v25  ;;  %v4011_v51 = vpop.eup %4010  ;;  %v2787_v42 = vmul.f32 %v5715_v58, %v2786_v29  ;;  %vm2766_vm2 = vmor %vm2764_vm1, %vm2765_vm15  ;;  %v2771_v8 = vor.u32 1.1754944e-38, %v2770_v41 }
 0x6ff   :  { %v2725_v54 = vadd.f32 %v5708_v35, %v2724_v3  ;;  %v2761_v17 = vsub.f32 1.0, %v2760_v20  ;;  %v2802_v15 = vmul.f32 %v5721_v49, %v2801_v43  ;;  %v2795_v62 = vand.u32 2147483648, %v5688_v56  ;;  %v3747_v20 = vld [vmem:[%s5819_s8] sm:$0xff] }
 0x700   :  { %v2714_v11 = vsel %vm5729_vm5, %v3997_v30, %v2710_v63  ;;  %v2747_v21 = vmul.f32 %v4005_v5, %v2746_v61  ;;  %v2788_v60 = vadd.f32 %v5715_v58, %v2787_v42  ;;  %vm2789_vm5 = vweird.f32 %v5688_v56 }
 0x701   :  { %v2719_v23 = vsel %vm2716_vm8, %v2718_v7, %v2714_v11  ;;  %v2729_v45 = vsel %vm5749_vm11, %v5708_v35, %v2725_v54  ;;  %v2762_v53 = vmul.f32 %v4007_v31, %v2761_v17  ;;  %vm2791_vm6 = vmor %vm2789_vm5, %vm2790_vm4  ;;  %v2803_v10 = vadd.f32 %v5721_v49, %v2802_v15 }
 0x702   :  { %v2748_v26 = vadd.f32 %v4005_v5, %v2747_v21  ;;  %v2734_v4 = vsel %vm5740_vm10, %v2733_v12, %v2729_v45  ;;  %v2822_v1 = vmul.f32 %v4009_v44, %v2719_v23  ;;  %v2810_v9 = vand.u32 2147483648, %v5690_v55 }
 0x703   :  { %v2763_v16 = vadd.f32 %v4007_v31, %v2762_v53  ;;  %v2823_v48 = vmul.f32 %v4011_v51, %v2734_v4  ;;  %v2792_v27 = vsel %vm2791_vm6, %v5715_v58, %v2788_v60  ;;  %v2796_v24 = vor.u32 1.1754944e-38, %v2795_v62  ;;  %v3749_v58 = vld [vmem:[%s5819_s8 + $0x10] sm:$0xff]  ;;  %v3759_v51 = vld [vmem:[%s5820_s9] ss:$0 sm:$0xff] }
 0x704   :  { %v2752_v22 = vsel %vm2751_vm14, %v4005_v5, %v2748_v26  ;;  %v3750_v5 = vld [vmem:[%s5819_s8 + $0x18] sm:$0xff]  ;;  %vm2804_vm8 = vweird.f32 %v5690_v55  ;;  %v2808_v56 = vand.u32 2147483647, %v5690_v55  ;;  %vm2794_vm10 = vcmp.eq.f32.partialorder %v2793_v52, 8.507059e+37  ;;  %s3014_s8 = sshll.u32 %s5821_s10, 4  ;;  %s3015_s8 = int_to_ptr.hbm [resolvable:$true] %s3014_s8 }
 0x705   :  { %v2757_v47 = vsel %vm2754_vm0, %v2756_v39, %v2752_v22  ;;  %v2767_v35 = vsel %vm2766_vm2, %v4007_v31, %v2763_v16  ;;  %vm2806_vm11 = vmor %vm2804_vm8, %vm2805_vm7  ;;  %v2797_v18 = vsel %vm2794_vm10, %v2796_v24, %v2792_v27  ;;  %v2811_v37 = vor.u32 1.1754944e-38, %v2810_v9  ;;  %2996 = vmatpush.bf16.msra.mxu3 %v3750_v5 }
 0x706   :  { %v2820_v30 = vmul.f32 %v2816_v19, %v2757_v47  ;;  %v2772_v38 = vsel %vm2769_vm3, %v2771_v8, %v2767_v35  ;;  %v2807_v63 = vsel %vm2806_vm11, %v5721_v49, %v2803_v10  ;;  %vm2809_vm12 = vcmp.eq.f32.partialorder %v2808_v56, 8.507059e+37 }
 0x707   :  { %v2821_v50 = vmul.f32 %v2817_v59, %v2772_v38  ;;  %v2812_v46 = vsel %vm2809_vm12, %v2811_v37, %v2807_v63 }
 0x708   :  { %v2824_v0 = vadd.f32 %v2822_v1, %v2820_v30 }
 0x709   :  { %v2825_v19 = vadd.f32 %v2823_v48, %v2821_v50  ;;  %2997 = vmatpush.bf16.msra.mxu3 %v3749_v58 }
 0x70a   :  { %4012 = vtanh.f32 %v2824_v0 }
 0x70b   :  { %4014 = vtanh.f32 %v2825_v19 }
 0x70d   :  { %2998 = vmatpush.bf16.msra.mxu3 %v3748_v2 }
 0x710   :  { %v4013_v3 = vpop.eup %4012 }
 0x711   :  { %v2828_v25 = vmul.f32 %v4013_v3, %v2797_v18  ;;  %v4015_v33 = vpop.eup %4014  ;;  %2999 = vmatpush.bf16.msra.mxu3 %v3747_v20 }
 0x712   :  { %v2829_v31 = vmul.f32 %v4015_v33, %v2812_v46 }
 0x713   :  { %v2830_v54 = vpack.c.bf16 %v2828_v25, %v2828_v25 }
 0x714   :  { %v2831_v55 = vpack.c.bf16 %v2829_v31, %v2829_v31 }
 0x715   :  { %v2854_v36 = vunpack.c.l.b16 %v2830_v54 }
 0x716   :  { %v2855_v11 = vunpack.c.l.b16 %v2831_v55 }
 0x717   :  { %v2856_v61 = vrot.slane %v2854_v36, 7 }
 0x718   :  { %v2857_v7 = vrot.slane %v2855_v11, 6 }
 0x71a   :  { %v2858_v49 = vsel %vm1281_vm9, %v2857_v7, %v2856_v61  ;;  %vm3005_vm9 = vcmask 74752  }
 0x71b   :  { %v2859_v14 = vpack.c.b16 %v2858_v49, %v2858_v49 }
 0x71d   :  { %2917 = vmatmul.bf16.vlgmr.msra.gmra.mxu2 %v2859_v14 }
 0x7a0   :  { %v2918_v44 = vpop.f32.mrf.mxu2 }
 0x7a1   :  { %v2919_v32 = vadd.f32 %v3758_v28, %v2918_v44 }
 0x7a3   :  { %v2922_v12 = vmax.f32 %v2919_v32, 0.0 }
 0x7a5   :  { %v2923_v21 = vpack.c.bf16 %v2922_v12, %v2922_v12 }
 0x7a7   :  { %3000 = vmatmul.bf16.vlgmr.msra.gmra.mxu3 %v2923_v21 }
 0x7a8   :  { %v2920_v57 = vpop.f32.mrf.mxu2 }
 0x82a   :  { %v3001_v29 = vpop.f32.mrf.mxu3 }
 0x82b   :  { %v3002_v23 = vadd.f32 %v3759_v51, %v3001_v29 }
 0x82d   :  { %3006 = vst.msk [vmem:[#allocation2] sm:$0x3] %vm3005_vm9, %v3002_v23 }
 0x82e   :  { %3017 = dma.vmem_to_hbm [thread:$0]  %s3013_s21, 32, %s3015_s8, [#allocation3]  }
 0x832   :  { %v3003_v45 = vpop.f32.mrf.mxu3 }
 0x833   :  { %4040 = dma.done.wait [#allocation3], 32  }
 0x834   :  { %4041 = vsyncadd [#allocation3], 4294967264 }
 0x835   :  { %3022 = vsyncpa [#allocation3], 1 }

</bundles_post_ra>
